<compile_context>
chip_gen: v5e
topology: v5e:2x2
jax: 0.10.0
libtpu: 0.0.40
codegen_flags: <defaults>
</compile_context>

<pallas_src>
import math
from functools import partial

import numpy as np
import jax
import jax.numpy as jnp
from jax.experimental import pallas as pl
from jax.experimental.pallas import tpu as pltpu

F32 = jnp.float32
_INV_SQRT2 = 0.7071067811865476


# ---------------------------------------------------------------------------
# In-kernel math helpers (only primitives that lower on Mosaic)
# ---------------------------------------------------------------------------

def _erf(x):
    # Abramowitz & Stegun 7.1.26, |err| < 1.5e-7 (f32-level agreement with the
    # exact erf used by torch.nn.GELU(), not bitwise parity).
    ax = jnp.abs(x)
    t = 1.0 / (1.0 + 0.3275911 * ax)
    poly = ((((1.061405429 * t - 1.453152027) * t + 1.421413741) * t
             - 0.284496736) * t + 0.254829592) * t
    y = 1.0 - poly * jnp.exp(-ax * ax)
    return jnp.where(x >= 0.0, y, -y)


def _gelu(x):
    return 0.5 * x * (1.0 + _erf(x * _INV_SQRT2))


def _silu(x):
    return x * (1.0 / (1.0 + jnp.exp(-x)))


def _ln(x, eps=1e-5):
    mu = jnp.mean(x, axis=-1, keepdims=True)
    var = jnp.mean((x - mu) ** 2, axis=-1, keepdims=True)
    return (x - mu) * jax.lax.rsqrt(var + eps)


def _mm3(x3, w, brow=None):
    """(Bb, R, K) @ (K, N) -> (Bb, R, N); rows flattened so the MXU sees Bb*R."""
    Bb, R, K = x3.shape
    y = jnp.dot(x3.reshape(Bb * R, K), w, preferred_element_type=F32)
    if brow is not None:
        y = y + brow
    return y.reshape(Bb, R, w.shape[1])


def _attention(q_all, k_all, v_all, n_head):
    """Per-head softmax attention on lane slices of fused QKV projections."""
    Bb, T, C = q_all.shape
    hd = C // n_head
    inv = 1.0 / math.sqrt(hd)
    outs = []
    for i in range(n_head):
        sl = slice(i * hd, (i + 1) * hd)
        q, k, v = q_all[:, :, sl], k_all[:, :, sl], v_all[:, :, sl]
        s = jnp.einsum('bqd,bkd->bqk', q, k, preferred_element_type=F32) * inv
        s = s - jnp.max(s, axis=-1, keepdims=True)
        p = jnp.exp(s)
        p = p * pl.reciprocal(jnp.sum(p, axis=-1, keepdims=True), approx=True)
        outs.append(jnp.einsum('bqk,bkd->bqd', p, v, preferred_element_type=F32))
    return jnp.concatenate(outs, axis=-1)            # heads -> (Bb, T, C)


def _shift_lanes(x, zcol, direction):
    """Non-circular lane shift: result[:, t] = x[:, t + direction], zero at edge
    (matches Conv1d's zero padding; no circular wrap)."""
    if direction == -1:
        return jnp.concatenate([zcol, x[:, :-1]], axis=1)
    return jnp.concatenate([x[:, 1:], zcol], axis=1)


# ---------------------------------------------------------------------------
# Packed weight layout (shared by init and the kernel; all static Python ints)
# ---------------------------------------------------------------------------

def _make_layout(C, Dk, nf, nc, hidden, sp):
    def build(entries):
        out, off = {}, 0
        for name, width in entries:
            out[name] = (off, off + width)
            off += width
        return out, off

    A, KA = build([('ln1', 2 * C), ('ln11', 2 * C), ('sa_qkv', 3 * C),
                   ('sa_proj', C), ('ca_q', C), ('ca_proj', C),
                   ('mlp1', hidden), ('lin', nf)])
    Bo, KB = build([('ln1_b', 2 * C), ('ln11_b', 2 * C), ('sa_qkv_b', 3 * C),
                    ('sa_proj_b', C), ('ca_q_b', C), ('ca_kv_b', 2 * C),
                    ('ca_proj_b', C), ('mlp1_b', hidden), ('mlp2_b', C),
                    ('ln2_g', C), ('ln2_b', C), ('lin_b', nf), ('t2_b', nf)])
    return dict(C=C, Dk=Dk, nf=nf, nc=nc, hidden=hidden, sp=sp,
                A=A, B=Bo, KA=KA, KB=KB)


# ---------------------------------------------------------------------------
# The single fused decoder kernel (one grid step == one batch block)
# ---------------------------------------------------------------------------

def _decoder_kernel(x_ref, emb_ref, enc_ref,
                    wA_ref, wE_ref, wM_ref, bR_ref,
                    wN_ref, wT1_ref, wT2_ref, bC_ref, poly_ref,
                    xo_ref, mean_ref, trend_ref, season_ref,
                    *, n_layer, n_head, lay):
    C, nf, nc, sp = lay['C'], lay['nf'], lay['nc'], lay['sp']
    Bb = x_ref.shape[0]
    Te = enc_ref.shape[1]

    x = x_ref[...].astype(F32)                                   # (Bb, T=nc, C)
    enc2 = enc_ref[...].astype(F32).reshape(Bb * Te, -1)         # (Bb*Te, Dk)
    emb = emb_ref[...].astype(F32)                               # (Bb, 2, C)
    sil_s = _silu(emb[:, 0, :])                                  # AdaLN(self) emb
    sil_c = _silu(emb[:, 1, :])                                  # AdaLN(cross) emb

    # Constants shared by every layer (built once).
    tpolyT = poly_ref[:, 0:3]                                    # (nc, 3)
    spolyT = poly_ref[:, 3:3 + sp]                               # (nc, sp)
    r3 = jax.lax.broadcasted_iota(jnp.int32, (3, 3), 0)
    c3 = jax.lax.broadcasted_iota(jnp.int32, (3, 3), 1)
    dn3 = (c3 == r3 - 1).astype(F32)        # (dn3 @ a)[s] = a[s-1]  (row 0 -> 0)
    up3 = (c3 == r3 + 1).astype(F32)        # (up3 @ a)[s] = a[s+1]  (row 2 -> 0)
    zcol = jnp.zeros((nc, 1), F32)

    trend_acc = jnp.zeros((Bb, nc, nf), F32)
    season_acc = jnp.zeros((Bb, nc, C), F32)
    rms = []

    for l in range(n_layer):                                     # unrolled
        def wa(name, _l=l):
            lo, hi = lay['A'][name]
            return wA_ref[_l, :, lo:hi]

        def br(name, _l=l):
            lo, hi = lay['B'][name]
            return bR_ref[_l, :, lo:hi]

        # ---- AdaLayerNorm + fused-QKV self-attention + proj + residual -----
        ss = jnp.dot(sil_s, wa('ln1'), preferred_element_type=F32) + br('ln1_b')
        h = _ln(x) * (1.0 + ss[:, None, :C]) + ss[:, None, C:]
        qkv = _mm3(h, wa('sa_qkv'), br('sa_qkv_b'))              # (Bb, T, 3C)
        y = _attention(qkv[..., 0:C], qkv[..., C:2 * C], qkv[..., 2 * C:3 * C],
                       n_head)
        x = x + _mm3(y, wa('sa_proj'), br('sa_proj_b'))

        # ---- AdaLayerNorm + fused-KV cross-attention + proj + residual -----
        ss = jnp.dot(sil_c, wa('ln11'), preferred_element_type=F32) + br('ln11_b')
        h = _ln(x) * (1.0 + ss[:, None, :C]) + ss[:, None, C:]
        q = _mm3(h, wa('ca_q'), br('ca_q_b'))                    # (Bb, T, C)
        kv = (jnp.dot(enc2, wE_ref[l], preferred_element_type=F32)
              + br('ca_kv_b')).reshape(Bb, Te, 2 * C)
        y = _attention(q, kv[..., 0:C], kv[..., C:2 * C], n_head)
        x = x + _mm3(y, wa('ca_proj'), br('ca_proj_b'))

        # ---- proj Conv(K=1) -> TrendBlock / SeasonBlock (tiny per-batch) ----
        # Conv1d is cross-correlation: tap k in {0,1,2} <-> offset k-1 with
        # pad=1 zero padding (non-circular).
        t2b = br('t2_b')
        tr_bs, se_bs = [], []
        for b in range(Bb):
            xb = x[b]                                            # (nc, C)
            x12 = (jnp.dot(wN_ref[l, 0:2 * nc], xb, preferred_element_type=F32)
                   + bC_ref[l, 0:2 * nc])                        # (2nc, C)
            x1, x2 = x12[0:nc], x12[nc:2 * nc]
            # Trend conv1 (nc->3, K=3) along n_embd: single MXU dot against the
            # concatenation of the -1/0/+1 zero-padded shifted copies.
            x1cat = jnp.concatenate(
                [_shift_lanes(x1, zcol, -1), x1, _shift_lanes(x1, zcol, 1)],
                axis=0)                                          # (3nc, C)
            h1 = _gelu(jnp.dot(wT1_ref[l], x1cat, preferred_element_type=F32)
                       + bC_ref[l, 2 * nc:2 * nc + 3])           # (3, C)
            # Trend conv2 (C->nf, K=3) along the length-3 axis: im2col rows via
            # tiny 3x3 row-shift matrices, then one MXU dot.
            a_mat = jnp.concatenate(
                [jnp.dot(dn3, h1, preferred_element_type=F32), h1,
                 jnp.dot(up3, h1, preferred_element_type=F32)], axis=1)  # (3, 3C)
            g = jnp.dot(a_mat, wT2_ref[l], preferred_element_type=F32) + t2b
            tr_bs.append(jnp.dot(tpolyT, g, preferred_element_type=F32))  # (nc, nf)
            # SeasonBlock: K=1 conv + Fourier-basis matmul.
            s = (jnp.dot(wN_ref[l, 2 * nc:2 * nc + sp], xb,
                         preferred_element_type=F32)
                 + bC_ref[l, 2 * nc + 3:2 * nc + 3 + sp])        # (sp, C)
            se_bs.append(jnp.dot(spolyT, s, preferred_element_type=F32))  # (nc, C)
        trend_acc = trend_acc + jnp.stack(tr_bs, axis=0)
        season_acc = season_acc + jnp.stack(se_bs, axis=0)

        # ---- LayerNorm + MLP + residual, center over T, residual-mean linear
        h = _ln(x) * br('ln2_g') + br('ln2_b')
        hid = _gelu(_mm3(h, wa('mlp1'), br('mlp1_b')))
        x = x + _mm3(hid, wM_ref[l], br('mlp2_b'))
        m = jnp.mean(x, axis=1, keepdims=True)                   # (Bb, 1, C)
        x = x - m
        rms.append(jnp.dot(m[:, 0, :], wa('lin'),
                           preferred_element_type=F32) + br('lin_b'))  # (Bb, nf)

    xo_ref[...] = x.astype(xo_ref.dtype)
    mean_ref[...] = jnp.stack(rms, axis=1).astype(mean_ref.dtype)
    trend_ref[...] = trend_acc.astype(trend_ref.dtype)
    season_ref[...] = season_acc.astype(season_ref.dtype)


# ---------------------------------------------------------------------------
# Wrapper
# ---------------------------------------------------------------------------

def sinusoidal_pos_emb(t, dim):
    half = dim // 2
    freq = math.log(10000.0) / (half - 1)
    freqs = jnp.exp(jnp.arange(half, dtype=F32) * -freq)
    args = t.astype(F32)[:, None] * freqs[None, :]
    return jnp.concatenate([jnp.sin(args), jnp.cos(args)], axis=-1)


def _pick_bb(B):
    """Batch elements per grid step: big enough to amortize per-step overhead,
    but keep >= 2 grid steps so both v7x TensorCores get work.  (Bb > 1 assumes
    T is a multiple of 8 for clean row-flattening reshapes; the demo uses 1.)"""
    upper = min(8, max(B // 2, 1))
    for bb in range(upper, 0, -1):
        if B % bb == 0:
            return bb
    return 1


def decoder_forward(x, t, enc, params, *, n_head, label_emb=None, block_b=None):
    B, nc, C = x.shape
    Dk = enc.shape[2]
    n_layer = params['wA'].shape[0]
    hidden = params['wM'].shape[1]
    nf = params['wT2'].shape[2]
    sp = params['poly'].shape[1] - 3
    lay = _make_layout(C, Dk, nf, nc, hidden, sp)
    assert params['wA'].shape[2] == lay['KA']
    assert params['bR'].shape[2] == lay['KB']

    emb = sinusoidal_pos_emb(t, C)                               # (B, C)
    emb_self = emb + label_emb if label_emb is not None else emb
    emb2 = jnp.stack([emb_self, emb], axis=1)                    # (B, 2, C)

    Bb = block_b if block_b is not None else _pick_bb(B)
    weights = (params['wA'], params['wE'], params['wM'], params['bR'],
               params['wN'], params['wT1'], params['wT2'], params['bC'],
               params['poly'])

    def batched(shape):
        nd = len(shape)
        return pl.BlockSpec((Bb,) + tuple(shape[1:]),
                            lambda b, _n=nd: (b,) + (0,) * (_n - 1))

    def invariant(shape):
        nd = len(shape)
        return pl.BlockSpec(tuple(shape), lambda b, _n=nd: (0,) * _n)

    out_shape = (jax.ShapeDtypeStruct((B, nc, C), x.dtype),       # centered x
                 jax.ShapeDtypeStruct((B, n_layer, nf), x.dtype),  # means
                 jax.ShapeDtypeStruct((B, nc, nf), x.dtype),       # trend
                 jax.ShapeDtypeStruct((B, nc, C), x.dtype))        # season

    return pl.pallas_call(
        partial(_decoder_kernel, n_layer=n_layer, n_head=n_head, lay=lay),
        grid=(B // Bb,),
        in_specs=[batched(x.shape), batched(emb2.shape), batched(enc.shape)]
                 + [invariant(w.shape) for w in weights],
        out_specs=tuple(batched(s.shape) for s in out_shape),
        out_shape=out_shape,
        compiler_params=pltpu.CompilerParams(
            dimension_semantics=("parallel",),
            vmem_limit_bytes=32 * 1024 * 1024),
    )(x, emb2, enc, *weights)


# ---------------------------------------------------------------------------
# Deterministic synthetic parameters, already packed into kernel layouts
# ---------------------------------------------------------------------------

def init_params(key, n_channel, n_feat, n_embd, n_layer, condition_dim, n_head,
                mlp_hidden_times=4):
    C, nc, Dk, nf = n_embd, n_channel, condition_dim, n_feat
    hidden = mlp_hidden_times * C
    sp = 1 * min(32, nc // 2)
    lay = _make_layout(C, Dk, nf, nc, hidden, sp)

    # Shared basis constants: trend polynomial (nc,3) and Fourier basis (nc,sp).
    lin_space = jnp.arange(1, nc + 1, dtype=F32) / (nc + 1)
    tpoly = jnp.stack([lin_space ** float(p + 1) for p in range(3)], axis=0)
    p1, p2 = ((sp // 2, sp // 2) if sp % 2 == 0 else (sp // 2, sp // 2 + 1))
    fs = jnp.arange(0, nc, dtype=F32) / nc
    s1 = jnp.stack([jnp.cos(2 * np.pi * p * fs) for p in range(1, p1 + 1)], axis=0)
    s2 = jnp.stack([jnp.sin(2 * np.pi * p * fs) for p in range(1, p2 + 1)], axis=0)
    spoly = jnp.concatenate([s1, s2], axis=0)
    poly = jnp.concatenate([tpoly.T, spoly.T], axis=1)           # (nc, 3+sp)

    def dense(k, fi, fo):
        return jax.random.normal(k, (fi, fo), F32) * 0.02

    wA, wE, wM, bR, wN, wT1, wT2, bC = ([] for _ in range(8))
    for lk in jax.random.split(key, n_layer):
        ks = iter(jax.random.split(lk, 24))
        ln1 = dense(next(ks), C, 2 * C)          # AdaLN(self):  [scale | shift]
        ln11 = dense(next(ks), C, 2 * C)         # AdaLN(cross): [scale | shift]
        sa_q, sa_k, sa_v, sa_p = (dense(next(ks), C, C) for _ in range(4))
        ca_q, ca_p = dense(next(ks), C, C), dense(next(ks), C, C)
        ca_k, ca_v = dense(next(ks), Dk, C), dense(next(ks), Dk, C)
        mlp1, mlp2 = dense(next(ks), C, hidden), dense(next(ks), hidden, C)
        lin = dense(next(ks), C, nf)
        pconv = jax.random.normal(next(ks), (2 * nc, nc, 1), F32) * 0.02
        t1 = jax.random.normal(next(ks), (3, nc, 3), F32) * 0.02   # (out,in,K)
        t2 = jax.random.normal(next(ks), (nf, C, 3), F32) * 0.02
        sconv = jax.random.normal(next(ks), (sp, nc, 1), F32) * 0.02

        wA.append(jnp.concatenate(
            [ln1, ln11, sa_q, sa_k, sa_v, sa_p, ca_q, ca_p, mlp1, lin], axis=1))
        wE.append(jnp.concatenate([ca_k, ca_v], axis=1))
        wM.append(mlp2)
        # Row-broadcast biases (random); LayerNorm(ln2) gamma=1 / beta=0.
        b_row = jax.random.normal(next(ks), (1, lay['KB']), F32) * 0.02
        g0, g1 = lay['B']['ln2_g']
        z0, z1 = lay['B']['ln2_b']
        b_row = b_row.at[:, g0:g1].set(1.0)
        b_row = b_row.at[:, z0:z1].set(0.0)
        bR.append(b_row)
        wN.append(jnp.concatenate([pconv[:, :, 0], sconv[:, :, 0]], axis=0))
        # Trend conv1 packed tap-major along lanes: [k=0 | k=1 | k=2], matching
        # the [-1, 0, +1]-shifted row blocks built inside the kernel.
        wT1.append(jnp.concatenate([t1[:, :, 0], t1[:, :, 1], t1[:, :, 2]],
                                   axis=1))
        # Trend conv2 packed tap-major along rows: [w(:,:,0)^T; w(:,:,1)^T; w(:,:,2)^T].
        wT2.append(jnp.concatenate([t2[:, :, 0].T, t2[:, :, 1].T, t2[:, :, 2].T],
                                   axis=0))
        bC.append(jax.random.normal(next(ks), (2 * nc + 3 + sp, 1), F32) * 0.02)

    stk = lambda xs: jnp.stack(xs, axis=0)
    return {'wA': stk(wA), 'wE': stk(wE), 'wM': stk(wM), 'bR': stk(bR),
            'wN': stk(wN), 'wT1': stk(wT1), 'wT2': stk(wT2), 'bC': stk(bC),
            'poly': poly}


# ---------------------------------------------------------------------------
# Main
# ---------------------------------------------------------------------------

if __name__ == "__main__":
    n_channel, n_feat = 8, 8
    n_embd, n_head, n_layer = 32, 4, 2
    condition_dim = 16
    B, T_E = 2, 4

    key = jax.random.PRNGKey(0)
    kx, kt, ke, kp = jax.random.split(key, 4)
    x = jax.random.normal(kx, (B, n_channel, n_embd), F32)   # (B, T=n_channel, C)
    t = jax.random.randint(kt, (B,), 0, 100)                 # diffusion timesteps
    enc = jax.random.normal(ke, (B, T_E, condition_dim), F32)
    params = init_params(kp, n_channel, n_feat, n_embd, n_layer, condition_dim,
                         n_head)

    fwd = jax.jit(partial(decoder_forward, n_head=n_head))
    out_x, out_mean, out_trend, out_season = fwd(x, t, enc, params)
    jax.block_until_ready((out_x, out_mean, out_trend, out_season))

    assert out_x.shape == (B, n_channel, n_embd)
    assert out_mean.shape == (B, n_layer, n_feat)
    assert out_trend.shape == (B, n_channel, n_feat)
    assert out_season.shape == (B, n_channel, n_embd)
    assert bool(jnp.all(jnp.isfinite(out_x)))
    print("KERNEL_OK")
</pallas_src>

<mosaic_0001>
module attributes {stable_mosaic.version = 11 : i64} {
  func.func @_decoder_kernel(%arg0: i32, %arg1: memref<1x8x32xf32, #tpu.memory_space<vmem>>, %arg2: memref<1x2x32xf32, #tpu.memory_space<vmem>>, %arg3: memref<1x4x16xf32, #tpu.memory_space<vmem>>, %arg4: memref<2x32x456xf32, #tpu.memory_space<vmem>>, %arg5: memref<2x16x64xf32, #tpu.memory_space<vmem>>, %arg6: memref<2x128x32xf32, #tpu.memory_space<vmem>>, %arg7: memref<2x1x624xf32, #tpu.memory_space<vmem>>, %arg8: memref<2x20x8xf32, #tpu.memory_space<vmem>>, %arg9: memref<2x3x24xf32, #tpu.memory_space<vmem>>, %arg10: memref<2x96x8xf32, #tpu.memory_space<vmem>>, %arg11: memref<2x23x1xf32, #tpu.memory_space<vmem>>, %arg12: memref<8x7xf32, #tpu.memory_space<vmem>>, %arg13: memref<1x8x32xf32, #tpu.memory_space<vmem>>, %arg14: memref<1x2x8xf32, #tpu.memory_space<vmem>>, %arg15: memref<1x8x8xf32, #tpu.memory_space<vmem>>, %arg16: memref<1x8x32xf32, #tpu.memory_space<vmem>>) attributes {dimension_semantics = [#tpu.dimension_semantics<parallel>], iteration_bounds = array<i64: 2>, scalar_prefetch = 0 : i64, scratch_operands = 0 : i64, tpu.core_type = #tpu.core_type<tc>, window_params = [{transform_indices = @transform_0, window_bounds = array<i64: 1, 8, 32>}, {transform_indices = @transform_1, window_bounds = array<i64: 1, 2, 32>}, {transform_indices = @transform_2, window_bounds = array<i64: 1, 4, 16>}, {pipeline_mode = #tpu.pipeline_mode<synchronous>, transform_indices = @transform_3, window_bounds = array<i64: 2, 32, 456>}, {pipeline_mode = #tpu.pipeline_mode<synchronous>, transform_indices = @transform_4, window_bounds = array<i64: 2, 16, 64>}, {pipeline_mode = #tpu.pipeline_mode<synchronous>, transform_indices = @transform_5, window_bounds = array<i64: 2, 128, 32>}, {pipeline_mode = #tpu.pipeline_mode<synchronous>, transform_indices = @transform_6, window_bounds = array<i64: 2, 1, 624>}, {pipeline_mode = #tpu.pipeline_mode<synchronous>, transform_indices = @transform_7, window_bounds = array<i64: 2, 20, 8>}, {pipeline_mode = #tpu.pipeline_mode<synchronous>, transform_indices = @transform_8, window_bounds = array<i64: 2, 3, 24>}, {pipeline_mode = #tpu.pipeline_mode<synchronous>, transform_indices = @transform_9, window_bounds = array<i64: 2, 96, 8>}, {pipeline_mode = #tpu.pipeline_mode<synchronous>, transform_indices = @transform_10, window_bounds = array<i64: 2, 23, 1>}, {pipeline_mode = #tpu.pipeline_mode<synchronous>, transform_indices = @transform_11, window_bounds = array<i64: 8, 7>}, {transform_indices = @transform_12, window_bounds = array<i64: 1, 8, 32>}, {transform_indices = @transform_13, window_bounds = array<i64: 1, 2, 8>}, {transform_indices = @transform_14, window_bounds = array<i64: 1, 8, 8>}, {transform_indices = @transform_15, window_bounds = array<i64: 1, 8, 32>}]} {
    %c0 = arith.constant 0 : index
    %c0_0 = arith.constant 0 : index
    %c0_1 = arith.constant 0 : index
    %0 = vector.load %arg1[%c0, %c0_0, %c0_1] : memref<1x8x32xf32, #tpu.memory_space<vmem>>, vector<1x8x32xf32>
    %c0_2 = arith.constant 0 : index
    %c0_3 = arith.constant 0 : index
    %c0_4 = arith.constant 0 : index
    %1 = vector.load %arg3[%c0_2, %c0_3, %c0_4] : memref<1x4x16xf32, #tpu.memory_space<vmem>>, vector<1x4x16xf32>
    %2 = vector.shape_cast %1 : vector<1x4x16xf32> to vector<4x16xf32>
    %c0_5 = arith.constant 0 : index
    %c0_6 = arith.constant 0 : index
    %c0_7 = arith.constant 0 : index
    %3 = vector.load %arg2[%c0_5, %c0_6, %c0_7] : memref<1x2x32xf32, #tpu.memory_space<vmem>>, vector<1x2x32xf32>
    %4 = vector.extract_strided_slice %3 {offsets = [0, 0, 0], sizes = [1, 1, 32], strides = [1, 1, 1]} : vector<1x2x32xf32> to vector<1x1x32xf32>
    %5 = vector.shape_cast %4 : vector<1x1x32xf32> to vector<1x32xf32>
    %cst = arith.constant 0.000000e+00 : f32
    %6 = vector.broadcast %cst : f32 to vector<1x32xf32>
    %7 = arith.subf %6, %5 : vector<1x32xf32>
    %8 = math.exp %7 : vector<1x32xf32>
    %cst_8 = arith.constant 1.000000e+00 : f32
    %9 = vector.broadcast %cst_8 : f32 to vector<1x32xf32>
    %10 = arith.addf %9, %8 : vector<1x32xf32>
    %cst_9 = arith.constant 1.000000e+00 : f32
    %11 = vector.broadcast %cst_9 : f32 to vector<1x32xf32>
    %12 = arith.divf %11, %10 : vector<1x32xf32>
    %13 = arith.mulf %5, %12 : vector<1x32xf32>
    %14 = vector.extract_strided_slice %3 {offsets = [0, 1, 0], sizes = [1, 1, 32], strides = [1, 1, 1]} : vector<1x2x32xf32> to vector<1x1x32xf32>
    %15 = vector.shape_cast %14 : vector<1x1x32xf32> to vector<1x32xf32>
    %cst_10 = arith.constant 0.000000e+00 : f32
    %16 = vector.broadcast %cst_10 : f32 to vector<1x32xf32>
    %17 = arith.subf %16, %15 : vector<1x32xf32>
    %18 = math.exp %17 : vector<1x32xf32>
    %cst_11 = arith.constant 1.000000e+00 : f32
    %19 = vector.broadcast %cst_11 : f32 to vector<1x32xf32>
    %20 = arith.addf %19, %18 : vector<1x32xf32>
    %cst_12 = arith.constant 1.000000e+00 : f32
    %21 = vector.broadcast %cst_12 : f32 to vector<1x32xf32>
    %22 = arith.divf %21, %20 : vector<1x32xf32>
    %23 = arith.mulf %15, %22 : vector<1x32xf32>
    %c0_13 = arith.constant 0 : index
    %c0_14 = arith.constant 0 : index
    %24 = vector.load %arg12[%c0_13, %c0_14] : memref<8x7xf32, #tpu.memory_space<vmem>>, vector<8x3xf32>
    %c0_15 = arith.constant 0 : index
    %c3 = arith.constant 3 : index
    %25 = vector.load %arg12[%c0_15, %c3] : memref<8x7xf32, #tpu.memory_space<vmem>>, vector<8x4xf32>
    %26 = tpu.iota {dimensions = array<i32: 0>} : vector<3x3xi32>
    %27 = tpu.iota {dimensions = array<i32: 1>} : vector<3x3xi32>
    %c1_i32 = arith.constant 1 : i32
    %28 = vector.broadcast %c1_i32 : i32 to vector<3x3xi32>
    %29 = arith.subi %26, %28 : vector<3x3xi32>
    %30 = arith.cmpi eq, %27, %29 : vector<3x3xi32>
    %31 = arith.extui %30 : vector<3x3xi1> to vector<3x3xi32>
    %32 = arith.sitofp %31 : vector<3x3xi32> to vector<3x3xf32>
    %c1_i32_16 = arith.constant 1 : i32
    %33 = vector.broadcast %c1_i32_16 : i32 to vector<3x3xi32>
    %34 = arith.addi %26, %33 : vector<3x3xi32>
    %35 = arith.cmpi eq, %27, %34 : vector<3x3xi32>
    %36 = arith.extui %35 : vector<3x3xi1> to vector<3x3xi32>
    %37 = arith.sitofp %36 : vector<3x3xi32> to vector<3x3xf32>
    %cst_17 = arith.constant 0.000000e+00 : f32
    %38 = vector.broadcast %cst_17 : f32 to vector<8x1xf32>
    %cst_18 = arith.constant 0.000000e+00 : f32
    %39 = vector.broadcast %cst_18 : f32 to vector<1x8x8xf32>
    %cst_19 = arith.constant 0.000000e+00 : f32
    %40 = vector.broadcast %cst_19 : f32 to vector<1x8x32xf32>
    %c0_20 = arith.constant 0 : index
    %c0_21 = arith.constant 0 : index
    %c0_22 = arith.constant 0 : index
    %41 = vector.load %arg4[%c0_20, %c0_21, %c0_22] : memref<2x32x456xf32, #tpu.memory_space<vmem>>, vector<1x32x64xf32>
    %42 = vector.shape_cast %41 : vector<1x32x64xf32> to vector<32x64xf32>
    %cst_23 = arith.constant dense<0.000000e+00> : vector<1x64xf32>
    %43 = tpu.matmul %13, %42, %cst_23 {dimension_numbers = #tpu.dot_dimension_numbers<[1], [0], [0], [1], [0, 0, 1, 1], [], []>} : vector<1x32xf32>, vector<32x64xf32>, vector<1x64xf32> -> vector<1x64xf32>
    %c0_24 = arith.constant 0 : index
    %c0_25 = arith.constant 0 : index
    %c0_26 = arith.constant 0 : index
    %44 = vector.load %arg7[%c0_24, %c0_25, %c0_26] : memref<2x1x624xf32, #tpu.memory_space<vmem>>, vector<1x1x64xf32>
    %45 = vector.shape_cast %44 : vector<1x1x64xf32> to vector<1x64xf32>
    %46 = arith.addf %43, %45 : vector<1x64xf32>
    %cst_27 = arith.constant dense<0.000000e+00> : vector<1x8xf32>
    %47 = vector.multi_reduction <add>, %0, %cst_27 [2] : vector<1x8x32xf32> to vector<1x8xf32>
    %48 = vector.shape_cast %47 : vector<1x8xf32> to vector<1x8x1xf32>
    %cst_28 = arith.constant 3.200000e+01 : f32
    %49 = vector.broadcast %cst_28 : f32 to vector<1x8x1xf32>
    %50 = arith.divf %48, %49 : vector<1x8x1xf32>
    %51 = vector.broadcast %50 : vector<1x8x1xf32> to vector<1x8x32xf32>
    %52 = arith.subf %0, %51 : vector<1x8x32xf32>
    %53 = arith.mulf %52, %52 : vector<1x8x32xf32>
    %cst_29 = arith.constant dense<0.000000e+00> : vector<1x8xf32>
    %54 = vector.multi_reduction <add>, %53, %cst_29 [2] : vector<1x8x32xf32> to vector<1x8xf32>
    %55 = vector.shape_cast %54 : vector<1x8xf32> to vector<1x8x1xf32>
    %cst_30 = arith.constant 3.200000e+01 : f32
    %56 = vector.broadcast %cst_30 : f32 to vector<1x8x1xf32>
    %57 = arith.divf %55, %56 : vector<1x8x1xf32>
    %58 = vector.broadcast %50 : vector<1x8x1xf32> to vector<1x8x32xf32>
    %59 = arith.subf %0, %58 : vector<1x8x32xf32>
    %cst_31 = arith.constant 9.99999974E-6 : f32
    %60 = vector.broadcast %cst_31 : f32 to vector<1x8x1xf32>
    %61 = arith.addf %57, %60 : vector<1x8x1xf32>
    %62 = math.rsqrt %61 : vector<1x8x1xf32>
    %63 = vector.broadcast %62 : vector<1x8x1xf32> to vector<1x8x32xf32>
    %64 = arith.mulf %59, %63 : vector<1x8x32xf32>
    %65 = vector.extract_strided_slice %46 {offsets = [0, 0], sizes = [1, 32], strides = [1, 1]} : vector<1x64xf32> to vector<1x32xf32>
    %66 = vector.shape_cast %65 : vector<1x32xf32> to vector<1x1x32xf32>
    %cst_32 = arith.constant 1.000000e+00 : f32
    %67 = vector.broadcast %cst_32 : f32 to vector<1x1x32xf32>
    %68 = arith.addf %67, %66 : vector<1x1x32xf32>
    %69 = vector.broadcast %68 : vector<1x1x32xf32> to vector<1x8x32xf32>
    %70 = arith.mulf %64, %69 : vector<1x8x32xf32>
    %71 = vector.extract_strided_slice %46 {offsets = [0, 32], sizes = [1, 32], strides = [1, 1]} : vector<1x64xf32> to vector<1x32xf32>
    %72 = vector.shape_cast %71 : vector<1x32xf32> to vector<1x1x32xf32>
    %73 = vector.broadcast %72 : vector<1x1x32xf32> to vector<1x8x32xf32>
    %74 = arith.addf %70, %73 : vector<1x8x32xf32>
    %c0_33 = arith.constant 0 : index
    %c0_34 = arith.constant 0 : index
    %c128 = arith.constant 128 : index
    %75 = vector.load %arg4[%c0_33, %c0_34, %c128] : memref<2x32x456xf32, #tpu.memory_space<vmem>>, vector<1x32x96xf32>
    %76 = vector.shape_cast %75 : vector<1x32x96xf32> to vector<32x96xf32>
    %c0_35 = arith.constant 0 : index
    %c0_36 = arith.constant 0 : index
    %c128_37 = arith.constant 128 : index
    %77 = vector.load %arg7[%c0_35, %c0_36, %c128_37] : memref<2x1x624xf32, #tpu.memory_space<vmem>>, vector<1x1x96xf32>
    %78 = vector.shape_cast %77 : vector<1x1x96xf32> to vector<1x96xf32>
    %79 = vector.shape_cast %74 : vector<1x8x32xf32> to vector<8x32xf32>
    %cst_38 = arith.constant dense<0.000000e+00> : vector<8x96xf32>
    %80 = tpu.matmul %79, %76, %cst_38 {dimension_numbers = #tpu.dot_dimension_numbers<[1], [0], [0], [1], [0, 0, 1, 1], [], []>} : vector<8x32xf32>, vector<32x96xf32>, vector<8x96xf32> -> vector<8x96xf32>
    %81 = vector.broadcast %78 : vector<1x96xf32> to vector<8x96xf32>
    %82 = arith.addf %80, %81 : vector<8x96xf32>
    %83 = vector.shape_cast %82 : vector<8x96xf32> to vector<1x8x96xf32>
    %84 = vector.extract_strided_slice %83 {offsets = [0, 0, 0], sizes = [1, 8, 32], strides = [1, 1, 1]} : vector<1x8x96xf32> to vector<1x8x32xf32>
    %85 = vector.extract_strided_slice %83 {offsets = [0, 0, 32], sizes = [1, 8, 32], strides = [1, 1, 1]} : vector<1x8x96xf32> to vector<1x8x32xf32>
    %86 = vector.extract_strided_slice %83 {offsets = [0, 0, 64], sizes = [1, 8, 32], strides = [1, 1, 1]} : vector<1x8x96xf32> to vector<1x8x32xf32>
    %87 = vector.extract_strided_slice %84 {offsets = [0, 0, 0], sizes = [1, 8, 8], strides = [1, 1, 1]} : vector<1x8x32xf32> to vector<1x8x8xf32>
    %88 = vector.extract_strided_slice %85 {offsets = [0, 0, 0], sizes = [1, 8, 8], strides = [1, 1, 1]} : vector<1x8x32xf32> to vector<1x8x8xf32>
    %89 = vector.extract_strided_slice %86 {offsets = [0, 0, 0], sizes = [1, 8, 8], strides = [1, 1, 1]} : vector<1x8x32xf32> to vector<1x8x8xf32>
    "tpu.trace_start"() <{level = 10 : i32, message = "bqd,bkd->bqk"}> : () -> ()
    %cst_39 = arith.constant dense<0.000000e+00> : vector<1x8x8xf32>
    %90 = tpu.matmul %87, %88, %cst_39 {dimension_numbers = #tpu.dot_dimension_numbers<[2], [2], [1], [1], [0, 0, 0, 1, 1, 1], [0], [0]>} : vector<1x8x8xf32>, vector<1x8x8xf32>, vector<1x8x8xf32> -> vector<1x8x8xf32>
    "tpu.trace_stop"() : () -> ()
    %cst_40 = arith.constant 0.353553385 : f32
    %91 = vector.broadcast %cst_40 : f32 to vector<1x8x8xf32>
    %92 = arith.mulf %90, %91 : vector<1x8x8xf32>
    %cst_41 = arith.constant dense<0xFF800000> : vector<1x8xf32>
    %93 = vector.multi_reduction <maximumf>, %92, %cst_41 [2] : vector<1x8x8xf32> to vector<1x8xf32>
    %94 = vector.shape_cast %93 : vector<1x8xf32> to vector<1x8x1xf32>
    %95 = vector.broadcast %94 : vector<1x8x1xf32> to vector<1x8x8xf32>
    %96 = arith.subf %92, %95 : vector<1x8x8xf32>
    %97 = math.exp %96 : vector<1x8x8xf32>
    %cst_42 = arith.constant dense<0.000000e+00> : vector<1x8xf32>
    %98 = vector.multi_reduction <add>, %97, %cst_42 [2] : vector<1x8x8xf32> to vector<1x8xf32>
    %99 = vector.shape_cast %98 : vector<1x8xf32> to vector<1x8x1xf32>
    %100 = tpu.reciprocal %99 {approx = true} : vector<1x8x1xf32> -> vector<1x8x1xf32>
    %101 = vector.broadcast %100 : vector<1x8x1xf32> to vector<1x8x8xf32>
    %102 = arith.mulf %97, %101 : vector<1x8x8xf32>
    "tpu.trace_start"() <{level = 10 : i32, message = "bqk,bkd->bqd"}> : () -> ()
    %cst_43 = arith.constant dense<0.000000e+00> : vector<1x8x8xf32>
    %103 = tpu.matmul %102, %89, %cst_43 {dimension_numbers = #tpu.dot_dimension_numbers<[2], [1], [1], [2], [0, 0, 0, 1, 1, 2], [0], [0]>} : vector<1x8x8xf32>, vector<1x8x8xf32>, vector<1x8x8xf32> -> vector<1x8x8xf32>
    "tpu.trace_stop"() : () -> ()
    %104 = vector.extract_strided_slice %84 {offsets = [0, 0, 8], sizes = [1, 8, 8], strides = [1, 1, 1]} : vector<1x8x32xf32> to vector<1x8x8xf32>
    %105 = vector.extract_strided_slice %85 {offsets = [0, 0, 8], sizes = [1, 8, 8], strides = [1, 1, 1]} : vector<1x8x32xf32> to vector<1x8x8xf32>
    %106 = vector.extract_strided_slice %86 {offsets = [0, 0, 8], sizes = [1, 8, 8], strides = [1, 1, 1]} : vector<1x8x32xf32> to vector<1x8x8xf32>
    "tpu.trace_start"() <{level = 10 : i32, message = "bqd,bkd->bqk"}> : () -> ()
    %cst_44 = arith.constant dense<0.000000e+00> : vector<1x8x8xf32>
    %107 = tpu.matmul %104, %105, %cst_44 {dimension_numbers = #tpu.dot_dimension_numbers<[2], [2], [1], [1], [0, 0, 0, 1, 1, 1], [0], [0]>} : vector<1x8x8xf32>, vector<1x8x8xf32>, vector<1x8x8xf32> -> vector<1x8x8xf32>
    "tpu.trace_stop"() : () -> ()
    %cst_45 = arith.constant 0.353553385 : f32
    %108 = vector.broadcast %cst_45 : f32 to vector<1x8x8xf32>
    %109 = arith.mulf %107, %108 : vector<1x8x8xf32>
    %cst_46 = arith.constant dense<0xFF800000> : vector<1x8xf32>
    %110 = vector.multi_reduction <maximumf>, %109, %cst_46 [2] : vector<1x8x8xf32> to vector<1x8xf32>
    %111 = vector.shape_cast %110 : vector<1x8xf32> to vector<1x8x1xf32>
    %112 = vector.broadcast %111 : vector<1x8x1xf32> to vector<1x8x8xf32>
    %113 = arith.subf %109, %112 : vector<1x8x8xf32>
    %114 = math.exp %113 : vector<1x8x8xf32>
    %cst_47 = arith.constant dense<0.000000e+00> : vector<1x8xf32>
    %115 = vector.multi_reduction <add>, %114, %cst_47 [2] : vector<1x8x8xf32> to vector<1x8xf32>
    %116 = vector.shape_cast %115 : vector<1x8xf32> to vector<1x8x1xf32>
    %117 = tpu.reciprocal %116 {approx = true} : vector<1x8x1xf32> -> vector<1x8x1xf32>
    %118 = vector.broadcast %117 : vector<1x8x1xf32> to vector<1x8x8xf32>
    %119 = arith.mulf %114, %118 : vector<1x8x8xf32>
    "tpu.trace_start"() <{level = 10 : i32, message = "bqk,bkd->bqd"}> : () -> ()
    %cst_48 = arith.constant dense<0.000000e+00> : vector<1x8x8xf32>
    %120 = tpu.matmul %119, %106, %cst_48 {dimension_numbers = #tpu.dot_dimension_numbers<[2], [1], [1], [2], [0, 0, 0, 1, 1, 2], [0], [0]>} : vector<1x8x8xf32>, vector<1x8x8xf32>, vector<1x8x8xf32> -> vector<1x8x8xf32>
    "tpu.trace_stop"() : () -> ()
    %121 = vector.extract_strided_slice %84 {offsets = [0, 0, 16], sizes = [1, 8, 8], strides = [1, 1, 1]} : vector<1x8x32xf32> to vector<1x8x8xf32>
    %122 = vector.extract_strided_slice %85 {offsets = [0, 0, 16], sizes = [1, 8, 8], strides = [1, 1, 1]} : vector<1x8x32xf32> to vector<1x8x8xf32>
    %123 = vector.extract_strided_slice %86 {offsets = [0, 0, 16], sizes = [1, 8, 8], strides = [1, 1, 1]} : vector<1x8x32xf32> to vector<1x8x8xf32>
    "tpu.trace_start"() <{level = 10 : i32, message = "bqd,bkd->bqk"}> : () -> ()
    %cst_49 = arith.constant dense<0.000000e+00> : vector<1x8x8xf32>
    %124 = tpu.matmul %121, %122, %cst_49 {dimension_numbers = #tpu.dot_dimension_numbers<[2], [2], [1], [1], [0, 0, 0, 1, 1, 1], [0], [0]>} : vector<1x8x8xf32>, vector<1x8x8xf32>, vector<1x8x8xf32> -> vector<1x8x8xf32>
    "tpu.trace_stop"() : () -> ()
    %cst_50 = arith.constant 0.353553385 : f32
    %125 = vector.broadcast %cst_50 : f32 to vector<1x8x8xf32>
    %126 = arith.mulf %124, %125 : vector<1x8x8xf32>
    %cst_51 = arith.constant dense<0xFF800000> : vector<1x8xf32>
    %127 = vector.multi_reduction <maximumf>, %126, %cst_51 [2] : vector<1x8x8xf32> to vector<1x8xf32>
    %128 = vector.shape_cast %127 : vector<1x8xf32> to vector<1x8x1xf32>
    %129 = vector.broadcast %128 : vector<1x8x1xf32> to vector<1x8x8xf32>
    %130 = arith.subf %126, %129 : vector<1x8x8xf32>
    %131 = math.exp %130 : vector<1x8x8xf32>
    %cst_52 = arith.constant dense<0.000000e+00> : vector<1x8xf32>
    %132 = vector.multi_reduction <add>, %131, %cst_52 [2] : vector<1x8x8xf32> to vector<1x8xf32>
    %133 = vector.shape_cast %132 : vector<1x8xf32> to vector<1x8x1xf32>
    %134 = tpu.reciprocal %133 {approx = true} : vector<1x8x1xf32> -> vector<1x8x1xf32>
    %135 = vector.broadcast %134 : vector<1x8x1xf32> to vector<1x8x8xf32>
    %136 = arith.mulf %131, %135 : vector<1x8x8xf32>
    "tpu.trace_start"() <{level = 10 : i32, message = "bqk,bkd->bqd"}> : () -> ()
    %cst_53 = arith.constant dense<0.000000e+00> : vector<1x8x8xf32>
    %137 = tpu.matmul %136, %123, %cst_53 {dimension_numbers = #tpu.dot_dimension_numbers<[2], [1], [1], [2], [0, 0, 0, 1, 1, 2], [0], [0]>} : vector<1x8x8xf32>, vector<1x8x8xf32>, vector<1x8x8xf32> -> vector<1x8x8xf32>
    "tpu.trace_stop"() : () -> ()
    %138 = vector.extract_strided_slice %84 {offsets = [0, 0, 24], sizes = [1, 8, 8], strides = [1, 1, 1]} : vector<1x8x32xf32> to vector<1x8x8xf32>
    %139 = vector.extract_strided_slice %85 {offsets = [0, 0, 24], sizes = [1, 8, 8], strides = [1, 1, 1]} : vector<1x8x32xf32> to vector<1x8x8xf32>
    %140 = vector.extract_strided_slice %86 {offsets = [0, 0, 24], sizes = [1, 8, 8], strides = [1, 1, 1]} : vector<1x8x32xf32> to vector<1x8x8xf32>
    "tpu.trace_start"() <{level = 10 : i32, message = "bqd,bkd->bqk"}> : () -> ()
    %cst_54 = arith.constant dense<0.000000e+00> : vector<1x8x8xf32>
    %141 = tpu.matmul %138, %139, %cst_54 {dimension_numbers = #tpu.dot_dimension_numbers<[2], [2], [1], [1], [0, 0, 0, 1, 1, 1], [0], [0]>} : vector<1x8x8xf32>, vector<1x8x8xf32>, vector<1x8x8xf32> -> vector<1x8x8xf32>
    "tpu.trace_stop"() : () -> ()
    %cst_55 = arith.constant 0.353553385 : f32
    %142 = vector.broadcast %cst_55 : f32 to vector<1x8x8xf32>
    %143 = arith.mulf %141, %142 : vector<1x8x8xf32>
    %cst_56 = arith.constant dense<0xFF800000> : vector<1x8xf32>
    %144 = vector.multi_reduction <maximumf>, %143, %cst_56 [2] : vector<1x8x8xf32> to vector<1x8xf32>
    %145 = vector.shape_cast %144 : vector<1x8xf32> to vector<1x8x1xf32>
    %146 = vector.broadcast %145 : vector<1x8x1xf32> to vector<1x8x8xf32>
    %147 = arith.subf %143, %146 : vector<1x8x8xf32>
    %148 = math.exp %147 : vector<1x8x8xf32>
    %cst_57 = arith.constant dense<0.000000e+00> : vector<1x8xf32>
    %149 = vector.multi_reduction <add>, %148, %cst_57 [2] : vector<1x8x8xf32> to vector<1x8xf32>
    %150 = vector.shape_cast %149 : vector<1x8xf32> to vector<1x8x1xf32>
    %151 = tpu.reciprocal %150 {approx = true} : vector<1x8x1xf32> -> vector<1x8x1xf32>
    %152 = vector.broadcast %151 : vector<1x8x1xf32> to vector<1x8x8xf32>
    %153 = arith.mulf %148, %152 : vector<1x8x8xf32>
    "tpu.trace_start"() <{level = 10 : i32, message = "bqk,bkd->bqd"}> : () -> ()
    %cst_58 = arith.constant dense<0.000000e+00> : vector<1x8x8xf32>
    %154 = tpu.matmul %153, %140, %cst_58 {dimension_numbers = #tpu.dot_dimension_numbers<[2], [1], [1], [2], [0, 0, 0, 1, 1, 2], [0], [0]>} : vector<1x8x8xf32>, vector<1x8x8xf32>, vector<1x8x8xf32> -> vector<1x8x8xf32>
    "tpu.trace_stop"() : () -> ()
    %155 = tpu.concatenate %103, %120, %137, %154 in 2 : vector<1x8x8xf32>, vector<1x8x8xf32>, vector<1x8x8xf32>, vector<1x8x8xf32> -> vector<1x8x32xf32>
    %c0_59 = arith.constant 0 : index
    %c0_60 = arith.constant 0 : index
    %c224 = arith.constant 224 : index
    %156 = vector.load %arg4[%c0_59, %c0_60, %c224] : memref<2x32x456xf32, #tpu.memory_space<vmem>>, vector<1x32x32xf32>
    %157 = vector.shape_cast %156 : vector<1x32x32xf32> to vector<32x32xf32>
    %c0_61 = arith.constant 0 : index
    %c0_62 = arith.constant 0 : index
    %c224_63 = arith.constant 224 : index
    %158 = vector.load %arg7[%c0_61, %c0_62, %c224_63] : memref<2x1x624xf32, #tpu.memory_space<vmem>>, vector<1x1x32xf32>
    %159 = vector.shape_cast %158 : vector<1x1x32xf32> to vector<1x32xf32>
    %160 = vector.shape_cast %155 : vector<1x8x32xf32> to vector<8x32xf32>
    %cst_64 = arith.constant dense<0.000000e+00> : vector<8x32xf32>
    %161 = tpu.matmul %160, %157, %cst_64 {dimension_numbers = #tpu.dot_dimension_numbers<[1], [0], [0], [1], [0, 0, 1, 1], [], []>} : vector<8x32xf32>, vector<32x32xf32>, vector<8x32xf32> -> vector<8x32xf32>
    %162 = vector.broadcast %159 : vector<1x32xf32> to vector<8x32xf32>
    %163 = arith.addf %161, %162 : vector<8x32xf32>
    %164 = vector.shape_cast %163 : vector<8x32xf32> to vector<1x8x32xf32>
    %165 = arith.addf %0, %164 : vector<1x8x32xf32>
    %c0_65 = arith.constant 0 : index
    %c0_66 = arith.constant 0 : index
    %c64 = arith.constant 64 : index
    %166 = vector.load %arg4[%c0_65, %c0_66, %c64] : memref<2x32x456xf32, #tpu.memory_space<vmem>>, vector<1x32x64xf32>
    %167 = vector.shape_cast %166 : vector<1x32x64xf32> to vector<32x64xf32>
    %cst_67 = arith.constant dense<0.000000e+00> : vector<1x64xf32>
    %168 = tpu.matmul %23, %167, %cst_67 {dimension_numbers = #tpu.dot_dimension_numbers<[1], [0], [0], [1], [0, 0, 1, 1], [], []>} : vector<1x32xf32>, vector<32x64xf32>, vector<1x64xf32> -> vector<1x64xf32>
    %c0_68 = arith.constant 0 : index
    %c0_69 = arith.constant 0 : index
    %c64_70 = arith.constant 64 : index
    %169 = vector.load %arg7[%c0_68, %c0_69, %c64_70] : memref<2x1x624xf32, #tpu.memory_space<vmem>>, vector<1x1x64xf32>
    %170 = vector.shape_cast %169 : vector<1x1x64xf32> to vector<1x64xf32>
    %171 = arith.addf %168, %170 : vector<1x64xf32>
    %cst_71 = arith.constant dense<0.000000e+00> : vector<1x8xf32>
    %172 = vector.multi_reduction <add>, %165, %cst_71 [2] : vector<1x8x32xf32> to vector<1x8xf32>
    %173 = vector.shape_cast %172 : vector<1x8xf32> to vector<1x8x1xf32>
    %cst_72 = arith.constant 3.200000e+01 : f32
    %174 = vector.broadcast %cst_72 : f32 to vector<1x8x1xf32>
    %175 = arith.divf %173, %174 : vector<1x8x1xf32>
    %176 = vector.broadcast %175 : vector<1x8x1xf32> to vector<1x8x32xf32>
    %177 = arith.subf %165, %176 : vector<1x8x32xf32>
    %178 = arith.mulf %177, %177 : vector<1x8x32xf32>
    %cst_73 = arith.constant dense<0.000000e+00> : vector<1x8xf32>
    %179 = vector.multi_reduction <add>, %178, %cst_73 [2] : vector<1x8x32xf32> to vector<1x8xf32>
    %180 = vector.shape_cast %179 : vector<1x8xf32> to vector<1x8x1xf32>
    %cst_74 = arith.constant 3.200000e+01 : f32
    %181 = vector.broadcast %cst_74 : f32 to vector<1x8x1xf32>
    %182 = arith.divf %180, %181 : vector<1x8x1xf32>
    %183 = vector.broadcast %175 : vector<1x8x1xf32> to vector<1x8x32xf32>
    %184 = arith.subf %165, %183 : vector<1x8x32xf32>
    %cst_75 = arith.constant 9.99999974E-6 : f32
    %185 = vector.broadcast %cst_75 : f32 to vector<1x8x1xf32>
    %186 = arith.addf %182, %185 : vector<1x8x1xf32>
    %187 = math.rsqrt %186 : vector<1x8x1xf32>
    %188 = vector.broadcast %187 : vector<1x8x1xf32> to vector<1x8x32xf32>
    %189 = arith.mulf %184, %188 : vector<1x8x32xf32>
    %190 = vector.extract_strided_slice %171 {offsets = [0, 0], sizes = [1, 32], strides = [1, 1]} : vector<1x64xf32> to vector<1x32xf32>
    %191 = vector.shape_cast %190 : vector<1x32xf32> to vector<1x1x32xf32>
    %cst_76 = arith.constant 1.000000e+00 : f32
    %192 = vector.broadcast %cst_76 : f32 to vector<1x1x32xf32>
    %193 = arith.addf %192, %191 : vector<1x1x32xf32>
    %194 = vector.broadcast %193 : vector<1x1x32xf32> to vector<1x8x32xf32>
    %195 = arith.mulf %189, %194 : vector<1x8x32xf32>
    %196 = vector.extract_strided_slice %171 {offsets = [0, 32], sizes = [1, 32], strides = [1, 1]} : vector<1x64xf32> to vector<1x32xf32>
    %197 = vector.shape_cast %196 : vector<1x32xf32> to vector<1x1x32xf32>
    %198 = vector.broadcast %197 : vector<1x1x32xf32> to vector<1x8x32xf32>
    %199 = arith.addf %195, %198 : vector<1x8x32xf32>
    %c0_77 = arith.constant 0 : index
    %c0_78 = arith.constant 0 : index
    %c256 = arith.constant 256 : index
    %200 = vector.load %arg4[%c0_77, %c0_78, %c256] : memref<2x32x456xf32, #tpu.memory_space<vmem>>, vector<1x32x32xf32>
    %201 = vector.shape_cast %200 : vector<1x32x32xf32> to vector<32x32xf32>
    %c0_79 = arith.constant 0 : index
    %c0_80 = arith.constant 0 : index
    %c256_81 = arith.constant 256 : index
    %202 = vector.load %arg7[%c0_79, %c0_80, %c256_81] : memref<2x1x624xf32, #tpu.memory_space<vmem>>, vector<1x1x32xf32>
    %203 = vector.shape_cast %202 : vector<1x1x32xf32> to vector<1x32xf32>
    %204 = vector.shape_cast %199 : vector<1x8x32xf32> to vector<8x32xf32>
    %cst_82 = arith.constant dense<0.000000e+00> : vector<8x32xf32>
    %205 = tpu.matmul %204, %201, %cst_82 {dimension_numbers = #tpu.dot_dimension_numbers<[1], [0], [0], [1], [0, 0, 1, 1], [], []>} : vector<8x32xf32>, vector<32x32xf32>, vector<8x32xf32> -> vector<8x32xf32>
    %206 = vector.broadcast %203 : vector<1x32xf32> to vector<8x32xf32>
    %207 = arith.addf %205, %206 : vector<8x32xf32>
    %208 = vector.shape_cast %207 : vector<8x32xf32> to vector<1x8x32xf32>
    %c0_83 = arith.constant 0 : index
    %c0_84 = arith.constant 0 : index
    %c0_85 = arith.constant 0 : index
    %209 = vector.load %arg5[%c0_83, %c0_84, %c0_85] : memref<2x16x64xf32, #tpu.memory_space<vmem>>, vector<1x16x64xf32>
    %210 = vector.shape_cast %209 : vector<1x16x64xf32> to vector<16x64xf32>
    %cst_86 = arith.constant dense<0.000000e+00> : vector<4x64xf32>
    %211 = tpu.matmul %2, %210, %cst_86 {dimension_numbers = #tpu.dot_dimension_numbers<[1], [0], [0], [1], [0, 0, 1, 1], [], []>} : vector<4x16xf32>, vector<16x64xf32>, vector<4x64xf32> -> vector<4x64xf32>
    %c0_87 = arith.constant 0 : index
    %c0_88 = arith.constant 0 : index
    %c288 = arith.constant 288 : index
    %212 = vector.load %arg7[%c0_87, %c0_88, %c288] : memref<2x1x624xf32, #tpu.memory_space<vmem>>, vector<1x1x64xf32>
    %213 = vector.shape_cast %212 : vector<1x1x64xf32> to vector<1x64xf32>
    %214 = vector.broadcast %213 : vector<1x64xf32> to vector<4x64xf32>
    %215 = arith.addf %211, %214 : vector<4x64xf32>
    %216 = vector.shape_cast %215 : vector<4x64xf32> to vector<1x4x64xf32>
    %217 = vector.extract_strided_slice %216 {offsets = [0, 0, 0], sizes = [1, 4, 32], strides = [1, 1, 1]} : vector<1x4x64xf32> to vector<1x4x32xf32>
    %218 = vector.extract_strided_slice %216 {offsets = [0, 0, 32], sizes = [1, 4, 32], strides = [1, 1, 1]} : vector<1x4x64xf32> to vector<1x4x32xf32>
    %219 = vector.extract_strided_slice %208 {offsets = [0, 0, 0], sizes = [1, 8, 8], strides = [1, 1, 1]} : vector<1x8x32xf32> to vector<1x8x8xf32>
    %220 = vector.extract_strided_slice %217 {offsets = [0, 0, 0], sizes = [1, 4, 8], strides = [1, 1, 1]} : vector<1x4x32xf32> to vector<1x4x8xf32>
    %221 = vector.extract_strided_slice %218 {offsets = [0, 0, 0], sizes = [1, 4, 8], strides = [1, 1, 1]} : vector<1x4x32xf32> to vector<1x4x8xf32>
    "tpu.trace_start"() <{level = 10 : i32, message = "bqd,bkd->bqk"}> : () -> ()
    %cst_89 = arith.constant dense<0.000000e+00> : vector<1x8x4xf32>
    %222 = tpu.matmul %219, %220, %cst_89 {dimension_numbers = #tpu.dot_dimension_numbers<[2], [2], [1], [1], [0, 0, 0, 1, 1, 1], [0], [0]>} : vector<1x8x8xf32>, vector<1x4x8xf32>, vector<1x8x4xf32> -> vector<1x8x4xf32>
    "tpu.trace_stop"() : () -> ()
    %cst_90 = arith.constant 0.353553385 : f32
    %223 = vector.broadcast %cst_90 : f32 to vector<1x8x4xf32>
    %224 = arith.mulf %222, %223 : vector<1x8x4xf32>
    %cst_91 = arith.constant dense<0xFF800000> : vector<1x8xf32>
    %225 = vector.multi_reduction <maximumf>, %224, %cst_91 [2] : vector<1x8x4xf32> to vector<1x8xf32>
    %226 = vector.shape_cast %225 : vector<1x8xf32> to vector<1x8x1xf32>
    %227 = vector.broadcast %226 : vector<1x8x1xf32> to vector<1x8x4xf32>
    %228 = arith.subf %224, %227 : vector<1x8x4xf32>
    %229 = math.exp %228 : vector<1x8x4xf32>
    %cst_92 = arith.constant dense<0.000000e+00> : vector<1x8xf32>
    %230 = vector.multi_reduction <add>, %229, %cst_92 [2] : vector<1x8x4xf32> to vector<1x8xf32>
    %231 = vector.shape_cast %230 : vector<1x8xf32> to vector<1x8x1xf32>
    %232 = tpu.reciprocal %231 {approx = true} : vector<1x8x1xf32> -> vector<1x8x1xf32>
    %233 = vector.broadcast %232 : vector<1x8x1xf32> to vector<1x8x4xf32>
    %234 = arith.mulf %229, %233 : vector<1x8x4xf32>
    "tpu.trace_start"() <{level = 10 : i32, message = "bqk,bkd->bqd"}> : () -> ()
    %cst_93 = arith.constant dense<0.000000e+00> : vector<1x8x8xf32>
    %235 = tpu.matmul %234, %221, %cst_93 {dimension_numbers = #tpu.dot_dimension_numbers<[2], [1], [1], [2], [0, 0, 0, 1, 1, 2], [0], [0]>} : vector<1x8x4xf32>, vector<1x4x8xf32>, vector<1x8x8xf32> -> vector<1x8x8xf32>
    "tpu.trace_stop"() : () -> ()
    %236 = vector.extract_strided_slice %208 {offsets = [0, 0, 8], sizes = [1, 8, 8], strides = [1, 1, 1]} : vector<1x8x32xf32> to vector<1x8x8xf32>
    %237 = vector.extract_strided_slice %217 {offsets = [0, 0, 8], sizes = [1, 4, 8], strides = [1, 1, 1]} : vector<1x4x32xf32> to vector<1x4x8xf32>
    %238 = vector.extract_strided_slice %218 {offsets = [0, 0, 8], sizes = [1, 4, 8], strides = [1, 1, 1]} : vector<1x4x32xf32> to vector<1x4x8xf32>
    "tpu.trace_start"() <{level = 10 : i32, message = "bqd,bkd->bqk"}> : () -> ()
    %cst_94 = arith.constant dense<0.000000e+00> : vector<1x8x4xf32>
    %239 = tpu.matmul %236, %237, %cst_94 {dimension_numbers = #tpu.dot_dimension_numbers<[2], [2], [1], [1], [0, 0, 0, 1, 1, 1], [0], [0]>} : vector<1x8x8xf32>, vector<1x4x8xf32>, vector<1x8x4xf32> -> vector<1x8x4xf32>
    "tpu.trace_stop"() : () -> ()
    %cst_95 = arith.constant 0.353553385 : f32
    %240 = vector.broadcast %cst_95 : f32 to vector<1x8x4xf32>
    %241 = arith.mulf %239, %240 : vector<1x8x4xf32>
    %cst_96 = arith.constant dense<0xFF800000> : vector<1x8xf32>
    %242 = vector.multi_reduction <maximumf>, %241, %cst_96 [2] : vector<1x8x4xf32> to vector<1x8xf32>
    %243 = vector.shape_cast %242 : vector<1x8xf32> to vector<1x8x1xf32>
    %244 = vector.broadcast %243 : vector<1x8x1xf32> to vector<1x8x4xf32>
    %245 = arith.subf %241, %244 : vector<1x8x4xf32>
    %246 = math.exp %245 : vector<1x8x4xf32>
    %cst_97 = arith.constant dense<0.000000e+00> : vector<1x8xf32>
    %247 = vector.multi_reduction <add>, %246, %cst_97 [2] : vector<1x8x4xf32> to vector<1x8xf32>
    %248 = vector.shape_cast %247 : vector<1x8xf32> to vector<1x8x1xf32>
    %249 = tpu.reciprocal %248 {approx = true} : vector<1x8x1xf32> -> vector<1x8x1xf32>
    %250 = vector.broadcast %249 : vector<1x8x1xf32> to vector<1x8x4xf32>
    %251 = arith.mulf %246, %250 : vector<1x8x4xf32>
    "tpu.trace_start"() <{level = 10 : i32, message = "bqk,bkd->bqd"}> : () -> ()
    %cst_98 = arith.constant dense<0.000000e+00> : vector<1x8x8xf32>
    %252 = tpu.matmul %251, %238, %cst_98 {dimension_numbers = #tpu.dot_dimension_numbers<[2], [1], [1], [2], [0, 0, 0, 1, 1, 2], [0], [0]>} : vector<1x8x4xf32>, vector<1x4x8xf32>, vector<1x8x8xf32> -> vector<1x8x8xf32>
    "tpu.trace_stop"() : () -> ()
    %253 = vector.extract_strided_slice %208 {offsets = [0, 0, 16], sizes = [1, 8, 8], strides = [1, 1, 1]} : vector<1x8x32xf32> to vector<1x8x8xf32>
    %254 = vector.extract_strided_slice %217 {offsets = [0, 0, 16], sizes = [1, 4, 8], strides = [1, 1, 1]} : vector<1x4x32xf32> to vector<1x4x8xf32>
    %255 = vector.extract_strided_slice %218 {offsets = [0, 0, 16], sizes = [1, 4, 8], strides = [1, 1, 1]} : vector<1x4x32xf32> to vector<1x4x8xf32>
    "tpu.trace_start"() <{level = 10 : i32, message = "bqd,bkd->bqk"}> : () -> ()
    %cst_99 = arith.constant dense<0.000000e+00> : vector<1x8x4xf32>
    %256 = tpu.matmul %253, %254, %cst_99 {dimension_numbers = #tpu.dot_dimension_numbers<[2], [2], [1], [1], [0, 0, 0, 1, 1, 1], [0], [0]>} : vector<1x8x8xf32>, vector<1x4x8xf32>, vector<1x8x4xf32> -> vector<1x8x4xf32>
    "tpu.trace_stop"() : () -> ()
    %cst_100 = arith.constant 0.353553385 : f32
    %257 = vector.broadcast %cst_100 : f32 to vector<1x8x4xf32>
    %258 = arith.mulf %256, %257 : vector<1x8x4xf32>
    %cst_101 = arith.constant dense<0xFF800000> : vector<1x8xf32>
    %259 = vector.multi_reduction <maximumf>, %258, %cst_101 [2] : vector<1x8x4xf32> to vector<1x8xf32>
    %260 = vector.shape_cast %259 : vector<1x8xf32> to vector<1x8x1xf32>
    %261 = vector.broadcast %260 : vector<1x8x1xf32> to vector<1x8x4xf32>
    %262 = arith.subf %258, %261 : vector<1x8x4xf32>
    %263 = math.exp %262 : vector<1x8x4xf32>
    %cst_102 = arith.constant dense<0.000000e+00> : vector<1x8xf32>
    %264 = vector.multi_reduction <add>, %263, %cst_102 [2] : vector<1x8x4xf32> to vector<1x8xf32>
    %265 = vector.shape_cast %264 : vector<1x8xf32> to vector<1x8x1xf32>
    %266 = tpu.reciprocal %265 {approx = true} : vector<1x8x1xf32> -> vector<1x8x1xf32>
    %267 = vector.broadcast %266 : vector<1x8x1xf32> to vector<1x8x4xf32>
    %268 = arith.mulf %263, %267 : vector<1x8x4xf32>
    "tpu.trace_start"() <{level = 10 : i32, message = "bqk,bkd->bqd"}> : () -> ()
    %cst_103 = arith.constant dense<0.000000e+00> : vector<1x8x8xf32>
    %269 = tpu.matmul %268, %255, %cst_103 {dimension_numbers = #tpu.dot_dimension_numbers<[2], [1], [1], [2], [0, 0, 0, 1, 1, 2], [0], [0]>} : vector<1x8x4xf32>, vector<1x4x8xf32>, vector<1x8x8xf32> -> vector<1x8x8xf32>
    "tpu.trace_stop"() : () -> ()
    %270 = vector.extract_strided_slice %208 {offsets = [0, 0, 24], sizes = [1, 8, 8], strides = [1, 1, 1]} : vector<1x8x32xf32> to vector<1x8x8xf32>
    %271 = vector.extract_strided_slice %217 {offsets = [0, 0, 24], sizes = [1, 4, 8], strides = [1, 1, 1]} : vector<1x4x32xf32> to vector<1x4x8xf32>
    %272 = vector.extract_strided_slice %218 {offsets = [0, 0, 24], sizes = [1, 4, 8], strides = [1, 1, 1]} : vector<1x4x32xf32> to vector<1x4x8xf32>
    "tpu.trace_start"() <{level = 10 : i32, message = "bqd,bkd->bqk"}> : () -> ()
    %cst_104 = arith.constant dense<0.000000e+00> : vector<1x8x4xf32>
    %273 = tpu.matmul %270, %271, %cst_104 {dimension_numbers = #tpu.dot_dimension_numbers<[2], [2], [1], [1], [0, 0, 0, 1, 1, 1], [0], [0]>} : vector<1x8x8xf32>, vector<1x4x8xf32>, vector<1x8x4xf32> -> vector<1x8x4xf32>
    "tpu.trace_stop"() : () -> ()
    %cst_105 = arith.constant 0.353553385 : f32
    %274 = vector.broadcast %cst_105 : f32 to vector<1x8x4xf32>
    %275 = arith.mulf %273, %274 : vector<1x8x4xf32>
    %cst_106 = arith.constant dense<0xFF800000> : vector<1x8xf32>
    %276 = vector.multi_reduction <maximumf>, %275, %cst_106 [2] : vector<1x8x4xf32> to vector<1x8xf32>
    %277 = vector.shape_cast %276 : vector<1x8xf32> to vector<1x8x1xf32>
    %278 = vector.broadcast %277 : vector<1x8x1xf32> to vector<1x8x4xf32>
    %279 = arith.subf %275, %278 : vector<1x8x4xf32>
    %280 = math.exp %279 : vector<1x8x4xf32>
    %cst_107 = arith.constant dense<0.000000e+00> : vector<1x8xf32>
    %281 = vector.multi_reduction <add>, %280, %cst_107 [2] : vector<1x8x4xf32> to vector<1x8xf32>
    %282 = vector.shape_cast %281 : vector<1x8xf32> to vector<1x8x1xf32>
    %283 = tpu.reciprocal %282 {approx = true} : vector<1x8x1xf32> -> vector<1x8x1xf32>
    %284 = vector.broadcast %283 : vector<1x8x1xf32> to vector<1x8x4xf32>
    %285 = arith.mulf %280, %284 : vector<1x8x4xf32>
    "tpu.trace_start"() <{level = 10 : i32, message = "bqk,bkd->bqd"}> : () -> ()
    %cst_108 = arith.constant dense<0.000000e+00> : vector<1x8x8xf32>
    %286 = tpu.matmul %285, %272, %cst_108 {dimension_numbers = #tpu.dot_dimension_numbers<[2], [1], [1], [2], [0, 0, 0, 1, 1, 2], [0], [0]>} : vector<1x8x4xf32>, vector<1x4x8xf32>, vector<1x8x8xf32> -> vector<1x8x8xf32>
    "tpu.trace_stop"() : () -> ()
    %287 = tpu.concatenate %235, %252, %269, %286 in 2 : vector<1x8x8xf32>, vector<1x8x8xf32>, vector<1x8x8xf32>, vector<1x8x8xf32> -> vector<1x8x32xf32>
    %c0_109 = arith.constant 0 : index
    %c0_110 = arith.constant 0 : index
    %c288_111 = arith.constant 288 : index
    %288 = vector.load %arg4[%c0_109, %c0_110, %c288_111] : memref<2x32x456xf32, #tpu.memory_space<vmem>>, vector<1x32x32xf32>
    %289 = vector.shape_cast %288 : vector<1x32x32xf32> to vector<32x32xf32>
    %c0_112 = arith.constant 0 : index
    %c0_113 = arith.constant 0 : index
    %c352 = arith.constant 352 : index
    %290 = vector.load %arg7[%c0_112, %c0_113, %c352] : memref<2x1x624xf32, #tpu.memory_space<vmem>>, vector<1x1x32xf32>
    %291 = vector.shape_cast %290 : vector<1x1x32xf32> to vector<1x32xf32>
    %292 = vector.shape_cast %287 : vector<1x8x32xf32> to vector<8x32xf32>
    %cst_114 = arith.constant dense<0.000000e+00> : vector<8x32xf32>
    %293 = tpu.matmul %292, %289, %cst_114 {dimension_numbers = #tpu.dot_dimension_numbers<[1], [0], [0], [1], [0, 0, 1, 1], [], []>} : vector<8x32xf32>, vector<32x32xf32>, vector<8x32xf32> -> vector<8x32xf32>
    %294 = vector.broadcast %291 : vector<1x32xf32> to vector<8x32xf32>
    %295 = arith.addf %293, %294 : vector<8x32xf32>
    %296 = vector.shape_cast %295 : vector<8x32xf32> to vector<1x8x32xf32>
    %297 = arith.addf %165, %296 : vector<1x8x32xf32>
    %c0_115 = arith.constant 0 : index
    %c0_116 = arith.constant 0 : index
    %c616 = arith.constant 616 : index
    %298 = vector.load %arg7[%c0_115, %c0_116, %c616] : memref<2x1x624xf32, #tpu.memory_space<vmem>>, vector<1x1x8xf32>
    %299 = vector.shape_cast %298 : vector<1x1x8xf32> to vector<1x8xf32>
    %300 = vector.shape_cast %297 : vector<1x8x32xf32> to vector<8x32xf32>
    %c0_117 = arith.constant 0 : index
    %c0_118 = arith.constant 0 : index
    %c0_119 = arith.constant 0 : index
    %301 = vector.load %arg8[%c0_117, %c0_118, %c0_119] : memref<2x20x8xf32, #tpu.memory_space<vmem>>, vector<1x16x8xf32>
    %302 = vector.shape_cast %301 : vector<1x16x8xf32> to vector<16x8xf32>
    %cst_120 = arith.constant dense<0.000000e+00> : vector<16x32xf32>
    %303 = tpu.matmul %302, %300, %cst_120 {dimension_numbers = #tpu.dot_dimension_numbers<[1], [0], [0], [1], [0, 0, 1, 1], [], []>} : vector<16x8xf32>, vector<8x32xf32>, vector<16x32xf32> -> vector<16x32xf32>
    %c0_121 = arith.constant 0 : index
    %c0_122 = arith.constant 0 : index
    %c0_123 = arith.constant 0 : index
    %304 = vector.load %arg11[%c0_121, %c0_122, %c0_123] : memref<2x23x1xf32, #tpu.memory_space<vmem>>, vector<1x16x1xf32>
    %305 = vector.shape_cast %304 : vector<1x16x1xf32> to vector<16x1xf32>
    %306 = vector.broadcast %305 : vector<16x1xf32> to vector<16x32xf32>
    %307 = arith.addf %303, %306 : vector<16x32xf32>
    %308 = vector.extract_strided_slice %307 {offsets = [0, 0], sizes = [8, 32], strides = [1, 1]} : vector<16x32xf32> to vector<8x32xf32>
    %309 = vector.extract_strided_slice %308 {offsets = [0, 0], sizes = [8, 31], strides = [1, 1]} : vector<8x32xf32> to vector<8x31xf32>
    %310 = tpu.concatenate %38, %309 in 1 : vector<8x1xf32>, vector<8x31xf32> -> vector<8x32xf32>
    %311 = vector.extract_strided_slice %308 {offsets = [0, 1], sizes = [8, 31], strides = [1, 1]} : vector<8x32xf32> to vector<8x31xf32>
    %312 = tpu.concatenate %311, %38 in 1 : vector<8x31xf32>, vector<8x1xf32> -> vector<8x32xf32>
    %313 = tpu.concatenate %310, %308, %312 in 0 : vector<8x32xf32>, vector<8x32xf32>, vector<8x32xf32> -> vector<24x32xf32>
    %c0_124 = arith.constant 0 : index
    %c0_125 = arith.constant 0 : index
    %c0_126 = arith.constant 0 : index
    %314 = vector.load %arg9[%c0_124, %c0_125, %c0_126] : memref<2x3x24xf32, #tpu.memory_space<vmem>>, vector<1x3x24xf32>
    %315 = vector.shape_cast %314 : vector<1x3x24xf32> to vector<3x24xf32>
    %cst_127 = arith.constant dense<0.000000e+00> : vector<3x32xf32>
    %316 = tpu.matmul %315, %313, %cst_127 {dimension_numbers = #tpu.dot_dimension_numbers<[1], [0], [0], [1], [0, 0, 1, 1], [], []>} : vector<3x24xf32>, vector<24x32xf32>, vector<3x32xf32> -> vector<3x32xf32>
    %c0_128 = arith.constant 0 : index
    %c16 = arith.constant 16 : index
    %c0_129 = arith.constant 0 : index
    %317 = vector.load %arg11[%c0_128, %c16, %c0_129] : memref<2x23x1xf32, #tpu.memory_space<vmem>>, vector<1x3x1xf32>
    %318 = vector.shape_cast %317 : vector<1x3x1xf32> to vector<3x1xf32>
    %319 = vector.broadcast %318 : vector<3x1xf32> to vector<3x32xf32>
    %320 = arith.addf %316, %319 : vector<3x32xf32>
    %cst_130 = arith.constant 5.000000e-01 : f32
    %321 = vector.broadcast %cst_130 : f32 to vector<3x32xf32>
    %322 = arith.mulf %321, %320 : vector<3x32xf32>
    %cst_131 = arith.constant 0.707106769 : f32
    %323 = vector.broadcast %cst_131 : f32 to vector<3x32xf32>
    %324 = arith.mulf %320, %323 : vector<3x32xf32>
    %325 = math.absf %324 : vector<3x32xf32>
    %cst_132 = arith.constant 0.327591091 : f32
    %326 = vector.broadcast %cst_132 : f32 to vector<3x32xf32>
    %327 = arith.mulf %326, %325 : vector<3x32xf32>
    %cst_133 = arith.constant 1.000000e+00 : f32
    %328 = vector.broadcast %cst_133 : f32 to vector<3x32xf32>
    %329 = arith.addf %328, %327 : vector<3x32xf32>
    %cst_134 = arith.constant 1.000000e+00 : f32
    %330 = vector.broadcast %cst_134 : f32 to vector<3x32xf32>
    %331 = arith.divf %330, %329 : vector<3x32xf32>
    %cst_135 = arith.constant 1.06140542 : f32
    %332 = vector.broadcast %cst_135 : f32 to vector<3x32xf32>
    %333 = arith.mulf %332, %331 : vector<3x32xf32>
    %cst_136 = arith.constant 1.45315206 : f32
    %334 = vector.broadcast %cst_136 : f32 to vector<3x32xf32>
    %335 = arith.subf %333, %334 : vector<3x32xf32>
    %336 = arith.mulf %335, %331 : vector<3x32xf32>
    %cst_137 = arith.constant 1.42141378 : f32
    %337 = vector.broadcast %cst_137 : f32 to vector<3x32xf32>
    %338 = arith.addf %336, %337 : vector<3x32xf32>
    %339 = arith.mulf %338, %331 : vector<3x32xf32>
    %cst_138 = arith.constant 0.284496725 : f32
    %340 = vector.broadcast %cst_138 : f32 to vector<3x32xf32>
    %341 = arith.subf %339, %340 : vector<3x32xf32>
    %342 = arith.mulf %341, %331 : vector<3x32xf32>
    %cst_139 = arith.constant 0.254829586 : f32
    %343 = vector.broadcast %cst_139 : f32 to vector<3x32xf32>
    %344 = arith.addf %342, %343 : vector<3x32xf32>
    %345 = arith.mulf %344, %331 : vector<3x32xf32>
    %cst_140 = arith.constant 0.000000e+00 : f32
    %346 = vector.broadcast %cst_140 : f32 to vector<3x32xf32>
    %347 = arith.subf %346, %325 : vector<3x32xf32>
    %348 = arith.mulf %347, %325 : vector<3x32xf32>
    %349 = math.exp %348 : vector<3x32xf32>
    %350 = arith.mulf %345, %349 : vector<3x32xf32>
    %cst_141 = arith.constant 1.000000e+00 : f32
    %351 = vector.broadcast %cst_141 : f32 to vector<3x32xf32>
    %352 = arith.subf %351, %350 : vector<3x32xf32>
    %cst_142 = arith.constant 0.000000e+00 : f32
    %353 = vector.broadcast %cst_142 : f32 to vector<3x32xf32>
    %354 = arith.cmpf oge, %324, %353 : vector<3x32xf32>
    %cst_143 = arith.constant 0.000000e+00 : f32
    %355 = vector.broadcast %cst_143 : f32 to vector<3x32xf32>
    %356 = arith.subf %355, %352 : vector<3x32xf32>
    %357 = arith.select %354, %352, %356 : vector<3x32xi1>, vector<3x32xf32>
    %cst_144 = arith.constant 1.000000e+00 : f32
    %358 = vector.broadcast %cst_144 : f32 to vector<3x32xf32>
    %359 = arith.addf %358, %357 : vector<3x32xf32>
    %360 = arith.mulf %322, %359 : vector<3x32xf32>
    %cst_145 = arith.constant dense<0.000000e+00> : vector<3x32xf32>
    %361 = tpu.matmul %32, %360, %cst_145 {dimension_numbers = #tpu.dot_dimension_numbers<[1], [0], [0], [1], [0, 0, 1, 1], [], []>} : vector<3x3xf32>, vector<3x32xf32>, vector<3x32xf32> -> vector<3x32xf32>
    %cst_146 = arith.constant dense<0.000000e+00> : vector<3x32xf32>
    %362 = tpu.matmul %37, %360, %cst_146 {dimension_numbers = #tpu.dot_dimension_numbers<[1], [0], [0], [1], [0, 0, 1, 1], [], []>} : vector<3x3xf32>, vector<3x32xf32>, vector<3x32xf32> -> vector<3x32xf32>
    %363 = tpu.concatenate %361, %360, %362 in 1 : vector<3x32xf32>, vector<3x32xf32>, vector<3x32xf32> -> vector<3x96xf32>
    %c0_147 = arith.constant 0 : index
    %c0_148 = arith.constant 0 : index
    %c0_149 = arith.constant 0 : index
    %364 = vector.load %arg10[%c0_147, %c0_148, %c0_149] : memref<2x96x8xf32, #tpu.memory_space<vmem>>, vector<1x96x8xf32>
    %365 = vector.shape_cast %364 : vector<1x96x8xf32> to vector<96x8xf32>
    %cst_150 = arith.constant dense<0.000000e+00> : vector<3x8xf32>
    %366 = tpu.matmul %363, %365, %cst_150 {dimension_numbers = #tpu.dot_dimension_numbers<[1], [0], [0], [1], [0, 0, 1, 1], [], []>} : vector<3x96xf32>, vector<96x8xf32>, vector<3x8xf32> -> vector<3x8xf32>
    %367 = vector.broadcast %299 : vector<1x8xf32> to vector<3x8xf32>
    %368 = arith.addf %366, %367 : vector<3x8xf32>
    %cst_151 = arith.constant dense<0.000000e+00> : vector<8x8xf32>
    %369 = tpu.matmul %24, %368, %cst_151 {dimension_numbers = #tpu.dot_dimension_numbers<[1], [0], [0], [1], [0, 0, 1, 1], [], []>} : vector<8x3xf32>, vector<3x8xf32>, vector<8x8xf32> -> vector<8x8xf32>
    %c0_152 = arith.constant 0 : index
    %c16_153 = arith.constant 16 : index
    %c0_154 = arith.constant 0 : index
    %370 = vector.load %arg8[%c0_152, %c16_153, %c0_154] : memref<2x20x8xf32, #tpu.memory_space<vmem>>, vector<1x4x8xf32>
    %371 = vector.shape_cast %370 : vector<1x4x8xf32> to vector<4x8xf32>
    %cst_155 = arith.constant dense<0.000000e+00> : vector<4x32xf32>
    %372 = tpu.matmul %371, %300, %cst_155 {dimension_numbers = #tpu.dot_dimension_numbers<[1], [0], [0], [1], [0, 0, 1, 1], [], []>} : vector<4x8xf32>, vector<8x32xf32>, vector<4x32xf32> -> vector<4x32xf32>
    %c0_156 = arith.constant 0 : index
    %c19 = arith.constant 19 : index
    %c0_157 = arith.constant 0 : index
    %373 = vector.load %arg11[%c0_156, %c19, %c0_157] : memref<2x23x1xf32, #tpu.memory_space<vmem>>, vector<1x4x1xf32>
    %374 = vector.shape_cast %373 : vector<1x4x1xf32> to vector<4x1xf32>
    %375 = vector.broadcast %374 : vector<4x1xf32> to vector<4x32xf32>
    %376 = arith.addf %372, %375 : vector<4x32xf32>
    %cst_158 = arith.constant dense<0.000000e+00> : vector<8x32xf32>
    %377 = tpu.matmul %25, %376, %cst_158 {dimension_numbers = #tpu.dot_dimension_numbers<[1], [0], [0], [1], [0, 0, 1, 1], [], []>} : vector<8x4xf32>, vector<4x32xf32>, vector<8x32xf32> -> vector<8x32xf32>
    %378 = vector.shape_cast %369 : vector<8x8xf32> to vector<1x8x8xf32>
    %379 = arith.addf %39, %378 : vector<1x8x8xf32>
    %380 = vector.shape_cast %377 : vector<8x32xf32> to vector<1x8x32xf32>
    %381 = arith.addf %40, %380 : vector<1x8x32xf32>
    %cst_159 = arith.constant dense<0.000000e+00> : vector<1x8xf32>
    %382 = vector.multi_reduction <add>, %297, %cst_159 [2] : vector<1x8x32xf32> to vector<1x8xf32>
    %383 = vector.shape_cast %382 : vector<1x8xf32> to vector<1x8x1xf32>
    %cst_160 = arith.constant 3.200000e+01 : f32
    %384 = vector.broadcast %cst_160 : f32 to vector<1x8x1xf32>
    %385 = arith.divf %383, %384 : vector<1x8x1xf32>
    %386 = vector.broadcast %385 : vector<1x8x1xf32> to vector<1x8x32xf32>
    %387 = arith.subf %297, %386 : vector<1x8x32xf32>
    %388 = arith.mulf %387, %387 : vector<1x8x32xf32>
    %cst_161 = arith.constant dense<0.000000e+00> : vector<1x8xf32>
    %389 = vector.multi_reduction <add>, %388, %cst_161 [2] : vector<1x8x32xf32> to vector<1x8xf32>
    %390 = vector.shape_cast %389 : vector<1x8xf32> to vector<1x8x1xf32>
    %cst_162 = arith.constant 3.200000e+01 : f32
    %391 = vector.broadcast %cst_162 : f32 to vector<1x8x1xf32>
    %392 = arith.divf %390, %391 : vector<1x8x1xf32>
    %393 = vector.broadcast %385 : vector<1x8x1xf32> to vector<1x8x32xf32>
    %394 = arith.subf %297, %393 : vector<1x8x32xf32>
    %cst_163 = arith.constant 9.99999974E-6 : f32
    %395 = vector.broadcast %cst_163 : f32 to vector<1x8x1xf32>
    %396 = arith.addf %392, %395 : vector<1x8x1xf32>
    %397 = math.rsqrt %396 : vector<1x8x1xf32>
    %398 = vector.broadcast %397 : vector<1x8x1xf32> to vector<1x8x32xf32>
    %399 = arith.mulf %394, %398 : vector<1x8x32xf32>
    %c0_164 = arith.constant 0 : index
    %c0_165 = arith.constant 0 : index
    %c544 = arith.constant 544 : index
    %400 = vector.load %arg7[%c0_164, %c0_165, %c544] : memref<2x1x624xf32, #tpu.memory_space<vmem>>, vector<1x1x32xf32>
    %401 = vector.shape_cast %400 : vector<1x1x32xf32> to vector<1x32xf32>
    %402 = vector.shape_cast %401 : vector<1x32xf32> to vector<1x1x32xf32>
    %403 = vector.broadcast %402 : vector<1x1x32xf32> to vector<1x8x32xf32>
    %404 = arith.mulf %399, %403 : vector<1x8x32xf32>
    %c0_166 = arith.constant 0 : index
    %c0_167 = arith.constant 0 : index
    %c576 = arith.constant 576 : index
    %405 = vector.load %arg7[%c0_166, %c0_167, %c576] : memref<2x1x624xf32, #tpu.memory_space<vmem>>, vector<1x1x32xf32>
    %406 = vector.shape_cast %405 : vector<1x1x32xf32> to vector<1x32xf32>
    %407 = vector.shape_cast %406 : vector<1x32xf32> to vector<1x1x32xf32>
    %408 = vector.broadcast %407 : vector<1x1x32xf32> to vector<1x8x32xf32>
    %409 = arith.addf %404, %408 : vector<1x8x32xf32>
    %c0_168 = arith.constant 0 : index
    %c0_169 = arith.constant 0 : index
    %c320 = arith.constant 320 : index
    %410 = vector.load %arg4[%c0_168, %c0_169, %c320] : memref<2x32x456xf32, #tpu.memory_space<vmem>>, vector<1x32x128xf32>
    %411 = vector.shape_cast %410 : vector<1x32x128xf32> to vector<32x128xf32>
    %c0_170 = arith.constant 0 : index
    %c0_171 = arith.constant 0 : index
    %c384 = arith.constant 384 : index
    %412 = vector.load %arg7[%c0_170, %c0_171, %c384] : memref<2x1x624xf32, #tpu.memory_space<vmem>>, vector<1x1x128xf32>
    %413 = vector.shape_cast %412 : vector<1x1x128xf32> to vector<1x128xf32>
    %414 = vector.shape_cast %409 : vector<1x8x32xf32> to vector<8x32xf32>
    %cst_172 = arith.constant dense<0.000000e+00> : vector<8x128xf32>
    %415 = tpu.matmul %414, %411, %cst_172 {dimension_numbers = #tpu.dot_dimension_numbers<[1], [0], [0], [1], [0, 0, 1, 1], [], []>} : vector<8x32xf32>, vector<32x128xf32>, vector<8x128xf32> -> vector<8x128xf32>
    %416 = vector.broadcast %413 : vector<1x128xf32> to vector<8x128xf32>
    %417 = arith.addf %415, %416 : vector<8x128xf32>
    %418 = vector.shape_cast %417 : vector<8x128xf32> to vector<1x8x128xf32>
    %cst_173 = arith.constant 5.000000e-01 : f32
    %419 = vector.broadcast %cst_173 : f32 to vector<1x8x128xf32>
    %420 = arith.mulf %419, %418 : vector<1x8x128xf32>
    %cst_174 = arith.constant 0.707106769 : f32
    %421 = vector.broadcast %cst_174 : f32 to vector<1x8x128xf32>
    %422 = arith.mulf %418, %421 : vector<1x8x128xf32>
    %423 = math.absf %422 : vector<1x8x128xf32>
    %cst_175 = arith.constant 0.327591091 : f32
    %424 = vector.broadcast %cst_175 : f32 to vector<1x8x128xf32>
    %425 = arith.mulf %424, %423 : vector<1x8x128xf32>
    %cst_176 = arith.constant 1.000000e+00 : f32
    %426 = vector.broadcast %cst_176 : f32 to vector<1x8x128xf32>
    %427 = arith.addf %426, %425 : vector<1x8x128xf32>
    %cst_177 = arith.constant 1.000000e+00 : f32
    %428 = vector.broadcast %cst_177 : f32 to vector<1x8x128xf32>
    %429 = arith.divf %428, %427 : vector<1x8x128xf32>
    %cst_178 = arith.constant 1.06140542 : f32
    %430 = vector.broadcast %cst_178 : f32 to vector<1x8x128xf32>
    %431 = arith.mulf %430, %429 : vector<1x8x128xf32>
    %cst_179 = arith.constant 1.45315206 : f32
    %432 = vector.broadcast %cst_179 : f32 to vector<1x8x128xf32>
    %433 = arith.subf %431, %432 : vector<1x8x128xf32>
    %434 = arith.mulf %433, %429 : vector<1x8x128xf32>
    %cst_180 = arith.constant 1.42141378 : f32
    %435 = vector.broadcast %cst_180 : f32 to vector<1x8x128xf32>
    %436 = arith.addf %434, %435 : vector<1x8x128xf32>
    %437 = arith.mulf %436, %429 : vector<1x8x128xf32>
    %cst_181 = arith.constant 0.284496725 : f32
    %438 = vector.broadcast %cst_181 : f32 to vector<1x8x128xf32>
    %439 = arith.subf %437, %438 : vector<1x8x128xf32>
    %440 = arith.mulf %439, %429 : vector<1x8x128xf32>
    %cst_182 = arith.constant 0.254829586 : f32
    %441 = vector.broadcast %cst_182 : f32 to vector<1x8x128xf32>
    %442 = arith.addf %440, %441 : vector<1x8x128xf32>
    %443 = arith.mulf %442, %429 : vector<1x8x128xf32>
    %cst_183 = arith.constant 0.000000e+00 : f32
    %444 = vector.broadcast %cst_183 : f32 to vector<1x8x128xf32>
    %445 = arith.subf %444, %423 : vector<1x8x128xf32>
    %446 = arith.mulf %445, %423 : vector<1x8x128xf32>
    %447 = math.exp %446 : vector<1x8x128xf32>
    %448 = arith.mulf %443, %447 : vector<1x8x128xf32>
    %cst_184 = arith.constant 1.000000e+00 : f32
    %449 = vector.broadcast %cst_184 : f32 to vector<1x8x128xf32>
    %450 = arith.subf %449, %448 : vector<1x8x128xf32>
    %cst_185 = arith.constant 0.000000e+00 : f32
    %451 = vector.broadcast %cst_185 : f32 to vector<1x8x128xf32>
    %452 = arith.cmpf oge, %422, %451 : vector<1x8x128xf32>
    %cst_186 = arith.constant 0.000000e+00 : f32
    %453 = vector.broadcast %cst_186 : f32 to vector<1x8x128xf32>
    %454 = arith.subf %453, %450 : vector<1x8x128xf32>
    %455 = arith.select %452, %450, %454 : vector<1x8x128xi1>, vector<1x8x128xf32>
    %cst_187 = arith.constant 1.000000e+00 : f32
    %456 = vector.broadcast %cst_187 : f32 to vector<1x8x128xf32>
    %457 = arith.addf %456, %455 : vector<1x8x128xf32>
    %458 = arith.mulf %420, %457 : vector<1x8x128xf32>
    %c0_188 = arith.constant 0 : index
    %c0_189 = arith.constant 0 : index
    %c0_190 = arith.constant 0 : index
    %459 = vector.load %arg6[%c0_188, %c0_189, %c0_190] : memref<2x128x32xf32, #tpu.memory_space<vmem>>, vector<1x128x32xf32>
    %460 = vector.shape_cast %459 : vector<1x128x32xf32> to vector<128x32xf32>
    %c0_191 = arith.constant 0 : index
    %c0_192 = arith.constant 0 : index
    %c512 = arith.constant 512 : index
    %461 = vector.load %arg7[%c0_191, %c0_192, %c512] : memref<2x1x624xf32, #tpu.memory_space<vmem>>, vector<1x1x32xf32>
    %462 = vector.shape_cast %461 : vector<1x1x32xf32> to vector<1x32xf32>
    %463 = vector.shape_cast %458 : vector<1x8x128xf32> to vector<8x128xf32>
    %cst_193 = arith.constant dense<0.000000e+00> : vector<8x32xf32>
    %464 = tpu.matmul %463, %460, %cst_193 {dimension_numbers = #tpu.dot_dimension_numbers<[1], [0], [0], [1], [0, 0, 1, 1], [], []>} : vector<8x128xf32>, vector<128x32xf32>, vector<8x32xf32> -> vector<8x32xf32>
    %465 = vector.broadcast %462 : vector<1x32xf32> to vector<8x32xf32>
    %466 = arith.addf %464, %465 : vector<8x32xf32>
    %467 = vector.shape_cast %466 : vector<8x32xf32> to vector<1x8x32xf32>
    %468 = arith.addf %297, %467 : vector<1x8x32xf32>
    %cst_194 = arith.constant dense<0.000000e+00> : vector<1x32xf32>
    %469 = vector.multi_reduction <add>, %468, %cst_194 [1] : vector<1x8x32xf32> to vector<1x32xf32>
    %470 = vector.shape_cast %469 : vector<1x32xf32> to vector<1x1x32xf32>
    %cst_195 = arith.constant 8.000000e+00 : f32
    %471 = vector.broadcast %cst_195 : f32 to vector<1x1x32xf32>
    %472 = arith.divf %470, %471 : vector<1x1x32xf32>
    %473 = vector.broadcast %472 : vector<1x1x32xf32> to vector<1x8x32xf32>
    %474 = arith.subf %468, %473 : vector<1x8x32xf32>
    %475 = vector.shape_cast %472 : vector<1x1x32xf32> to vector<1x32xf32>
    %c0_196 = arith.constant 0 : index
    %c0_197 = arith.constant 0 : index
    %c448 = arith.constant 448 : index
    %476 = vector.load %arg4[%c0_196, %c0_197, %c448] : memref<2x32x456xf32, #tpu.memory_space<vmem>>, vector<1x32x8xf32>
    %477 = vector.shape_cast %476 : vector<1x32x8xf32> to vector<32x8xf32>
    %cst_198 = arith.constant dense<0.000000e+00> : vector<1x8xf32>
    %478 = tpu.matmul %475, %477, %cst_198 {dimension_numbers = #tpu.dot_dimension_numbers<[1], [0], [0], [1], [0, 0, 1, 1], [], []>} : vector<1x32xf32>, vector<32x8xf32>, vector<1x8xf32> -> vector<1x8xf32>
    %c0_199 = arith.constant 0 : index
    %c0_200 = arith.constant 0 : index
    %c608 = arith.constant 608 : index
    %479 = vector.load %arg7[%c0_199, %c0_200, %c608] : memref<2x1x624xf32, #tpu.memory_space<vmem>>, vector<1x1x8xf32>
    %480 = vector.shape_cast %479 : vector<1x1x8xf32> to vector<1x8xf32>
    %481 = arith.addf %478, %480 : vector<1x8xf32>
    %c1 = arith.constant 1 : index
    %c0_201 = arith.constant 0 : index
    %c0_202 = arith.constant 0 : index
    %482 = vector.load %arg4[%c1, %c0_201, %c0_202] : memref<2x32x456xf32, #tpu.memory_space<vmem>>, vector<1x32x64xf32>
    %483 = vector.shape_cast %482 : vector<1x32x64xf32> to vector<32x64xf32>
    %cst_203 = arith.constant dense<0.000000e+00> : vector<1x64xf32>
    %484 = tpu.matmul %13, %483, %cst_203 {dimension_numbers = #tpu.dot_dimension_numbers<[1], [0], [0], [1], [0, 0, 1, 1], [], []>} : vector<1x32xf32>, vector<32x64xf32>, vector<1x64xf32> -> vector<1x64xf32>
    %c1_204 = arith.constant 1 : index
    %c0_205 = arith.constant 0 : index
    %c0_206 = arith.constant 0 : index
    %485 = vector.load %arg7[%c1_204, %c0_205, %c0_206] : memref<2x1x624xf32, #tpu.memory_space<vmem>>, vector<1x1x64xf32>
    %486 = vector.shape_cast %485 : vector<1x1x64xf32> to vector<1x64xf32>
    %487 = arith.addf %484, %486 : vector<1x64xf32>
    %cst_207 = arith.constant dense<0.000000e+00> : vector<1x8xf32>
    %488 = vector.multi_reduction <add>, %474, %cst_207 [2] : vector<1x8x32xf32> to vector<1x8xf32>
    %489 = vector.shape_cast %488 : vector<1x8xf32> to vector<1x8x1xf32>
    %cst_208 = arith.constant 3.200000e+01 : f32
    %490 = vector.broadcast %cst_208 : f32 to vector<1x8x1xf32>
    %491 = arith.divf %489, %490 : vector<1x8x1xf32>
    %492 = vector.broadcast %491 : vector<1x8x1xf32> to vector<1x8x32xf32>
    %493 = arith.subf %474, %492 : vector<1x8x32xf32>
    %494 = arith.mulf %493, %493 : vector<1x8x32xf32>
    %cst_209 = arith.constant dense<0.000000e+00> : vector<1x8xf32>
    %495 = vector.multi_reduction <add>, %494, %cst_209 [2] : vector<1x8x32xf32> to vector<1x8xf32>
    %496 = vector.shape_cast %495 : vector<1x8xf32> to vector<1x8x1xf32>
    %cst_210 = arith.constant 3.200000e+01 : f32
    %497 = vector.broadcast %cst_210 : f32 to vector<1x8x1xf32>
    %498 = arith.divf %496, %497 : vector<1x8x1xf32>
    %499 = vector.broadcast %491 : vector<1x8x1xf32> to vector<1x8x32xf32>
    %500 = arith.subf %474, %499 : vector<1x8x32xf32>
    %cst_211 = arith.constant 9.99999974E-6 : f32
    %501 = vector.broadcast %cst_211 : f32 to vector<1x8x1xf32>
    %502 = arith.addf %498, %501 : vector<1x8x1xf32>
    %503 = math.rsqrt %502 : vector<1x8x1xf32>
    %504 = vector.broadcast %503 : vector<1x8x1xf32> to vector<1x8x32xf32>
    %505 = arith.mulf %500, %504 : vector<1x8x32xf32>
    %506 = vector.extract_strided_slice %487 {offsets = [0, 0], sizes = [1, 32], strides = [1, 1]} : vector<1x64xf32> to vector<1x32xf32>
    %507 = vector.shape_cast %506 : vector<1x32xf32> to vector<1x1x32xf32>
    %cst_212 = arith.constant 1.000000e+00 : f32
    %508 = vector.broadcast %cst_212 : f32 to vector<1x1x32xf32>
    %509 = arith.addf %508, %507 : vector<1x1x32xf32>
    %510 = vector.broadcast %509 : vector<1x1x32xf32> to vector<1x8x32xf32>
    %511 = arith.mulf %505, %510 : vector<1x8x32xf32>
    %512 = vector.extract_strided_slice %487 {offsets = [0, 32], sizes = [1, 32], strides = [1, 1]} : vector<1x64xf32> to vector<1x32xf32>
    %513 = vector.shape_cast %512 : vector<1x32xf32> to vector<1x1x32xf32>
    %514 = vector.broadcast %513 : vector<1x1x32xf32> to vector<1x8x32xf32>
    %515 = arith.addf %511, %514 : vector<1x8x32xf32>
    %c1_213 = arith.constant 1 : index
    %c0_214 = arith.constant 0 : index
    %c128_215 = arith.constant 128 : index
    %516 = vector.load %arg4[%c1_213, %c0_214, %c128_215] : memref<2x32x456xf32, #tpu.memory_space<vmem>>, vector<1x32x96xf32>
    %517 = vector.shape_cast %516 : vector<1x32x96xf32> to vector<32x96xf32>
    %c1_216 = arith.constant 1 : index
    %c0_217 = arith.constant 0 : index
    %c128_218 = arith.constant 128 : index
    %518 = vector.load %arg7[%c1_216, %c0_217, %c128_218] : memref<2x1x624xf32, #tpu.memory_space<vmem>>, vector<1x1x96xf32>
    %519 = vector.shape_cast %518 : vector<1x1x96xf32> to vector<1x96xf32>
    %520 = vector.shape_cast %515 : vector<1x8x32xf32> to vector<8x32xf32>
    %cst_219 = arith.constant dense<0.000000e+00> : vector<8x96xf32>
    %521 = tpu.matmul %520, %517, %cst_219 {dimension_numbers = #tpu.dot_dimension_numbers<[1], [0], [0], [1], [0, 0, 1, 1], [], []>} : vector<8x32xf32>, vector<32x96xf32>, vector<8x96xf32> -> vector<8x96xf32>
    %522 = vector.broadcast %519 : vector<1x96xf32> to vector<8x96xf32>
    %523 = arith.addf %521, %522 : vector<8x96xf32>
    %524 = vector.shape_cast %523 : vector<8x96xf32> to vector<1x8x96xf32>
    %525 = vector.extract_strided_slice %524 {offsets = [0, 0, 0], sizes = [1, 8, 32], strides = [1, 1, 1]} : vector<1x8x96xf32> to vector<1x8x32xf32>
    %526 = vector.extract_strided_slice %524 {offsets = [0, 0, 32], sizes = [1, 8, 32], strides = [1, 1, 1]} : vector<1x8x96xf32> to vector<1x8x32xf32>
    %527 = vector.extract_strided_slice %524 {offsets = [0, 0, 64], sizes = [1, 8, 32], strides = [1, 1, 1]} : vector<1x8x96xf32> to vector<1x8x32xf32>
    %528 = vector.extract_strided_slice %525 {offsets = [0, 0, 0], sizes = [1, 8, 8], strides = [1, 1, 1]} : vector<1x8x32xf32> to vector<1x8x8xf32>
    %529 = vector.extract_strided_slice %526 {offsets = [0, 0, 0], sizes = [1, 8, 8], strides = [1, 1, 1]} : vector<1x8x32xf32> to vector<1x8x8xf32>
    %530 = vector.extract_strided_slice %527 {offsets = [0, 0, 0], sizes = [1, 8, 8], strides = [1, 1, 1]} : vector<1x8x32xf32> to vector<1x8x8xf32>
    "tpu.trace_start"() <{level = 10 : i32, message = "bqd,bkd->bqk"}> : () -> ()
    %cst_220 = arith.constant dense<0.000000e+00> : vector<1x8x8xf32>
    %531 = tpu.matmul %528, %529, %cst_220 {dimension_numbers = #tpu.dot_dimension_numbers<[2], [2], [1], [1], [0, 0, 0, 1, 1, 1], [0], [0]>} : vector<1x8x8xf32>, vector<1x8x8xf32>, vector<1x8x8xf32> -> vector<1x8x8xf32>
    "tpu.trace_stop"() : () -> ()
    %cst_221 = arith.constant 0.353553385 : f32
    %532 = vector.broadcast %cst_221 : f32 to vector<1x8x8xf32>
    %533 = arith.mulf %531, %532 : vector<1x8x8xf32>
    %cst_222 = arith.constant dense<0xFF800000> : vector<1x8xf32>
    %534 = vector.multi_reduction <maximumf>, %533, %cst_222 [2] : vector<1x8x8xf32> to vector<1x8xf32>
    %535 = vector.shape_cast %534 : vector<1x8xf32> to vector<1x8x1xf32>
    %536 = vector.broadcast %535 : vector<1x8x1xf32> to vector<1x8x8xf32>
    %537 = arith.subf %533, %536 : vector<1x8x8xf32>
    %538 = math.exp %537 : vector<1x8x8xf32>
    %cst_223 = arith.constant dense<0.000000e+00> : vector<1x8xf32>
    %539 = vector.multi_reduction <add>, %538, %cst_223 [2] : vector<1x8x8xf32> to vector<1x8xf32>
    %540 = vector.shape_cast %539 : vector<1x8xf32> to vector<1x8x1xf32>
    %541 = tpu.reciprocal %540 {approx = true} : vector<1x8x1xf32> -> vector<1x8x1xf32>
    %542 = vector.broadcast %541 : vector<1x8x1xf32> to vector<1x8x8xf32>
    %543 = arith.mulf %538, %542 : vector<1x8x8xf32>
    "tpu.trace_start"() <{level = 10 : i32, message = "bqk,bkd->bqd"}> : () -> ()
    %cst_224 = arith.constant dense<0.000000e+00> : vector<1x8x8xf32>
    %544 = tpu.matmul %543, %530, %cst_224 {dimension_numbers = #tpu.dot_dimension_numbers<[2], [1], [1], [2], [0, 0, 0, 1, 1, 2], [0], [0]>} : vector<1x8x8xf32>, vector<1x8x8xf32>, vector<1x8x8xf32> -> vector<1x8x8xf32>
    "tpu.trace_stop"() : () -> ()
    %545 = vector.extract_strided_slice %525 {offsets = [0, 0, 8], sizes = [1, 8, 8], strides = [1, 1, 1]} : vector<1x8x32xf32> to vector<1x8x8xf32>
    %546 = vector.extract_strided_slice %526 {offsets = [0, 0, 8], sizes = [1, 8, 8], strides = [1, 1, 1]} : vector<1x8x32xf32> to vector<1x8x8xf32>
    %547 = vector.extract_strided_slice %527 {offsets = [0, 0, 8], sizes = [1, 8, 8], strides = [1, 1, 1]} : vector<1x8x32xf32> to vector<1x8x8xf32>
    "tpu.trace_start"() <{level = 10 : i32, message = "bqd,bkd->bqk"}> : () -> ()
    %cst_225 = arith.constant dense<0.000000e+00> : vector<1x8x8xf32>
    %548 = tpu.matmul %545, %546, %cst_225 {dimension_numbers = #tpu.dot_dimension_numbers<[2], [2], [1], [1], [0, 0, 0, 1, 1, 1], [0], [0]>} : vector<1x8x8xf32>, vector<1x8x8xf32>, vector<1x8x8xf32> -> vector<1x8x8xf32>
    "tpu.trace_stop"() : () -> ()
    %cst_226 = arith.constant 0.353553385 : f32
    %549 = vector.broadcast %cst_226 : f32 to vector<1x8x8xf32>
    %550 = arith.mulf %548, %549 : vector<1x8x8xf32>
    %cst_227 = arith.constant dense<0xFF800000> : vector<1x8xf32>
    %551 = vector.multi_reduction <maximumf>, %550, %cst_227 [2] : vector<1x8x8xf32> to vector<1x8xf32>
    %552 = vector.shape_cast %551 : vector<1x8xf32> to vector<1x8x1xf32>
    %553 = vector.broadcast %552 : vector<1x8x1xf32> to vector<1x8x8xf32>
    %554 = arith.subf %550, %553 : vector<1x8x8xf32>
    %555 = math.exp %554 : vector<1x8x8xf32>
    %cst_228 = arith.constant dense<0.000000e+00> : vector<1x8xf32>
    %556 = vector.multi_reduction <add>, %555, %cst_228 [2] : vector<1x8x8xf32> to vector<1x8xf32>
    %557 = vector.shape_cast %556 : vector<1x8xf32> to vector<1x8x1xf32>
    %558 = tpu.reciprocal %557 {approx = true} : vector<1x8x1xf32> -> vector<1x8x1xf32>
    %559 = vector.broadcast %558 : vector<1x8x1xf32> to vector<1x8x8xf32>
    %560 = arith.mulf %555, %559 : vector<1x8x8xf32>
    "tpu.trace_start"() <{level = 10 : i32, message = "bqk,bkd->bqd"}> : () -> ()
    %cst_229 = arith.constant dense<0.000000e+00> : vector<1x8x8xf32>
    %561 = tpu.matmul %560, %547, %cst_229 {dimension_numbers = #tpu.dot_dimension_numbers<[2], [1], [1], [2], [0, 0, 0, 1, 1, 2], [0], [0]>} : vector<1x8x8xf32>, vector<1x8x8xf32>, vector<1x8x8xf32> -> vector<1x8x8xf32>
    "tpu.trace_stop"() : () -> ()
    %562 = vector.extract_strided_slice %525 {offsets = [0, 0, 16], sizes = [1, 8, 8], strides = [1, 1, 1]} : vector<1x8x32xf32> to vector<1x8x8xf32>
    %563 = vector.extract_strided_slice %526 {offsets = [0, 0, 16], sizes = [1, 8, 8], strides = [1, 1, 1]} : vector<1x8x32xf32> to vector<1x8x8xf32>
    %564 = vector.extract_strided_slice %527 {offsets = [0, 0, 16], sizes = [1, 8, 8], strides = [1, 1, 1]} : vector<1x8x32xf32> to vector<1x8x8xf32>
    "tpu.trace_start"() <{level = 10 : i32, message = "bqd,bkd->bqk"}> : () -> ()
    %cst_230 = arith.constant dense<0.000000e+00> : vector<1x8x8xf32>
    %565 = tpu.matmul %562, %563, %cst_230 {dimension_numbers = #tpu.dot_dimension_numbers<[2], [2], [1], [1], [0, 0, 0, 1, 1, 1], [0], [0]>} : vector<1x8x8xf32>, vector<1x8x8xf32>, vector<1x8x8xf32> -> vector<1x8x8xf32>
    "tpu.trace_stop"() : () -> ()
    %cst_231 = arith.constant 0.353553385 : f32
    %566 = vector.broadcast %cst_231 : f32 to vector<1x8x8xf32>
    %567 = arith.mulf %565, %566 : vector<1x8x8xf32>
    %cst_232 = arith.constant dense<0xFF800000> : vector<1x8xf32>
    %568 = vector.multi_reduction <maximumf>, %567, %cst_232 [2] : vector<1x8x8xf32> to vector<1x8xf32>
    %569 = vector.shape_cast %568 : vector<1x8xf32> to vector<1x8x1xf32>
    %570 = vector.broadcast %569 : vector<1x8x1xf32> to vector<1x8x8xf32>
    %571 = arith.subf %567, %570 : vector<1x8x8xf32>
    %572 = math.exp %571 : vector<1x8x8xf32>
    %cst_233 = arith.constant dense<0.000000e+00> : vector<1x8xf32>
    %573 = vector.multi_reduction <add>, %572, %cst_233 [2] : vector<1x8x8xf32> to vector<1x8xf32>
    %574 = vector.shape_cast %573 : vector<1x8xf32> to vector<1x8x1xf32>
    %575 = tpu.reciprocal %574 {approx = true} : vector<1x8x1xf32> -> vector<1x8x1xf32>
    %576 = vector.broadcast %575 : vector<1x8x1xf32> to vector<1x8x8xf32>
    %577 = arith.mulf %572, %576 : vector<1x8x8xf32>
    "tpu.trace_start"() <{level = 10 : i32, message = "bqk,bkd->bqd"}> : () -> ()
    %cst_234 = arith.constant dense<0.000000e+00> : vector<1x8x8xf32>
    %578 = tpu.matmul %577, %564, %cst_234 {dimension_numbers = #tpu.dot_dimension_numbers<[2], [1], [1], [2], [0, 0, 0, 1, 1, 2], [0], [0]>} : vector<1x8x8xf32>, vector<1x8x8xf32>, vector<1x8x8xf32> -> vector<1x8x8xf32>
    "tpu.trace_stop"() : () -> ()
    %579 = vector.extract_strided_slice %525 {offsets = [0, 0, 24], sizes = [1, 8, 8], strides = [1, 1, 1]} : vector<1x8x32xf32> to vector<1x8x8xf32>
    %580 = vector.extract_strided_slice %526 {offsets = [0, 0, 24], sizes = [1, 8, 8], strides = [1, 1, 1]} : vector<1x8x32xf32> to vector<1x8x8xf32>
    %581 = vector.extract_strided_slice %527 {offsets = [0, 0, 24], sizes = [1, 8, 8], strides = [1, 1, 1]} : vector<1x8x32xf32> to vector<1x8x8xf32>
    "tpu.trace_start"() <{level = 10 : i32, message = "bqd,bkd->bqk"}> : () -> ()
    %cst_235 = arith.constant dense<0.000000e+00> : vector<1x8x8xf32>
    %582 = tpu.matmul %579, %580, %cst_235 {dimension_numbers = #tpu.dot_dimension_numbers<[2], [2], [1], [1], [0, 0, 0, 1, 1, 1], [0], [0]>} : vector<1x8x8xf32>, vector<1x8x8xf32>, vector<1x8x8xf32> -> vector<1x8x8xf32>
    "tpu.trace_stop"() : () -> ()
    %cst_236 = arith.constant 0.353553385 : f32
    %583 = vector.broadcast %cst_236 : f32 to vector<1x8x8xf32>
    %584 = arith.mulf %582, %583 : vector<1x8x8xf32>
    %cst_237 = arith.constant dense<0xFF800000> : vector<1x8xf32>
    %585 = vector.multi_reduction <maximumf>, %584, %cst_237 [2] : vector<1x8x8xf32> to vector<1x8xf32>
    %586 = vector.shape_cast %585 : vector<1x8xf32> to vector<1x8x1xf32>
    %587 = vector.broadcast %586 : vector<1x8x1xf32> to vector<1x8x8xf32>
    %588 = arith.subf %584, %587 : vector<1x8x8xf32>
    %589 = math.exp %588 : vector<1x8x8xf32>
    %cst_238 = arith.constant dense<0.000000e+00> : vector<1x8xf32>
    %590 = vector.multi_reduction <add>, %589, %cst_238 [2] : vector<1x8x8xf32> to vector<1x8xf32>
    %591 = vector.shape_cast %590 : vector<1x8xf32> to vector<1x8x1xf32>
    %592 = tpu.reciprocal %591 {approx = true} : vector<1x8x1xf32> -> vector<1x8x1xf32>
    %593 = vector.broadcast %592 : vector<1x8x1xf32> to vector<1x8x8xf32>
    %594 = arith.mulf %589, %593 : vector<1x8x8xf32>
    "tpu.trace_start"() <{level = 10 : i32, message = "bqk,bkd->bqd"}> : () -> ()
    %cst_239 = arith.constant dense<0.000000e+00> : vector<1x8x8xf32>
    %595 = tpu.matmul %594, %581, %cst_239 {dimension_numbers = #tpu.dot_dimension_numbers<[2], [1], [1], [2], [0, 0, 0, 1, 1, 2], [0], [0]>} : vector<1x8x8xf32>, vector<1x8x8xf32>, vector<1x8x8xf32> -> vector<1x8x8xf32>
    "tpu.trace_stop"() : () -> ()
    %596 = tpu.concatenate %544, %561, %578, %595 in 2 : vector<1x8x8xf32>, vector<1x8x8xf32>, vector<1x8x8xf32>, vector<1x8x8xf32> -> vector<1x8x32xf32>
    %c1_240 = arith.constant 1 : index
    %c0_241 = arith.constant 0 : index
    %c224_242 = arith.constant 224 : index
    %597 = vector.load %arg4[%c1_240, %c0_241, %c224_242] : memref<2x32x456xf32, #tpu.memory_space<vmem>>, vector<1x32x32xf32>
    %598 = vector.shape_cast %597 : vector<1x32x32xf32> to vector<32x32xf32>
    %c1_243 = arith.constant 1 : index
    %c0_244 = arith.constant 0 : index
    %c224_245 = arith.constant 224 : index
    %599 = vector.load %arg7[%c1_243, %c0_244, %c224_245] : memref<2x1x624xf32, #tpu.memory_space<vmem>>, vector<1x1x32xf32>
    %600 = vector.shape_cast %599 : vector<1x1x32xf32> to vector<1x32xf32>
    %601 = vector.shape_cast %596 : vector<1x8x32xf32> to vector<8x32xf32>
    %cst_246 = arith.constant dense<0.000000e+00> : vector<8x32xf32>
    %602 = tpu.matmul %601, %598, %cst_246 {dimension_numbers = #tpu.dot_dimension_numbers<[1], [0], [0], [1], [0, 0, 1, 1], [], []>} : vector<8x32xf32>, vector<32x32xf32>, vector<8x32xf32> -> vector<8x32xf32>
    %603 = vector.broadcast %600 : vector<1x32xf32> to vector<8x32xf32>
    %604 = arith.addf %602, %603 : vector<8x32xf32>
    %605 = vector.shape_cast %604 : vector<8x32xf32> to vector<1x8x32xf32>
    %606 = arith.addf %474, %605 : vector<1x8x32xf32>
    %c1_247 = arith.constant 1 : index
    %c0_248 = arith.constant 0 : index
    %c64_249 = arith.constant 64 : index
    %607 = vector.load %arg4[%c1_247, %c0_248, %c64_249] : memref<2x32x456xf32, #tpu.memory_space<vmem>>, vector<1x32x64xf32>
    %608 = vector.shape_cast %607 : vector<1x32x64xf32> to vector<32x64xf32>
    %cst_250 = arith.constant dense<0.000000e+00> : vector<1x64xf32>
    %609 = tpu.matmul %23, %608, %cst_250 {dimension_numbers = #tpu.dot_dimension_numbers<[1], [0], [0], [1], [0, 0, 1, 1], [], []>} : vector<1x32xf32>, vector<32x64xf32>, vector<1x64xf32> -> vector<1x64xf32>
    %c1_251 = arith.constant 1 : index
    %c0_252 = arith.constant 0 : index
    %c64_253 = arith.constant 64 : index
    %610 = vector.load %arg7[%c1_251, %c0_252, %c64_253] : memref<2x1x624xf32, #tpu.memory_space<vmem>>, vector<1x1x64xf32>
    %611 = vector.shape_cast %610 : vector<1x1x64xf32> to vector<1x64xf32>
    %612 = arith.addf %609, %611 : vector<1x64xf32>
    %cst_254 = arith.constant dense<0.000000e+00> : vector<1x8xf32>
    %613 = vector.multi_reduction <add>, %606, %cst_254 [2] : vector<1x8x32xf32> to vector<1x8xf32>
    %614 = vector.shape_cast %613 : vector<1x8xf32> to vector<1x8x1xf32>
    %cst_255 = arith.constant 3.200000e+01 : f32
    %615 = vector.broadcast %cst_255 : f32 to vector<1x8x1xf32>
    %616 = arith.divf %614, %615 : vector<1x8x1xf32>
    %617 = vector.broadcast %616 : vector<1x8x1xf32> to vector<1x8x32xf32>
    %618 = arith.subf %606, %617 : vector<1x8x32xf32>
    %619 = arith.mulf %618, %618 : vector<1x8x32xf32>
    %cst_256 = arith.constant dense<0.000000e+00> : vector<1x8xf32>
    %620 = vector.multi_reduction <add>, %619, %cst_256 [2] : vector<1x8x32xf32> to vector<1x8xf32>
    %621 = vector.shape_cast %620 : vector<1x8xf32> to vector<1x8x1xf32>
    %cst_257 = arith.constant 3.200000e+01 : f32
    %622 = vector.broadcast %cst_257 : f32 to vector<1x8x1xf32>
    %623 = arith.divf %621, %622 : vector<1x8x1xf32>
    %624 = vector.broadcast %616 : vector<1x8x1xf32> to vector<1x8x32xf32>
    %625 = arith.subf %606, %624 : vector<1x8x32xf32>
    %cst_258 = arith.constant 9.99999974E-6 : f32
    %626 = vector.broadcast %cst_258 : f32 to vector<1x8x1xf32>
    %627 = arith.addf %623, %626 : vector<1x8x1xf32>
    %628 = math.rsqrt %627 : vector<1x8x1xf32>
    %629 = vector.broadcast %628 : vector<1x8x1xf32> to vector<1x8x32xf32>
    %630 = arith.mulf %625, %629 : vector<1x8x32xf32>
    %631 = vector.extract_strided_slice %612 {offsets = [0, 0], sizes = [1, 32], strides = [1, 1]} : vector<1x64xf32> to vector<1x32xf32>
    %632 = vector.shape_cast %631 : vector<1x32xf32> to vector<1x1x32xf32>
    %cst_259 = arith.constant 1.000000e+00 : f32
    %633 = vector.broadcast %cst_259 : f32 to vector<1x1x32xf32>
    %634 = arith.addf %633, %632 : vector<1x1x32xf32>
    %635 = vector.broadcast %634 : vector<1x1x32xf32> to vector<1x8x32xf32>
    %636 = arith.mulf %630, %635 : vector<1x8x32xf32>
    %637 = vector.extract_strided_slice %612 {offsets = [0, 32], sizes = [1, 32], strides = [1, 1]} : vector<1x64xf32> to vector<1x32xf32>
    %638 = vector.shape_cast %637 : vector<1x32xf32> to vector<1x1x32xf32>
    %639 = vector.broadcast %638 : vector<1x1x32xf32> to vector<1x8x32xf32>
    %640 = arith.addf %636, %639 : vector<1x8x32xf32>
    %c1_260 = arith.constant 1 : index
    %c0_261 = arith.constant 0 : index
    %c256_262 = arith.constant 256 : index
    %641 = vector.load %arg4[%c1_260, %c0_261, %c256_262] : memref<2x32x456xf32, #tpu.memory_space<vmem>>, vector<1x32x32xf32>
    %642 = vector.shape_cast %641 : vector<1x32x32xf32> to vector<32x32xf32>
    %c1_263 = arith.constant 1 : index
    %c0_264 = arith.constant 0 : index
    %c256_265 = arith.constant 256 : index
    %643 = vector.load %arg7[%c1_263, %c0_264, %c256_265] : memref<2x1x624xf32, #tpu.memory_space<vmem>>, vector<1x1x32xf32>
    %644 = vector.shape_cast %643 : vector<1x1x32xf32> to vector<1x32xf32>
    %645 = vector.shape_cast %640 : vector<1x8x32xf32> to vector<8x32xf32>
    %cst_266 = arith.constant dense<0.000000e+00> : vector<8x32xf32>
    %646 = tpu.matmul %645, %642, %cst_266 {dimension_numbers = #tpu.dot_dimension_numbers<[1], [0], [0], [1], [0, 0, 1, 1], [], []>} : vector<8x32xf32>, vector<32x32xf32>, vector<8x32xf32> -> vector<8x32xf32>
    %647 = vector.broadcast %644 : vector<1x32xf32> to vector<8x32xf32>
    %648 = arith.addf %646, %647 : vector<8x32xf32>
    %649 = vector.shape_cast %648 : vector<8x32xf32> to vector<1x8x32xf32>
    %c1_267 = arith.constant 1 : index
    %c0_268 = arith.constant 0 : index
    %c0_269 = arith.constant 0 : index
    %650 = vector.load %arg5[%c1_267, %c0_268, %c0_269] : memref<2x16x64xf32, #tpu.memory_space<vmem>>, vector<1x16x64xf32>
    %651 = vector.shape_cast %650 : vector<1x16x64xf32> to vector<16x64xf32>
    %cst_270 = arith.constant dense<0.000000e+00> : vector<4x64xf32>
    %652 = tpu.matmul %2, %651, %cst_270 {dimension_numbers = #tpu.dot_dimension_numbers<[1], [0], [0], [1], [0, 0, 1, 1], [], []>} : vector<4x16xf32>, vector<16x64xf32>, vector<4x64xf32> -> vector<4x64xf32>
    %c1_271 = arith.constant 1 : index
    %c0_272 = arith.constant 0 : index
    %c288_273 = arith.constant 288 : index
    %653 = vector.load %arg7[%c1_271, %c0_272, %c288_273] : memref<2x1x624xf32, #tpu.memory_space<vmem>>, vector<1x1x64xf32>
    %654 = vector.shape_cast %653 : vector<1x1x64xf32> to vector<1x64xf32>
    %655 = vector.broadcast %654 : vector<1x64xf32> to vector<4x64xf32>
    %656 = arith.addf %652, %655 : vector<4x64xf32>
    %657 = vector.shape_cast %656 : vector<4x64xf32> to vector<1x4x64xf32>
    %658 = vector.extract_strided_slice %657 {offsets = [0, 0, 0], sizes = [1, 4, 32], strides = [1, 1, 1]} : vector<1x4x64xf32> to vector<1x4x32xf32>
    %659 = vector.extract_strided_slice %657 {offsets = [0, 0, 32], sizes = [1, 4, 32], strides = [1, 1, 1]} : vector<1x4x64xf32> to vector<1x4x32xf32>
    %660 = vector.extract_strided_slice %649 {offsets = [0, 0, 0], sizes = [1, 8, 8], strides = [1, 1, 1]} : vector<1x8x32xf32> to vector<1x8x8xf32>
    %661 = vector.extract_strided_slice %658 {offsets = [0, 0, 0], sizes = [1, 4, 8], strides = [1, 1, 1]} : vector<1x4x32xf32> to vector<1x4x8xf32>
    %662 = vector.extract_strided_slice %659 {offsets = [0, 0, 0], sizes = [1, 4, 8], strides = [1, 1, 1]} : vector<1x4x32xf32> to vector<1x4x8xf32>
    "tpu.trace_start"() <{level = 10 : i32, message = "bqd,bkd->bqk"}> : () -> ()
    %cst_274 = arith.constant dense<0.000000e+00> : vector<1x8x4xf32>
    %663 = tpu.matmul %660, %661, %cst_274 {dimension_numbers = #tpu.dot_dimension_numbers<[2], [2], [1], [1], [0, 0, 0, 1, 1, 1], [0], [0]>} : vector<1x8x8xf32>, vector<1x4x8xf32>, vector<1x8x4xf32> -> vector<1x8x4xf32>
    "tpu.trace_stop"() : () -> ()
    %cst_275 = arith.constant 0.353553385 : f32
    %664 = vector.broadcast %cst_275 : f32 to vector<1x8x4xf32>
    %665 = arith.mulf %663, %664 : vector<1x8x4xf32>
    %cst_276 = arith.constant dense<0xFF800000> : vector<1x8xf32>
    %666 = vector.multi_reduction <maximumf>, %665, %cst_276 [2] : vector<1x8x4xf32> to vector<1x8xf32>
    %667 = vector.shape_cast %666 : vector<1x8xf32> to vector<1x8x1xf32>
    %668 = vector.broadcast %667 : vector<1x8x1xf32> to vector<1x8x4xf32>
    %669 = arith.subf %665, %668 : vector<1x8x4xf32>
    %670 = math.exp %669 : vector<1x8x4xf32>
    %cst_277 = arith.constant dense<0.000000e+00> : vector<1x8xf32>
    %671 = vector.multi_reduction <add>, %670, %cst_277 [2] : vector<1x8x4xf32> to vector<1x8xf32>
    %672 = vector.shape_cast %671 : vector<1x8xf32> to vector<1x8x1xf32>
    %673 = tpu.reciprocal %672 {approx = true} : vector<1x8x1xf32> -> vector<1x8x1xf32>
    %674 = vector.broadcast %673 : vector<1x8x1xf32> to vector<1x8x4xf32>
    %675 = arith.mulf %670, %674 : vector<1x8x4xf32>
    "tpu.trace_start"() <{level = 10 : i32, message = "bqk,bkd->bqd"}> : () -> ()
    %cst_278 = arith.constant dense<0.000000e+00> : vector<1x8x8xf32>
    %676 = tpu.matmul %675, %662, %cst_278 {dimension_numbers = #tpu.dot_dimension_numbers<[2], [1], [1], [2], [0, 0, 0, 1, 1, 2], [0], [0]>} : vector<1x8x4xf32>, vector<1x4x8xf32>, vector<1x8x8xf32> -> vector<1x8x8xf32>
    "tpu.trace_stop"() : () -> ()
    %677 = vector.extract_strided_slice %649 {offsets = [0, 0, 8], sizes = [1, 8, 8], strides = [1, 1, 1]} : vector<1x8x32xf32> to vector<1x8x8xf32>
    %678 = vector.extract_strided_slice %658 {offsets = [0, 0, 8], sizes = [1, 4, 8], strides = [1, 1, 1]} : vector<1x4x32xf32> to vector<1x4x8xf32>
    %679 = vector.extract_strided_slice %659 {offsets = [0, 0, 8], sizes = [1, 4, 8], strides = [1, 1, 1]} : vector<1x4x32xf32> to vector<1x4x8xf32>
    "tpu.trace_start"() <{level = 10 : i32, message = "bqd,bkd->bqk"}> : () -> ()
    %cst_279 = arith.constant dense<0.000000e+00> : vector<1x8x4xf32>
    %680 = tpu.matmul %677, %678, %cst_279 {dimension_numbers = #tpu.dot_dimension_numbers<[2], [2], [1], [1], [0, 0, 0, 1, 1, 1], [0], [0]>} : vector<1x8x8xf32>, vector<1x4x8xf32>, vector<1x8x4xf32> -> vector<1x8x4xf32>
    "tpu.trace_stop"() : () -> ()
    %cst_280 = arith.constant 0.353553385 : f32
    %681 = vector.broadcast %cst_280 : f32 to vector<1x8x4xf32>
    %682 = arith.mulf %680, %681 : vector<1x8x4xf32>
    %cst_281 = arith.constant dense<0xFF800000> : vector<1x8xf32>
    %683 = vector.multi_reduction <maximumf>, %682, %cst_281 [2] : vector<1x8x4xf32> to vector<1x8xf32>
    %684 = vector.shape_cast %683 : vector<1x8xf32> to vector<1x8x1xf32>
    %685 = vector.broadcast %684 : vector<1x8x1xf32> to vector<1x8x4xf32>
    %686 = arith.subf %682, %685 : vector<1x8x4xf32>
    %687 = math.exp %686 : vector<1x8x4xf32>
    %cst_282 = arith.constant dense<0.000000e+00> : vector<1x8xf32>
    %688 = vector.multi_reduction <add>, %687, %cst_282 [2] : vector<1x8x4xf32> to vector<1x8xf32>
    %689 = vector.shape_cast %688 : vector<1x8xf32> to vector<1x8x1xf32>
    %690 = tpu.reciprocal %689 {approx = true} : vector<1x8x1xf32> -> vector<1x8x1xf32>
    %691 = vector.broadcast %690 : vector<1x8x1xf32> to vector<1x8x4xf32>
    %692 = arith.mulf %687, %691 : vector<1x8x4xf32>
    "tpu.trace_start"() <{level = 10 : i32, message = "bqk,bkd->bqd"}> : () -> ()
    %cst_283 = arith.constant dense<0.000000e+00> : vector<1x8x8xf32>
    %693 = tpu.matmul %692, %679, %cst_283 {dimension_numbers = #tpu.dot_dimension_numbers<[2], [1], [1], [2], [0, 0, 0, 1, 1, 2], [0], [0]>} : vector<1x8x4xf32>, vector<1x4x8xf32>, vector<1x8x8xf32> -> vector<1x8x8xf32>
    "tpu.trace_stop"() : () -> ()
    %694 = vector.extract_strided_slice %649 {offsets = [0, 0, 16], sizes = [1, 8, 8], strides = [1, 1, 1]} : vector<1x8x32xf32> to vector<1x8x8xf32>
    %695 = vector.extract_strided_slice %658 {offsets = [0, 0, 16], sizes = [1, 4, 8], strides = [1, 1, 1]} : vector<1x4x32xf32> to vector<1x4x8xf32>
    %696 = vector.extract_strided_slice %659 {offsets = [0, 0, 16], sizes = [1, 4, 8], strides = [1, 1, 1]} : vector<1x4x32xf32> to vector<1x4x8xf32>
    "tpu.trace_start"() <{level = 10 : i32, message = "bqd,bkd->bqk"}> : () -> ()
    %cst_284 = arith.constant dense<0.000000e+00> : vector<1x8x4xf32>
    %697 = tpu.matmul %694, %695, %cst_284 {dimension_numbers = #tpu.dot_dimension_numbers<[2], [2], [1], [1], [0, 0, 0, 1, 1, 1], [0], [0]>} : vector<1x8x8xf32>, vector<1x4x8xf32>, vector<1x8x4xf32> -> vector<1x8x4xf32>
    "tpu.trace_stop"() : () -> ()
    %cst_285 = arith.constant 0.353553385 : f32
    %698 = vector.broadcast %cst_285 : f32 to vector<1x8x4xf32>
    %699 = arith.mulf %697, %698 : vector<1x8x4xf32>
    %cst_286 = arith.constant dense<0xFF800000> : vector<1x8xf32>
    %700 = vector.multi_reduction <maximumf>, %699, %cst_286 [2] : vector<1x8x4xf32> to vector<1x8xf32>
    %701 = vector.shape_cast %700 : vector<1x8xf32> to vector<1x8x1xf32>
    %702 = vector.broadcast %701 : vector<1x8x1xf32> to vector<1x8x4xf32>
    %703 = arith.subf %699, %702 : vector<1x8x4xf32>
    %704 = math.exp %703 : vector<1x8x4xf32>
    %cst_287 = arith.constant dense<0.000000e+00> : vector<1x8xf32>
    %705 = vector.multi_reduction <add>, %704, %cst_287 [2] : vector<1x8x4xf32> to vector<1x8xf32>
    %706 = vector.shape_cast %705 : vector<1x8xf32> to vector<1x8x1xf32>
    %707 = tpu.reciprocal %706 {approx = true} : vector<1x8x1xf32> -> vector<1x8x1xf32>
    %708 = vector.broadcast %707 : vector<1x8x1xf32> to vector<1x8x4xf32>
    %709 = arith.mulf %704, %708 : vector<1x8x4xf32>
    "tpu.trace_start"() <{level = 10 : i32, message = "bqk,bkd->bqd"}> : () -> ()
    %cst_288 = arith.constant dense<0.000000e+00> : vector<1x8x8xf32>
    %710 = tpu.matmul %709, %696, %cst_288 {dimension_numbers = #tpu.dot_dimension_numbers<[2], [1], [1], [2], [0, 0, 0, 1, 1, 2], [0], [0]>} : vector<1x8x4xf32>, vector<1x4x8xf32>, vector<1x8x8xf32> -> vector<1x8x8xf32>
    "tpu.trace_stop"() : () -> ()
    %711 = vector.extract_strided_slice %649 {offsets = [0, 0, 24], sizes = [1, 8, 8], strides = [1, 1, 1]} : vector<1x8x32xf32> to vector<1x8x8xf32>
    %712 = vector.extract_strided_slice %658 {offsets = [0, 0, 24], sizes = [1, 4, 8], strides = [1, 1, 1]} : vector<1x4x32xf32> to vector<1x4x8xf32>
    %713 = vector.extract_strided_slice %659 {offsets = [0, 0, 24], sizes = [1, 4, 8], strides = [1, 1, 1]} : vector<1x4x32xf32> to vector<1x4x8xf32>
    "tpu.trace_start"() <{level = 10 : i32, message = "bqd,bkd->bqk"}> : () -> ()
    %cst_289 = arith.constant dense<0.000000e+00> : vector<1x8x4xf32>
    %714 = tpu.matmul %711, %712, %cst_289 {dimension_numbers = #tpu.dot_dimension_numbers<[2], [2], [1], [1], [0, 0, 0, 1, 1, 1], [0], [0]>} : vector<1x8x8xf32>, vector<1x4x8xf32>, vector<1x8x4xf32> -> vector<1x8x4xf32>
    "tpu.trace_stop"() : () -> ()
    %cst_290 = arith.constant 0.353553385 : f32
    %715 = vector.broadcast %cst_290 : f32 to vector<1x8x4xf32>
    %716 = arith.mulf %714, %715 : vector<1x8x4xf32>
    %cst_291 = arith.constant dense<0xFF800000> : vector<1x8xf32>
    %717 = vector.multi_reduction <maximumf>, %716, %cst_291 [2] : vector<1x8x4xf32> to vector<1x8xf32>
    %718 = vector.shape_cast %717 : vector<1x8xf32> to vector<1x8x1xf32>
    %719 = vector.broadcast %718 : vector<1x8x1xf32> to vector<1x8x4xf32>
    %720 = arith.subf %716, %719 : vector<1x8x4xf32>
    %721 = math.exp %720 : vector<1x8x4xf32>
    %cst_292 = arith.constant dense<0.000000e+00> : vector<1x8xf32>
    %722 = vector.multi_reduction <add>, %721, %cst_292 [2] : vector<1x8x4xf32> to vector<1x8xf32>
    %723 = vector.shape_cast %722 : vector<1x8xf32> to vector<1x8x1xf32>
    %724 = tpu.reciprocal %723 {approx = true} : vector<1x8x1xf32> -> vector<1x8x1xf32>
    %725 = vector.broadcast %724 : vector<1x8x1xf32> to vector<1x8x4xf32>
    %726 = arith.mulf %721, %725 : vector<1x8x4xf32>
    "tpu.trace_start"() <{level = 10 : i32, message = "bqk,bkd->bqd"}> : () -> ()
    %cst_293 = arith.constant dense<0.000000e+00> : vector<1x8x8xf32>
    %727 = tpu.matmul %726, %713, %cst_293 {dimension_numbers = #tpu.dot_dimension_numbers<[2], [1], [1], [2], [0, 0, 0, 1, 1, 2], [0], [0]>} : vector<1x8x4xf32>, vector<1x4x8xf32>, vector<1x8x8xf32> -> vector<1x8x8xf32>
    "tpu.trace_stop"() : () -> ()
    %728 = tpu.concatenate %676, %693, %710, %727 in 2 : vector<1x8x8xf32>, vector<1x8x8xf32>, vector<1x8x8xf32>, vector<1x8x8xf32> -> vector<1x8x32xf32>
    %c1_294 = arith.constant 1 : index
    %c0_295 = arith.constant 0 : index
    %c288_296 = arith.constant 288 : index
    %729 = vector.load %arg4[%c1_294, %c0_295, %c288_296] : memref<2x32x456xf32, #tpu.memory_space<vmem>>, vector<1x32x32xf32>
    %730 = vector.shape_cast %729 : vector<1x32x32xf32> to vector<32x32xf32>
    %c1_297 = arith.constant 1 : index
    %c0_298 = arith.constant 0 : index
    %c352_299 = arith.constant 352 : index
    %731 = vector.load %arg7[%c1_297, %c0_298, %c352_299] : memref<2x1x624xf32, #tpu.memory_space<vmem>>, vector<1x1x32xf32>
    %732 = vector.shape_cast %731 : vector<1x1x32xf32> to vector<1x32xf32>
    %733 = vector.shape_cast %728 : vector<1x8x32xf32> to vector<8x32xf32>
    %cst_300 = arith.constant dense<0.000000e+00> : vector<8x32xf32>
    %734 = tpu.matmul %733, %730, %cst_300 {dimension_numbers = #tpu.dot_dimension_numbers<[1], [0], [0], [1], [0, 0, 1, 1], [], []>} : vector<8x32xf32>, vector<32x32xf32>, vector<8x32xf32> -> vector<8x32xf32>
    %735 = vector.broadcast %732 : vector<1x32xf32> to vector<8x32xf32>
    %736 = arith.addf %734, %735 : vector<8x32xf32>
    %737 = vector.shape_cast %736 : vector<8x32xf32> to vector<1x8x32xf32>
    %738 = arith.addf %606, %737 : vector<1x8x32xf32>
    %c1_301 = arith.constant 1 : index
    %c0_302 = arith.constant 0 : index
    %c616_303 = arith.constant 616 : index
    %739 = vector.load %arg7[%c1_301, %c0_302, %c616_303] : memref<2x1x624xf32, #tpu.memory_space<vmem>>, vector<1x1x8xf32>
    %740 = vector.shape_cast %739 : vector<1x1x8xf32> to vector<1x8xf32>
    %741 = vector.shape_cast %738 : vector<1x8x32xf32> to vector<8x32xf32>
    %c1_304 = arith.constant 1 : index
    %c0_305 = arith.constant 0 : index
    %c0_306 = arith.constant 0 : index
    %742 = vector.load %arg8[%c1_304, %c0_305, %c0_306] : memref<2x20x8xf32, #tpu.memory_space<vmem>>, vector<1x16x8xf32>
    %743 = vector.shape_cast %742 : vector<1x16x8xf32> to vector<16x8xf32>
    %cst_307 = arith.constant dense<0.000000e+00> : vector<16x32xf32>
    %744 = tpu.matmul %743, %741, %cst_307 {dimension_numbers = #tpu.dot_dimension_numbers<[1], [0], [0], [1], [0, 0, 1, 1], [], []>} : vector<16x8xf32>, vector<8x32xf32>, vector<16x32xf32> -> vector<16x32xf32>
    %c1_308 = arith.constant 1 : index
    %c0_309 = arith.constant 0 : index
    %c0_310 = arith.constant 0 : index
    %745 = vector.load %arg11[%c1_308, %c0_309, %c0_310] : memref<2x23x1xf32, #tpu.memory_space<vmem>>, vector<1x16x1xf32>
    %746 = vector.shape_cast %745 : vector<1x16x1xf32> to vector<16x1xf32>
    %747 = vector.broadcast %746 : vector<16x1xf32> to vector<16x32xf32>
    %748 = arith.addf %744, %747 : vector<16x32xf32>
    %749 = vector.extract_strided_slice %748 {offsets = [0, 0], sizes = [8, 32], strides = [1, 1]} : vector<16x32xf32> to vector<8x32xf32>
    %750 = vector.extract_strided_slice %749 {offsets = [0, 0], sizes = [8, 31], strides = [1, 1]} : vector<8x32xf32> to vector<8x31xf32>
    %751 = tpu.concatenate %38, %750 in 1 : vector<8x1xf32>, vector<8x31xf32> -> vector<8x32xf32>
    %752 = vector.extract_strided_slice %749 {offsets = [0, 1], sizes = [8, 31], strides = [1, 1]} : vector<8x32xf32> to vector<8x31xf32>
    %753 = tpu.concatenate %752, %38 in 1 : vector<8x31xf32>, vector<8x1xf32> -> vector<8x32xf32>
    %754 = tpu.concatenate %751, %749, %753 in 0 : vector<8x32xf32>, vector<8x32xf32>, vector<8x32xf32> -> vector<24x32xf32>
    %c1_311 = arith.constant 1 : index
    %c0_312 = arith.constant 0 : index
    %c0_313 = arith.constant 0 : index
    %755 = vector.load %arg9[%c1_311, %c0_312, %c0_313] : memref<2x3x24xf32, #tpu.memory_space<vmem>>, vector<1x3x24xf32>
    %756 = vector.shape_cast %755 : vector<1x3x24xf32> to vector<3x24xf32>
    %cst_314 = arith.constant dense<0.000000e+00> : vector<3x32xf32>
    %757 = tpu.matmul %756, %754, %cst_314 {dimension_numbers = #tpu.dot_dimension_numbers<[1], [0], [0], [1], [0, 0, 1, 1], [], []>} : vector<3x24xf32>, vector<24x32xf32>, vector<3x32xf32> -> vector<3x32xf32>
    %c1_315 = arith.constant 1 : index
    %c16_316 = arith.constant 16 : index
    %c0_317 = arith.constant 0 : index
    %758 = vector.load %arg11[%c1_315, %c16_316, %c0_317] : memref<2x23x1xf32, #tpu.memory_space<vmem>>, vector<1x3x1xf32>
    %759 = vector.shape_cast %758 : vector<1x3x1xf32> to vector<3x1xf32>
    %760 = vector.broadcast %759 : vector<3x1xf32> to vector<3x32xf32>
    %761 = arith.addf %757, %760 : vector<3x32xf32>
    %cst_318 = arith.constant 5.000000e-01 : f32
    %762 = vector.broadcast %cst_318 : f32 to vector<3x32xf32>
    %763 = arith.mulf %762, %761 : vector<3x32xf32>
    %cst_319 = arith.constant 0.707106769 : f32
    %764 = vector.broadcast %cst_319 : f32 to vector<3x32xf32>
    %765 = arith.mulf %761, %764 : vector<3x32xf32>
    %766 = math.absf %765 : vector<3x32xf32>
    %cst_320 = arith.constant 0.327591091 : f32
    %767 = vector.broadcast %cst_320 : f32 to vector<3x32xf32>
    %768 = arith.mulf %767, %766 : vector<3x32xf32>
    %cst_321 = arith.constant 1.000000e+00 : f32
    %769 = vector.broadcast %cst_321 : f32 to vector<3x32xf32>
    %770 = arith.addf %769, %768 : vector<3x32xf32>
    %cst_322 = arith.constant 1.000000e+00 : f32
    %771 = vector.broadcast %cst_322 : f32 to vector<3x32xf32>
    %772 = arith.divf %771, %770 : vector<3x32xf32>
    %cst_323 = arith.constant 1.06140542 : f32
    %773 = vector.broadcast %cst_323 : f32 to vector<3x32xf32>
    %774 = arith.mulf %773, %772 : vector<3x32xf32>
    %cst_324 = arith.constant 1.45315206 : f32
    %775 = vector.broadcast %cst_324 : f32 to vector<3x32xf32>
    %776 = arith.subf %774, %775 : vector<3x32xf32>
    %777 = arith.mulf %776, %772 : vector<3x32xf32>
    %cst_325 = arith.constant 1.42141378 : f32
    %778 = vector.broadcast %cst_325 : f32 to vector<3x32xf32>
    %779 = arith.addf %777, %778 : vector<3x32xf32>
    %780 = arith.mulf %779, %772 : vector<3x32xf32>
    %cst_326 = arith.constant 0.284496725 : f32
    %781 = vector.broadcast %cst_326 : f32 to vector<3x32xf32>
    %782 = arith.subf %780, %781 : vector<3x32xf32>
    %783 = arith.mulf %782, %772 : vector<3x32xf32>
    %cst_327 = arith.constant 0.254829586 : f32
    %784 = vector.broadcast %cst_327 : f32 to vector<3x32xf32>
    %785 = arith.addf %783, %784 : vector<3x32xf32>
    %786 = arith.mulf %785, %772 : vector<3x32xf32>
    %cst_328 = arith.constant 0.000000e+00 : f32
    %787 = vector.broadcast %cst_328 : f32 to vector<3x32xf32>
    %788 = arith.subf %787, %766 : vector<3x32xf32>
    %789 = arith.mulf %788, %766 : vector<3x32xf32>
    %790 = math.exp %789 : vector<3x32xf32>
    %791 = arith.mulf %786, %790 : vector<3x32xf32>
    %cst_329 = arith.constant 1.000000e+00 : f32
    %792 = vector.broadcast %cst_329 : f32 to vector<3x32xf32>
    %793 = arith.subf %792, %791 : vector<3x32xf32>
    %cst_330 = arith.constant 0.000000e+00 : f32
    %794 = vector.broadcast %cst_330 : f32 to vector<3x32xf32>
    %795 = arith.cmpf oge, %765, %794 : vector<3x32xf32>
    %cst_331 = arith.constant 0.000000e+00 : f32
    %796 = vector.broadcast %cst_331 : f32 to vector<3x32xf32>
    %797 = arith.subf %796, %793 : vector<3x32xf32>
    %798 = arith.select %795, %793, %797 : vector<3x32xi1>, vector<3x32xf32>
    %cst_332 = arith.constant 1.000000e+00 : f32
    %799 = vector.broadcast %cst_332 : f32 to vector<3x32xf32>
    %800 = arith.addf %799, %798 : vector<3x32xf32>
    %801 = arith.mulf %763, %800 : vector<3x32xf32>
    %cst_333 = arith.constant dense<0.000000e+00> : vector<3x32xf32>
    %802 = tpu.matmul %32, %801, %cst_333 {dimension_numbers = #tpu.dot_dimension_numbers<[1], [0], [0], [1], [0, 0, 1, 1], [], []>} : vector<3x3xf32>, vector<3x32xf32>, vector<3x32xf32> -> vector<3x32xf32>
    %cst_334 = arith.constant dense<0.000000e+00> : vector<3x32xf32>
    %803 = tpu.matmul %37, %801, %cst_334 {dimension_numbers = #tpu.dot_dimension_numbers<[1], [0], [0], [1], [0, 0, 1, 1], [], []>} : vector<3x3xf32>, vector<3x32xf32>, vector<3x32xf32> -> vector<3x32xf32>
    %804 = tpu.concatenate %802, %801, %803 in 1 : vector<3x32xf32>, vector<3x32xf32>, vector<3x32xf32> -> vector<3x96xf32>
    %c1_335 = arith.constant 1 : index
    %c0_336 = arith.constant 0 : index
    %c0_337 = arith.constant 0 : index
    %805 = vector.load %arg10[%c1_335, %c0_336, %c0_337] : memref<2x96x8xf32, #tpu.memory_space<vmem>>, vector<1x96x8xf32>
    %806 = vector.shape_cast %805 : vector<1x96x8xf32> to vector<96x8xf32>
    %cst_338 = arith.constant dense<0.000000e+00> : vector<3x8xf32>
    %807 = tpu.matmul %804, %806, %cst_338 {dimension_numbers = #tpu.dot_dimension_numbers<[1], [0], [0], [1], [0, 0, 1, 1], [], []>} : vector<3x96xf32>, vector<96x8xf32>, vector<3x8xf32> -> vector<3x8xf32>
    %808 = vector.broadcast %740 : vector<1x8xf32> to vector<3x8xf32>
    %809 = arith.addf %807, %808 : vector<3x8xf32>
    %cst_339 = arith.constant dense<0.000000e+00> : vector<8x8xf32>
    %810 = tpu.matmul %24, %809, %cst_339 {dimension_numbers = #tpu.dot_dimension_numbers<[1], [0], [0], [1], [0, 0, 1, 1], [], []>} : vector<8x3xf32>, vector<3x8xf32>, vector<8x8xf32> -> vector<8x8xf32>
    %c1_340 = arith.constant 1 : index
    %c16_341 = arith.constant 16 : index
    %c0_342 = arith.constant 0 : index
    %811 = vector.load %arg8[%c1_340, %c16_341, %c0_342] : memref<2x20x8xf32, #tpu.memory_space<vmem>>, vector<1x4x8xf32>
    %812 = vector.shape_cast %811 : vector<1x4x8xf32> to vector<4x8xf32>
    %cst_343 = arith.constant dense<0.000000e+00> : vector<4x32xf32>
    %813 = tpu.matmul %812, %741, %cst_343 {dimension_numbers = #tpu.dot_dimension_numbers<[1], [0], [0], [1], [0, 0, 1, 1], [], []>} : vector<4x8xf32>, vector<8x32xf32>, vector<4x32xf32> -> vector<4x32xf32>
    %c1_344 = arith.constant 1 : index
    %c19_345 = arith.constant 19 : index
    %c0_346 = arith.constant 0 : index
    %814 = vector.load %arg11[%c1_344, %c19_345, %c0_346] : memref<2x23x1xf32, #tpu.memory_space<vmem>>, vector<1x4x1xf32>
    %815 = vector.shape_cast %814 : vector<1x4x1xf32> to vector<4x1xf32>
    %816 = vector.broadcast %815 : vector<4x1xf32> to vector<4x32xf32>
    %817 = arith.addf %813, %816 : vector<4x32xf32>
    %cst_347 = arith.constant dense<0.000000e+00> : vector<8x32xf32>
    %818 = tpu.matmul %25, %817, %cst_347 {dimension_numbers = #tpu.dot_dimension_numbers<[1], [0], [0], [1], [0, 0, 1, 1], [], []>} : vector<8x4xf32>, vector<4x32xf32>, vector<8x32xf32> -> vector<8x32xf32>
    %819 = vector.shape_cast %810 : vector<8x8xf32> to vector<1x8x8xf32>
    %820 = arith.addf %379, %819 : vector<1x8x8xf32>
    %821 = vector.shape_cast %818 : vector<8x32xf32> to vector<1x8x32xf32>
    %822 = arith.addf %381, %821 : vector<1x8x32xf32>
    %cst_348 = arith.constant dense<0.000000e+00> : vector<1x8xf32>
    %823 = vector.multi_reduction <add>, %738, %cst_348 [2] : vector<1x8x32xf32> to vector<1x8xf32>
    %824 = vector.shape_cast %823 : vector<1x8xf32> to vector<1x8x1xf32>
    %cst_349 = arith.constant 3.200000e+01 : f32
    %825 = vector.broadcast %cst_349 : f32 to vector<1x8x1xf32>
    %826 = arith.divf %824, %825 : vector<1x8x1xf32>
    %827 = vector.broadcast %826 : vector<1x8x1xf32> to vector<1x8x32xf32>
    %828 = arith.subf %738, %827 : vector<1x8x32xf32>
    %829 = arith.mulf %828, %828 : vector<1x8x32xf32>
    %cst_350 = arith.constant dense<0.000000e+00> : vector<1x8xf32>
    %830 = vector.multi_reduction <add>, %829, %cst_350 [2] : vector<1x8x32xf32> to vector<1x8xf32>
    %831 = vector.shape_cast %830 : vector<1x8xf32> to vector<1x8x1xf32>
    %cst_351 = arith.constant 3.200000e+01 : f32
    %832 = vector.broadcast %cst_351 : f32 to vector<1x8x1xf32>
    %833 = arith.divf %831, %832 : vector<1x8x1xf32>
    %834 = vector.broadcast %826 : vector<1x8x1xf32> to vector<1x8x32xf32>
    %835 = arith.subf %738, %834 : vector<1x8x32xf32>
    %cst_352 = arith.constant 9.99999974E-6 : f32
    %836 = vector.broadcast %cst_352 : f32 to vector<1x8x1xf32>
    %837 = arith.addf %833, %836 : vector<1x8x1xf32>
    %838 = math.rsqrt %837 : vector<1x8x1xf32>
    %839 = vector.broadcast %838 : vector<1x8x1xf32> to vector<1x8x32xf32>
    %840 = arith.mulf %835, %839 : vector<1x8x32xf32>
    %c1_353 = arith.constant 1 : index
    %c0_354 = arith.constant 0 : index
    %c544_355 = arith.constant 544 : index
    %841 = vector.load %arg7[%c1_353, %c0_354, %c544_355] : memref<2x1x624xf32, #tpu.memory_space<vmem>>, vector<1x1x32xf32>
    %842 = vector.shape_cast %841 : vector<1x1x32xf32> to vector<1x32xf32>
    %843 = vector.shape_cast %842 : vector<1x32xf32> to vector<1x1x32xf32>
    %844 = vector.broadcast %843 : vector<1x1x32xf32> to vector<1x8x32xf32>
    %845 = arith.mulf %840, %844 : vector<1x8x32xf32>
    %c1_356 = arith.constant 1 : index
    %c0_357 = arith.constant 0 : index
    %c576_358 = arith.constant 576 : index
    %846 = vector.load %arg7[%c1_356, %c0_357, %c576_358] : memref<2x1x624xf32, #tpu.memory_space<vmem>>, vector<1x1x32xf32>
    %847 = vector.shape_cast %846 : vector<1x1x32xf32> to vector<1x32xf32>
    %848 = vector.shape_cast %847 : vector<1x32xf32> to vector<1x1x32xf32>
    %849 = vector.broadcast %848 : vector<1x1x32xf32> to vector<1x8x32xf32>
    %850 = arith.addf %845, %849 : vector<1x8x32xf32>
    %c1_359 = arith.constant 1 : index
    %c0_360 = arith.constant 0 : index
    %c320_361 = arith.constant 320 : index
    %851 = vector.load %arg4[%c1_359, %c0_360, %c320_361] : memref<2x32x456xf32, #tpu.memory_space<vmem>>, vector<1x32x128xf32>
    %852 = vector.shape_cast %851 : vector<1x32x128xf32> to vector<32x128xf32>
    %c1_362 = arith.constant 1 : index
    %c0_363 = arith.constant 0 : index
    %c384_364 = arith.constant 384 : index
    %853 = vector.load %arg7[%c1_362, %c0_363, %c384_364] : memref<2x1x624xf32, #tpu.memory_space<vmem>>, vector<1x1x128xf32>
    %854 = vector.shape_cast %853 : vector<1x1x128xf32> to vector<1x128xf32>
    %855 = vector.shape_cast %850 : vector<1x8x32xf32> to vector<8x32xf32>
    %cst_365 = arith.constant dense<0.000000e+00> : vector<8x128xf32>
    %856 = tpu.matmul %855, %852, %cst_365 {dimension_numbers = #tpu.dot_dimension_numbers<[1], [0], [0], [1], [0, 0, 1, 1], [], []>} : vector<8x32xf32>, vector<32x128xf32>, vector<8x128xf32> -> vector<8x128xf32>
    %857 = vector.broadcast %854 : vector<1x128xf32> to vector<8x128xf32>
    %858 = arith.addf %856, %857 : vector<8x128xf32>
    %859 = vector.shape_cast %858 : vector<8x128xf32> to vector<1x8x128xf32>
    %cst_366 = arith.constant 5.000000e-01 : f32
    %860 = vector.broadcast %cst_366 : f32 to vector<1x8x128xf32>
    %861 = arith.mulf %860, %859 : vector<1x8x128xf32>
    %cst_367 = arith.constant 0.707106769 : f32
    %862 = vector.broadcast %cst_367 : f32 to vector<1x8x128xf32>
    %863 = arith.mulf %859, %862 : vector<1x8x128xf32>
    %864 = math.absf %863 : vector<1x8x128xf32>
    %cst_368 = arith.constant 0.327591091 : f32
    %865 = vector.broadcast %cst_368 : f32 to vector<1x8x128xf32>
    %866 = arith.mulf %865, %864 : vector<1x8x128xf32>
    %cst_369 = arith.constant 1.000000e+00 : f32
    %867 = vector.broadcast %cst_369 : f32 to vector<1x8x128xf32>
    %868 = arith.addf %867, %866 : vector<1x8x128xf32>
    %cst_370 = arith.constant 1.000000e+00 : f32
    %869 = vector.broadcast %cst_370 : f32 to vector<1x8x128xf32>
    %870 = arith.divf %869, %868 : vector<1x8x128xf32>
    %cst_371 = arith.constant 1.06140542 : f32
    %871 = vector.broadcast %cst_371 : f32 to vector<1x8x128xf32>
    %872 = arith.mulf %871, %870 : vector<1x8x128xf32>
    %cst_372 = arith.constant 1.45315206 : f32
    %873 = vector.broadcast %cst_372 : f32 to vector<1x8x128xf32>
    %874 = arith.subf %872, %873 : vector<1x8x128xf32>
    %875 = arith.mulf %874, %870 : vector<1x8x128xf32>
    %cst_373 = arith.constant 1.42141378 : f32
    %876 = vector.broadcast %cst_373 : f32 to vector<1x8x128xf32>
    %877 = arith.addf %875, %876 : vector<1x8x128xf32>
    %878 = arith.mulf %877, %870 : vector<1x8x128xf32>
    %cst_374 = arith.constant 0.284496725 : f32
    %879 = vector.broadcast %cst_374 : f32 to vector<1x8x128xf32>
    %880 = arith.subf %878, %879 : vector<1x8x128xf32>
    %881 = arith.mulf %880, %870 : vector<1x8x128xf32>
    %cst_375 = arith.constant 0.254829586 : f32
    %882 = vector.broadcast %cst_375 : f32 to vector<1x8x128xf32>
    %883 = arith.addf %881, %882 : vector<1x8x128xf32>
    %884 = arith.mulf %883, %870 : vector<1x8x128xf32>
    %cst_376 = arith.constant 0.000000e+00 : f32
    %885 = vector.broadcast %cst_376 : f32 to vector<1x8x128xf32>
    %886 = arith.subf %885, %864 : vector<1x8x128xf32>
    %887 = arith.mulf %886, %864 : vector<1x8x128xf32>
    %888 = math.exp %887 : vector<1x8x128xf32>
    %889 = arith.mulf %884, %888 : vector<1x8x128xf32>
    %cst_377 = arith.constant 1.000000e+00 : f32
    %890 = vector.broadcast %cst_377 : f32 to vector<1x8x128xf32>
    %891 = arith.subf %890, %889 : vector<1x8x128xf32>
    %cst_378 = arith.constant 0.000000e+00 : f32
    %892 = vector.broadcast %cst_378 : f32 to vector<1x8x128xf32>
    %893 = arith.cmpf oge, %863, %892 : vector<1x8x128xf32>
    %cst_379 = arith.constant 0.000000e+00 : f32
    %894 = vector.broadcast %cst_379 : f32 to vector<1x8x128xf32>
    %895 = arith.subf %894, %891 : vector<1x8x128xf32>
    %896 = arith.select %893, %891, %895 : vector<1x8x128xi1>, vector<1x8x128xf32>
    %cst_380 = arith.constant 1.000000e+00 : f32
    %897 = vector.broadcast %cst_380 : f32 to vector<1x8x128xf32>
    %898 = arith.addf %897, %896 : vector<1x8x128xf32>
    %899 = arith.mulf %861, %898 : vector<1x8x128xf32>
    %c1_381 = arith.constant 1 : index
    %c0_382 = arith.constant 0 : index
    %c0_383 = arith.constant 0 : index
    %900 = vector.load %arg6[%c1_381, %c0_382, %c0_383] : memref<2x128x32xf32, #tpu.memory_space<vmem>>, vector<1x128x32xf32>
    %901 = vector.shape_cast %900 : vector<1x128x32xf32> to vector<128x32xf32>
    %c1_384 = arith.constant 1 : index
    %c0_385 = arith.constant 0 : index
    %c512_386 = arith.constant 512 : index
    %902 = vector.load %arg7[%c1_384, %c0_385, %c512_386] : memref<2x1x624xf32, #tpu.memory_space<vmem>>, vector<1x1x32xf32>
    %903 = vector.shape_cast %902 : vector<1x1x32xf32> to vector<1x32xf32>
    %904 = vector.shape_cast %899 : vector<1x8x128xf32> to vector<8x128xf32>
    %cst_387 = arith.constant dense<0.000000e+00> : vector<8x32xf32>
    %905 = tpu.matmul %904, %901, %cst_387 {dimension_numbers = #tpu.dot_dimension_numbers<[1], [0], [0], [1], [0, 0, 1, 1], [], []>} : vector<8x128xf32>, vector<128x32xf32>, vector<8x32xf32> -> vector<8x32xf32>
    %906 = vector.broadcast %903 : vector<1x32xf32> to vector<8x32xf32>
    %907 = arith.addf %905, %906 : vector<8x32xf32>
    %908 = vector.shape_cast %907 : vector<8x32xf32> to vector<1x8x32xf32>
    %909 = arith.addf %738, %908 : vector<1x8x32xf32>
    %cst_388 = arith.constant dense<0.000000e+00> : vector<1x32xf32>
    %910 = vector.multi_reduction <add>, %909, %cst_388 [1] : vector<1x8x32xf32> to vector<1x32xf32>
    %911 = vector.shape_cast %910 : vector<1x32xf32> to vector<1x1x32xf32>
    %cst_389 = arith.constant 8.000000e+00 : f32
    %912 = vector.broadcast %cst_389 : f32 to vector<1x1x32xf32>
    %913 = arith.divf %911, %912 : vector<1x1x32xf32>
    %914 = vector.broadcast %913 : vector<1x1x32xf32> to vector<1x8x32xf32>
    %915 = arith.subf %909, %914 : vector<1x8x32xf32>
    %916 = vector.shape_cast %913 : vector<1x1x32xf32> to vector<1x32xf32>
    %c1_390 = arith.constant 1 : index
    %c0_391 = arith.constant 0 : index
    %c448_392 = arith.constant 448 : index
    %917 = vector.load %arg4[%c1_390, %c0_391, %c448_392] : memref<2x32x456xf32, #tpu.memory_space<vmem>>, vector<1x32x8xf32>
    %918 = vector.shape_cast %917 : vector<1x32x8xf32> to vector<32x8xf32>
    %cst_393 = arith.constant dense<0.000000e+00> : vector<1x8xf32>
    %919 = tpu.matmul %916, %918, %cst_393 {dimension_numbers = #tpu.dot_dimension_numbers<[1], [0], [0], [1], [0, 0, 1, 1], [], []>} : vector<1x32xf32>, vector<32x8xf32>, vector<1x8xf32> -> vector<1x8xf32>
    %c1_394 = arith.constant 1 : index
    %c0_395 = arith.constant 0 : index
    %c608_396 = arith.constant 608 : index
    %920 = vector.load %arg7[%c1_394, %c0_395, %c608_396] : memref<2x1x624xf32, #tpu.memory_space<vmem>>, vector<1x1x8xf32>
    %921 = vector.shape_cast %920 : vector<1x1x8xf32> to vector<1x8xf32>
    %922 = arith.addf %919, %921 : vector<1x8xf32>
    %c0_397 = arith.constant 0 : index
    %c0_398 = arith.constant 0 : index
    %c0_399 = arith.constant 0 : index
    %923 = vector.load %arg13[%c0_397, %c0_398, %c0_399] : memref<1x8x32xf32, #tpu.memory_space<vmem>>, vector<1x8x32xf32>
    tpu.vector_store %arg13[%c0_397, %c0_398, %c0_399], %915 {strides = array<i32>} : memref<1x8x32xf32, #tpu.memory_space<vmem>>, vector<1x8x32xf32>,
    %924 = vector.shape_cast %481 : vector<1x8xf32> to vector<1x1x8xf32>
    %925 = vector.shape_cast %922 : vector<1x8xf32> to vector<1x1x8xf32>
    %926 = tpu.concatenate %924, %925 in 1 : vector<1x1x8xf32>, vector<1x1x8xf32> -> vector<1x2x8xf32>
    %c0_400 = arith.constant 0 : index
    %c0_401 = arith.constant 0 : index
    %c0_402 = arith.constant 0 : index
    %927 = vector.load %arg14[%c0_400, %c0_401, %c0_402] : memref<1x2x8xf32, #tpu.memory_space<vmem>>, vector<1x2x8xf32>
    tpu.vector_store %arg14[%c0_400, %c0_401, %c0_402], %926 {strides = array<i32>} : memref<1x2x8xf32, #tpu.memory_space<vmem>>, vector<1x2x8xf32>,
    %c0_403 = arith.constant 0 : index
    %c0_404 = arith.constant 0 : index
    %c0_405 = arith.constant 0 : index
    %928 = vector.load %arg15[%c0_403, %c0_404, %c0_405] : memref<1x8x8xf32, #tpu.memory_space<vmem>>, vector<1x8x8xf32>
    tpu.vector_store %arg15[%c0_403, %c0_404, %c0_405], %820 {strides = array<i32>} : memref<1x8x8xf32, #tpu.memory_space<vmem>>, vector<1x8x8xf32>,
    %c0_406 = arith.constant 0 : index
    %c0_407 = arith.constant 0 : index
    %c0_408 = arith.constant 0 : index
    %929 = vector.load %arg16[%c0_406, %c0_407, %c0_408] : memref<1x8x32xf32, #tpu.memory_space<vmem>>, vector<1x8x32xf32>
    tpu.vector_store %arg16[%c0_406, %c0_407, %c0_408], %822 {strides = array<i32>} : memref<1x8x32xf32, #tpu.memory_space<vmem>>, vector<1x8x32xf32>,
    return
  }
  func.func @transform_0(%arg0: i32) -> (i32, i32, i32) {
    %c0_i32 = arith.constant 0 : i32
    %c0_i32_0 = arith.constant 0 : i32
    %c0_i32_1 = arith.constant 0 : i32
    return %arg0, %c0_i32, %c0_i32_0 : i32, i32, i32
  }
  func.func @transform_1(%arg0: i32) -> (i32, i32, i32) {
    %c0_i32 = arith.constant 0 : i32
    %c0_i32_0 = arith.constant 0 : i32
    %c0_i32_1 = arith.constant 0 : i32
    return %arg0, %c0_i32, %c0_i32_0 : i32, i32, i32
  }
  func.func @transform_2(%arg0: i32) -> (i32, i32, i32) {
    %c0_i32 = arith.constant 0 : i32
    %c0_i32_0 = arith.constant 0 : i32
    %c0_i32_1 = arith.constant 0 : i32
    return %arg0, %c0_i32, %c0_i32_0 : i32, i32, i32
  }
  func.func @transform_3(%arg0: i32) -> (i32, i32, i32) {
    %c0_i32 = arith.constant 0 : i32
    %c0_i32_0 = arith.constant 0 : i32
    %c0_i32_1 = arith.constant 0 : i32
    %c0_i32_2 = arith.constant 0 : i32
    return %c0_i32, %c0_i32_0, %c0_i32_1 : i32, i32, i32
  }
  func.func @transform_4(%arg0: i32) -> (i32, i32, i32) {
    %c0_i32 = arith.constant 0 : i32
    %c0_i32_0 = arith.constant 0 : i32
    %c0_i32_1 = arith.constant 0 : i32
    %c0_i32_2 = arith.constant 0 : i32
    return %c0_i32, %c0_i32_0, %c0_i32_1 : i32, i32, i32
  }
  func.func @transform_5(%arg0: i32) -> (i32, i32, i32) {
    %c0_i32 = arith.constant 0 : i32
    %c0_i32_0 = arith.constant 0 : i32
    %c0_i32_1 = arith.constant 0 : i32
    %c0_i32_2 = arith.constant 0 : i32
    return %c0_i32, %c0_i32_0, %c0_i32_1 : i32, i32, i32
  }
  func.func @transform_6(%arg0: i32) -> (i32, i32, i32) {
    %c0_i32 = arith.constant 0 : i32
    %c0_i32_0 = arith.constant 0 : i32
    %c0_i32_1 = arith.constant 0 : i32
    %c0_i32_2 = arith.constant 0 : i32
    return %c0_i32, %c0_i32_0, %c0_i32_1 : i32, i32, i32
  }
  func.func @transform_7(%arg0: i32) -> (i32, i32, i32) {
    %c0_i32 = arith.constant 0 : i32
    %c0_i32_0 = arith.constant 0 : i32
    %c0_i32_1 = arith.constant 0 : i32
    %c0_i32_2 = arith.constant 0 : i32
    return %c0_i32, %c0_i32_0, %c0_i32_1 : i32, i32, i32
  }
  func.func @transform_8(%arg0: i32) -> (i32, i32, i32) {
    %c0_i32 = arith.constant 0 : i32
    %c0_i32_0 = arith.constant 0 : i32
    %c0_i32_1 = arith.constant 0 : i32
    %c0_i32_2 = arith.constant 0 : i32
    return %c0_i32, %c0_i32_0, %c0_i32_1 : i32, i32, i32
  }
  func.func @transform_9(%arg0: i32) -> (i32, i32, i32) {
    %c0_i32 = arith.constant 0 : i32
    %c0_i32_0 = arith.constant 0 : i32
    %c0_i32_1 = arith.constant 0 : i32
    %c0_i32_2 = arith.constant 0 : i32
    return %c0_i32, %c0_i32_0, %c0_i32_1 : i32, i32, i32
  }
  func.func @transform_10(%arg0: i32) -> (i32, i32, i32) {
    %c0_i32 = arith.constant 0 : i32
    %c0_i32_0 = arith.constant 0 : i32
    %c0_i32_1 = arith.constant 0 : i32
    %c0_i32_2 = arith.constant 0 : i32
    return %c0_i32, %c0_i32_0, %c0_i32_1 : i32, i32, i32
  }
  func.func @transform_11(%arg0: i32) -> (i32, i32) {
    %c0_i32 = arith.constant 0 : i32
    %c0_i32_0 = arith.constant 0 : i32
    %c0_i32_1 = arith.constant 0 : i32
    return %c0_i32, %c0_i32_0 : i32, i32
  }
  func.func @transform_12(%arg0: i32) -> (i32, i32, i32) {
    %c0_i32 = arith.constant 0 : i32
    %c0_i32_0 = arith.constant 0 : i32
    %c0_i32_1 = arith.constant 0 : i32
    return %arg0, %c0_i32, %c0_i32_0 : i32, i32, i32
  }
  func.func @transform_13(%arg0: i32) -> (i32, i32, i32) {
    %c0_i32 = arith.constant 0 : i32
    %c0_i32_0 = arith.constant 0 : i32
    %c0_i32_1 = arith.constant 0 : i32
    return %arg0, %c0_i32, %c0_i32_0 : i32, i32, i32
  }
  func.func @transform_14(%arg0: i32) -> (i32, i32, i32) {
    %c0_i32 = arith.constant 0 : i32
    %c0_i32_0 = arith.constant 0 : i32
    %c0_i32_1 = arith.constant 0 : i32
    return %arg0, %c0_i32, %c0_i32_0 : i32, i32, i32
  }
  func.func @transform_15(%arg0: i32) -> (i32, i32, i32) {
    %c0_i32 = arith.constant 0 : i32
    %c0_i32_0 = arith.constant 0 : i32
    %c0_i32_1 = arith.constant 0 : i32
    return %arg0, %c0_i32, %c0_i32_0 : i32, i32, i32
  }
}

</mosaic_0001>

<bundles_post_ra>
// kernel: decoder_forward.1
= control target key start
LH: loop header
LB: loop body
LE: loop exit
PB: predicated region body
PF: predicated region fallthrough
CT: control target
= control target key end

     0   :  { %s5550_s0 = inlined_call_operand.vmem [shape: f32[2,8,32], index: 0, kind: input, shape index: {}]   ;;  %s5551_s1 = inlined_call_operand.vmem [shape: f32[2,2,32], index: 1, kind: input, shape index: {}]   ;;  %s5552_s2 = inlined_call_operand.vmem [shape: f32[2,4,16], index: 2, kind: input, shape index: {}]   ;;  %s5553_s3 = inlined_call_operand.vmem [shape: f32[2,32,456], index: 3, kind: input, shape index: {}]   ;;  %s5554_s4 = inlined_call_operand.vmem [shape: f32[2,16,64], index: 4, kind: input, shape index: {}]   ;;  %s5555_s5 = inlined_call_operand.vmem [shape: f32[2,128,32], index: 5, kind: input, shape index: {}]   ;;  %s5556_s6 = inlined_call_operand.vmem [shape: f32[2,1,624], index: 6, kind: input, shape index: {}]   ;;  %s5557_s7 = inlined_call_operand.vmem [shape: f32[2,20,8], index: 7, kind: input, shape index: {}]   ;;  %s5558_s8 = inlined_call_operand.vmem [shape: f32[2,3,24], index: 8, kind: input, shape index: {}]   ;;  %s5559_s9 = inlined_call_operand.vmem [shape: f32[2,96,8], index: 9, kind: input, shape index: {}]   ;;  %s5560_s10 = inlined_call_operand.vmem [shape: f32[2,23,1], index: 10, kind: input, shape index: {}]   ;;  %s5561_s11 = inlined_call_operand.vmem [shape: f32[8,7], index: 11, kind: input, shape index: {}]   ;;  %s5562_s12 = inlined_call_operand.hbm [shape: f32[2,8,32], index: 12, kind: output, shape index: {0}]   ;;  %s5563_s13 = inlined_call_operand.hbm [shape: f32[2,2,8], index: 13, kind: output, shape index: {1}]   ;;  %s5564_s14 = inlined_call_operand.hbm [shape: f32[2,8,8], index: 14, kind: output, shape index: {2}]   ;;  %s5565_s15 = inlined_call_operand.hbm [shape: f32[2,8,32], index: 15, kind: output, shape index: {3}]  }
   0x1   :  { %5613 = sst [smem:[#allocation21_spill]] %s5550_s0 }
   0x2   :  { %5614 = sst [smem:[#allocation22_spill]] %s5551_s1 }
   0x3   :  { %5615 = sst [smem:[#allocation23_spill]] %s5552_s2 }
   0x4   :  { %5616 = sst [smem:[#allocation24_spill]] %s5553_s3 }
   0x5   :  { %5617 = sst [smem:[#allocation25_spill]] %s5554_s4 }
   0x6   :  { %5618 = sst [smem:[#allocation26_spill]] %s5561_s11 }
   0x7   :  { %5619 = sst [smem:[#allocation27_spill]] %s5562_s12 }
   0x8   :  { %5620 = sst [smem:[#allocation28_spill]] %s5563_s13 }
   0x9   :  { %5621 = sst [smem:[#allocation29_spill]] %s5564_s14 }
   0xa   :  { %5622 = sst [smem:[#allocation30_spill]] %s5565_s15 }
   0xb   :  { %21 = vsyncpa [#allocation3], 0 }
   0xc   :  { %23 = vsyncpa [#allocation3 + $0x1], 0 }
   0xd   :  { %24 = vsyncpa [#allocation5], 0 }
   0xe   :  { %26 = vsyncpa [#allocation5 + $0x1], 0 }
   0xf   :  { %27 = vsyncpa [#allocation8], 0 }
  0x10   :  { %29 = vsyncpa [#allocation8 + $0x1], 0  ;;  %s4444_s18 = smov 0   ;;  %s4446_s19 = smov 0  }
  0x11   :  { %s4448_s20 = smov 0   ;;  %s4450_s21 = smov 0  }
  0x12 LB: > { %5623 = sst [smem:[#allocation12_spill]] %s4328_s18  ;;  %s4465_s22 = sadd.s32 4294967295, %s4340_s21   ;;  %s4340_s21 = sphi %s4450_s21, %s5674_s21   ;;  %s4336_s20 = sphi %s4448_s20, %s5677_s20   ;;  %s4332_s19 = sphi %s4446_s19, %s5676_s19   ;;  %s4328_s18 = sphi %s4444_s18, %s5675_s18  }
  0x13   : > { %5624 = sst [smem:[#allocation13_spill]] %s4332_s19  ;;  %s5566_s23 = sadd.s32 4294967294, %s4340_s21  }
  0x14   : > { %5625 = sst [smem:[#allocation14_spill]] %s4336_s20  ;;  %s4469_s24 = sadd.s32 1, %s4340_s21  }
  0x15   : > { %5626 = sst [smem:[#allocation15_spill]] %s4340_s21  ;;  %s309_s25 = sadd.s32 1, %s4336_s20 }
  0x16   : > { %5627 = sst [smem:[#allocation16_spill]] %s4465_s22  ;;  %s306_s26 = ssub.s32 %s4340_s21, %s4469_s24 }
  0x17   : > { %5628 = sst [smem:[#allocation17_spill]] %s4469_s24  ;;  %p319_p0 = scmp.ne.s32.totalorder %s4336_s20, %s4332_s19 }
  0x18   : > { %p307_p1 = scmp.eq.s32.totalorder %s306_s26, 0  ;;  %p320_p2 = scmp.eq.s32.totalorder %s4465_s22, 1 }
  0x19   : > { %p325_p3 = scmp.ne.s32.totalorder %s4332_s19, %s4328_s18  ;;  %p326_p4 = scmp.eq.s32.totalorder %s5566_s23, 1 }
  0x1a   : > { %s4482_s27 = scalar_select %p307_p1, %s4336_s20, %s309_s25  }
  0x1b   : > { %p4484_p5 = por %p320_p2, %p319_p0  ;;  %p4488_p6 = por %p326_p4, %p325_p3 }
  0x1c   : > { %5629 = sst [smem:[#allocation18_spill]] %s4482_s27  ;;  %p3677_p7 = scmp.ge.s32.totalorder %s4340_s21, 1 }
  0x1d   : > { %s5630_s28 = scalar_select %p4484_p5, 1, 0 }
  0x1e   : > { %s5632_s29 = scalar_select %p4488_p6, 1, 0 }
  0x1f   : > { %5631 = sst [smem:[#allocation19_spill]] %s5630_s28  ;;  %p470_p8 = scmp.lt.s32.totalorder %s4340_s21, 3 }
  0x20   : > { %5633 = sst [smem:[#allocation20_spill]] %s5632_s29 }
  0x21   : > { %p471_p9 = pnand %p3677_p7, %p470_p8 }
  0x22   : > { %p540_p10 = scmp.lt.s32.totalorder (!%p471_p9), %s4465_s22, 1  ;;  %s5634_s3 = sld [smem:[#allocation24_spill]] (!%p471_p9) }
  0x23   : > { %474 = sbr.rel (%p471_p9) target bundleno = 8093 (0x1f9d), region = 68  ;;  %s5635_s0 = sld [smem:[#allocation21_spill]] (!%p471_p9) }
  0x24   : > { %s5636_s1 = sld [smem:[#allocation22_spill]] (!%p471_p9)  ;;  %s5597_s24 = smov (!%p471_p9), 96  }
  0x25   : > { %s5575_s17 = smov (!%p471_p9), 72   ;;  %s5591_s25 = smov (!%p471_p9), 104  }
  0x26   : > { %s5577_s23 = smov (!%p471_p9), 80   ;;  %s5595_s26 = smov (!%p471_p9), 112  }
  0x27   : > { %s5572_s20 = smov (!%p471_p9), 48   ;;  %s5637_s2 = sld [smem:[#allocation23_spill]] (!%p471_p9) }
  0x28   : > { %v4498_v0 = vld [vmem:[%s5634_s3 + $0x60] sm:$0xff]  ;;  %vm593_vm0 = vcmask 261120   ;;  %s4512_s27 = scalar_select %p540_p10, %s4465_s22, 1  ;;  %v4342_v22 = vmov 32.0   ;;  %v4550_v38 = vld [vmem:[%s5634_s3 + $0x68] sm:$0xff]  ;;  %vm689_vm9 = vcmask 64512  }
  0x29   : > { %v4503_v1 = vld [vmem:[%s5634_s3 + $0x40] sm:$0xff]  ;;  %609 = vmatpush.msra.mxu0 %v4498_v0  ;;  %v4555_v39 = vld [vmem:[%s5634_s3 + $0x48] sm:$0xff]  ;;  %678 = vmatpush.msra.mxu1 %v4550_v38  ;;  %vm963_vm10 = vcmask 130048   ;;  %vm965_vm11 = vcmask 195584   ;;  %s5638_s4 = sld [smem:[#allocation25_spill]]  ;;  %vm1183_vm15 = vcmask 31744  }
  0x2a   : > { %v4509_v2 = vld [vmem:[%s5634_s3 + $0x20] sm:$0xff]  ;;  %s3682_s30 = sshll.u32 %s4512_s27, 3  ;;  %s3683_s16 = sshll.u32 %s4512_s27, 1  ;;  %v4561_v40 = vld [vmem:[%s5634_s3 + $0x28] sm:$0xff] }
  0x2b   : > { %v4517_v3 = vld [vmem:[%s5634_s3] sm:$0xff]  ;;  %610 = vmatpush.msra.mxu0 %v4503_v1  ;;  %s543_s29 = scalar_lea.vmem %s5635_s0, %s3682_s30  ;;  %s547_s18 = scalar_lea.vmem %s5636_s1, %s3683_s16  ;;  %679 = vmatpush.msra.mxu1 %v4555_v39  ;;  %v4569_v44 = vld [vmem:[%s5634_s3 + $0x8] sm:$0xff] }
  0x2c   : > { %v4529_v4 = vld [vmem:[%s543_s29] sm:$0xff]  ;;  %s5593_s30 = smov 120   ;;  %s5589_s16 = smov 88  }
  0x2d   : > { %611 = vmatpush.msra.mxu0 %v4509_v2  ;;  %v554_v5 = vld [vmem:[%s547_s18] sm:$0x3]  ;;  %v617_v6 = vsel %vm593_vm0, %v4529_v4, 0.0  ;;  %680 = vmatpush.msra.mxu1 %v4561_v40  ;;  %s5583_s18 = smov 64   ;;  %s5574_s29 = smov 56  }
  0x2e   : > { %v555_v7 = vsub.f32 0.0, %v554_v5  ;;  %618 = vadd.xlane.f32.xlu0 %v617_v6  ;;  %v592_v34 = vld [vmem:[%s5556_s6] sm:$0x1]  ;;  %v4069_v58 = vld [vmem:[%s5556_s6 + $0x1] ss:$0 sm:$0xff]  ;;  %s5649_s14 = smov 32  }
  0x2f   : > { %612 = vmatpush.msra.mxu0 %v4517_v3  ;;  %681 = vmatpush.msra.mxu1 %v4569_v44  ;;  %s5604_s13 = smov 127   ;;  %s5652_s15 = smov 64  }
  0x30   : > { %v556_v8 = vmul.f32 1.442695, %v555_v7  ;;  %s5653_s11 = sld [smem:[#allocation26_spill]]  ;;  %s4362_s0 = smov 125  }
  0x31   : > { %s5654_s19 = smov 56   ;;  %s5655_s21 = smov 40  }
  0x32   : > { %4083 = vpow2.f32 %v556_v8  ;;  %s5660_s1 = sld [smem:[#allocation26_spill]] }
  0x38   : > { %v4084_v9 = vpop.eup %4083 }
  0x39   : > { %v558_v10 = vadd.f32 1.0, %v4084_v9 }
  0x3b   : > { %4085 = vrcp.f32 %v558_v10  ;;  %v570_v13 = vand.u32 2147483648, %v558_v10  ;;  %vm564_vm1 = vweird.f32 %v558_v10  ;;  %v568_v15 = vand.u32 2147483647, %v558_v10 }
  0x3c   : > { %4087 = vrcp.f32 %v4342_v22 }
  0x3d   : > { %v571_v17 = vor.u32 1.1754944e-38, %v570_v13  ;;  %vm569_vm4 = vcmp.eq.f32.partialorder %v568_v15, 8.507059e+37 }
  0x41   : > { %v4086_v11 = vpop.eup %4085 }
  0x42   : > { %v560_v12 = vmul.f32 %v4086_v11, %v558_v10  ;;  %vm565_vm2 = vweird.f32 %v4086_v11  ;;  %v4088_v23 = vpop.eup %4087 }
  0x43   : > { %vm566_vm3 = vmor %vm564_vm1, %vm565_vm2  ;;  %v621_v24 = vmul.f32 32.0, %v4088_v23  ;;  %vm625_vm5 = vweird.f32 %v4088_v23  ;;  %vm1200_vm1 = vcmask 1043456   ;;  %vm1540_vm2 = vcmask 252928  }
  0x44   : > { %v561_v14 = vsub.f32 1.0, %v560_v12 }
  0x45   : > { %v622_v25 = vsub.f32 1.0, %v621_v24 }
  0x46   : > { %v562_v16 = vmul.f32 %v4086_v11, %v561_v14 }
  0x47   : > { %v623_v26 = vmul.f32 %v4088_v23, %v622_v25 }
  0x48   : > { %v563_v18 = vadd.f32 %v4086_v11, %v562_v16 }
  0x49   : > { %v624_v27 = vadd.f32 %v4088_v23, %v623_v26 }
  0x4a   : > { %v567_v19 = vsel %vm566_vm3, %v4086_v11, %v563_v18  ;;  %vm1535_vm3 = vcmask 7168  }
  0x4b   : > { %v572_v20 = vsel %vm569_vm4, %v571_v17, %v567_v19  ;;  %v4538_v28 = vsel %vm625_vm5, %v4088_v23, %v624_v27  ;;  %vm4785_vm4 = vmneg %vm1535_vm3  ;;  %vm1616_vm3 = vcmask 1042432  }
  0x4c   : > { %v4534_v21 = vmul.f32 %v572_v20, %v554_v5 }
  0x4e   : > { %3688 = vmatmul.msk.f32.vlgmr.msra.gmra.mxu0 %vm593_vm0, %v4534_v21 }
  0xa1   : > { %v619_v29 = vpop.xlane.xlu0 %618 }
  0xa2   : > { %v627_v30 = vmul.f32 %v4538_v28, %v619_v29 }
  0xa4   : > { %v628_v31 = vsub.f32 %v4529_v4, %v627_v30 }
  0xa6   : > { %v629_v32 = vmul.f32 %v628_v31, %v628_v31 }
  0xa8   : > { %v630_v33 = vsel %vm593_vm0, %v629_v32, 0.0 }
  0xa9   : > { %631 = vadd.xlane.f32.xlu0 %v630_v33 }
  0xcb   : > { %v614_v35 = vpop.f32.mrf.mxu0 }
  0xcc   : > { %v615_v36 = vadd.f32 %v614_v35, %v592_v34 }
  0xce   : > { %v649_v37 = vperm.slane %v615_v36, 0  ;;  %v646_v52 = vadd.f32 1.0, %v615_v36 }
  0xd0   : > { %651 = vrot.lane.b32.xlu1 %v649_v37, %s5597_s24  ;;  %v647_v54 = vperm.slane %v646_v52, 0 }
 0x11c   : > { %v632_v41 = vpop.xlane.xlu0 %631 }
 0x11d   : > { %v633_v42 = vmul.f32 %v632_v41, %v4538_v28 }
 0x11f   : > { %v634_v43 = vadd.f32 1e-05, %v633_v42 }
 0x121   : > { %4089 = vrsqrt.f32 %v634_v43  ;;  %vm641_vm6 = vweird.f32 %v634_v43 }
 0x127   : > { %v4090_v45 = vpop.eup %4089 }
 0x128   : > { %v636_v46 = vmul.f32 %v4090_v45, %v634_v43  ;;  %vm642_vm7 = vweird.f32 %v4090_v45 }
 0x129   : > { %vm643_vm8 = vmor %vm641_vm6, %vm642_vm7 }
 0x12a   : > { %v637_v47 = vmul.f32 %v4090_v45, %v636_v46 }
 0x12c   : > { %v638_v48 = vmul.f32 0.5, %v637_v47 }
 0x12e   : > { %v639_v49 = vsub.f32 1.5, %v638_v48 }
 0x130   : > { %v640_v50 = vmul.f32 %v4090_v45, %v639_v49 }
 0x132   : > { %v644_v51 = vsel %vm643_vm8, %v4090_v45, %v640_v50 }
 0x133   : > { %v645_v53 = vmul.f32 %v644_v51, %v628_v31 }
 0x135   : > { %v648_v55 = vmul.f32 %v647_v54, %v645_v53 }
 0x142   : > { %v652_v56 = vpop.permute.xlu1 %651 }
 0x143   : > { %v654_v57 = vadd.f32 %v652_v56, %v648_v55 }
 0x145   : > { %3689 = vmatmul.msk.f32.vlgmr.msra.gmra.mxu1 %vm593_vm0, %v654_v57 }
 0x1c2   : > { %v683_v59 = vpop.f32.mrf.mxu1 }
 0x1c3   : > { %v4576_v60 = vadd.f32 %v4069_v58, %v683_v59 }
 0x1c5   : > { %752 = vrot.lane.b32.xlu0 %v4576_v60, %s5593_s30  ;;  %754 = vrot.lane.b32.xlu2 %v4576_v60, %s5589_s16  ;;  %s5643_s16 = smov 88   ;;  %s5646_s30 = smov 8  }
 0x1c6   : > { %687 = vrot.lane.b32.xlu1 %v4576_v60, %s5597_s24 }
 0x1cd   : > { %886 = vrot.lane.b32.xlu2 %v4576_v60, %s5575_s17  ;;  %s5579_s17 = smov 16  }
 0x1ce   : > { %884 = vrot.lane.b32.xlu1 %v4576_v60, %s5591_s25  ;;  %s5647_s25 = smov 16  }
 0x1d5   : > { %820 = vrot.lane.b32.xlu2 %v4576_v60, %s5577_s23  ;;  %s5587_s23 = smov 24  }
 0x1d6   : > { %818 = vrot.lane.b32.xlu1 %v4576_v60, %s5595_s26  ;;  %s5648_s26 = smov 24  }
 0x21f   : > { %v755_v61 = vpop.permute.xlu2 %754 }
 0x220   : > { %3693 = vmatpush.xpose.msk.msrb.mxu1 %vm689_vm9, %v755_v61 }
 0x227   : > { %v887_v62 = vpop.permute.xlu2 %886 }
 0x228   : > { %3699 = vmatpush.xpose.msk.msra.mxu3 %vm689_vm9, %v887_v62 }
 0x22f   : > { %v821_v63 = vpop.permute.xlu2 %820 }
 0x230   : > { %3696 = vmatpush.xpose.msk.msrb.mxu0 %vm689_vm9, %v821_v63  ;;  %v3966_v63 = vpack.i.bf16 %v4555_v39, %v4550_v38 }
 0x237   : > { %v753_v5 = vpop.permute.xlu0 %752 }
 0x238   : > { %v688_v6 = vpop.permute.xlu1 %687  ;;  %3694 = vmatmul.msk.f32.vlgmr.msrb.gmra.mxu1 %vm689_vm9, %v753_v5  ;;  %v3971_v5 = vpack.i.bf16 %v4569_v44, %v4561_v40 }
 0x239   : > { %3690 = vmatpush.xpose.msk.msra.mxu2 %vm689_vm9, %v688_v6 }
 0x23c   : > { %3691 = vmatmul.msk.f32.vlgmr.msra.gmra.mxu2 %vm689_vm9, %v4576_v60 }
 0x240   : > { %v885_v7 = vpop.permute.xlu1 %884 }
 0x241   : > { %3700 = vmatmul.msk.f32.vlgmr.msra.gmra.mxu3 %vm689_vm9, %v885_v7 }
 0x248   : > { %v819_v8 = vpop.permute.xlu1 %818 }
 0x249   : > { %3697 = vmatmul.msk.f32.vlgmr.msrb.gmra.mxu0 %vm689_vm9, %v819_v8 }
 0x2b5   : > { %v777_v9 = vpop.f32.mrf.mxu1 }
 0x2b6   : > { %v780_v10 = vmul.f32 0.35355338, %v777_v9 }
 0x2b8   : > { %v781_v11 = vsel %vm689_vm9, %v780_v10, -inf }
 0x2b9   : > { %782 = vmax.xlane.f32.xlu1 %v781_v11 }
 0x2bf   : > { %v711_v12 = vpop.f32.mrf.mxu2 }
 0x2c0   : > { %v714_v13 = vmul.f32 0.35355338, %v711_v12  ;;  %v3976_v12 = vpack.i.bf16 %v4503_v1, %v4498_v0 }
 0x2c2   : > { %v715_v14 = vsel %vm689_vm9, %v714_v13, -inf }
 0x2c3   : > { %716 = vmax.xlane.f32.xlu2 %v715_v14  ;;  %v4070_v14 = vld [vmem:[%s5556_s6 + $0x1] ss:$0 sm:$0xff] }
 0x2c4   : > { %v909_v15 = vpop.f32.mrf.mxu3 }
 0x2c5   : > { %v912_v16 = vmul.f32 0.35355338, %v909_v15 }
 0x2c6   : > { %v843_v17 = vpop.f32.mrf.mxu0 }
 0x2c7   : > { %v846_v18 = vmul.f32 0.35355338, %v843_v17  ;;  %v913_v19 = vsel %vm689_vm9, %v912_v16, -inf }
 0x2c8   : > { %914 = vmax.xlane.f32.xlu0 %v913_v19  ;;  %v4071_v19 = vld [vmem:[%s5556_s6] ss:$0 sm:$0xff] }
 0x2c9   : > { %v847_v20 = vsel %vm689_vm9, %v846_v18, -inf }
 0x2cb   : > { %848 = vmax.xlane.f32.xlu2 %v847_v20 }
 0x2dc   : > { %726 = vrot.lane.b32.xlu0 %v4576_v60, %s5583_s18 }
 0x2e4   : > { %858 = vrot.lane.b32.xlu0 %v4576_v60, %s5572_s20  ;;  %s5573_s20 = smov 40  }
 0x32c   : > { %v783_v22 = vpop.xlane.xlu1 %782 }
 0x32d   : > { %v784_v23 = vsub.f32 %v780_v10, %v783_v22 }
 0x32f   : > { %v785_v24 = vmul.f32 1.442695, %v784_v23 }
 0x331   : > { %4091 = vpow2.f32 %v785_v24 }
 0x336   : > { %v717_v25 = vpop.xlane.xlu2 %716 }
 0x337   : > { %v4092_v26 = vpop.eup %4091  ;;  %v718_v31 = vsub.f32 %v714_v13, %v717_v25  ;;  %v3981_v13 = vpack.i.bf16 %v4517_v3, %v4509_v2  ;;  %v1022_v25 = vrot.slane %v4534_v21, 1 }
 0x338   : > { %v787_v27 = vsel %vm689_vm9, %v4092_v26, 0.0 }
 0x339   : > { %788 = vadd.xlane.f32.xlu1 %v787_v27  ;;  %v719_v33 = vmul.f32 1.442695, %v718_v31 }
 0x33b   : > { %v915_v34 = vpop.xlane.xlu0 %914 }
 0x33c   : > { %v916_v36 = vsub.f32 %v912_v16, %v915_v34 }
 0x33e   : > { %v849_v29 = vpop.xlane.xlu2 %848  ;;  %v917_v41 = vmul.f32 1.442695, %v916_v36 }
 0x33f   : > { %v850_v30 = vsub.f32 %v846_v18, %v849_v29 }
 0x341   : > { %v851_v32 = vmul.f32 1.442695, %v850_v30 }
 0x343   : > { %4093 = vpow2.f32 %v851_v32 }
 0x344   : > { %4095 = vpow2.f32 %v719_v33 }
 0x345   : > { %4097 = vpow2.f32 %v917_v41 }
 0x349   : > { %v4094_v35 = vpop.eup %4093 }
 0x34a   : > { %v853_v37 = vsel %vm689_vm9, %v4094_v35, 0.0  ;;  %v4096_v43 = vpop.eup %4095 }
 0x34b   : > { %854 = vadd.xlane.f32.xlu2 %v853_v37  ;;  %v721_v45 = vsel %vm689_vm9, %v4096_v43, 0.0  ;;  %v4098_v47 = vpop.eup %4097 }
 0x34c   : > { %v919_v48 = vsel %vm689_vm9, %v4098_v47, 0.0 }
 0x34e   : > { %v727_v42 = vpop.permute.xlu0 %726 }
 0x34f   : > { %747 = vmatpush.msrb.mxu2 %v727_v42 }
 0x352   : > { %792 = vrot.lane.b32.xlu1 %v4576_v60, %s5574_s29  ;;  %s5581_s29 = smov 8  }
 0x353   : > { %722 = vadd.xlane.f32.xlu2 %v721_v45  ;;  %v1128_v45 = vld [vmem:[%s5638_s4] sm:$0xff] }
 0x356   : > { %v859_v46 = vpop.permute.xlu0 %858 }
 0x357   : > { %879 = vmatpush.msra.mxu1 %v859_v46 }
 0x35b   : > { %920 = vadd.xlane.f32.xlu2 %v919_v48  ;;  %v4683_v48 = vld [vmem:[%s5634_s3 + $0x50] sm:$0xff] }
 0x373   : > { %924 = vrot.lane.b32.xlu2 %v4576_v60, %s5573_s20  ;;  %s5585_s20 = smov 32  }
 0x374   : > { %3967 = vrot.lane.b32.xlu0 %v3966_v63, %s5585_s20 }
 0x37c   : > { %3972 = vrot.lane.b32.xlu0 %v3971_v5, %s5585_s20 }
 0x384   : > { %3977 = vrot.lane.b32.xlu0 %v3976_v12, %s5583_s18 }
 0x3ac   : > { %v789_v49 = vpop.xlane.xlu1 %788 }
 0x3be   : > { %v855_v50 = vpop.xlane.xlu2 %854 }
 0x3bf   : > { %4099 = vrcp.f32 %v855_v50  ;;  %v4696_v50 = vld [vmem:[%s5634_s3 + $0x10] sm:$0xff] }
 0x3c4   : > { %v793_v51 = vpop.permute.xlu1 %792 }
 0x3c5   : > { %v4100_v52 = vpop.eup %4099  ;;  %813 = vmatpush.msra.mxu2 %v793_v51  ;;  %v4072_v51 = vld [vmem:[%s5556_s6 + $0x2] ss:$0 sm:$0xff] }
 0x3c6   : > { %v857_v53 = vmul.f32 %v4100_v52, %v4094_v35  ;;  %v723_v54 = vpop.xlane.xlu2 %722 }
 0x3c7   : > { %4101 = vrcp.f32 %v723_v54 }
 0x3c8   : > { %3698 = vmatmul.msk.f32.vlgmr.msra.gmra.mxu1 %vm689_vm9, %v857_v53  ;;  %4103 = vrcp.f32 %v789_v49  ;;  %v4688_v49 = vld [vmem:[%s5634_s3 + $0x30] sm:$0xff] }
 0x3cd   : > { %v4102_v55 = vpop.eup %4101 }
 0x3ce   : > { %v921_v56 = vpop.xlane.xlu2 %920  ;;  %v725_v57 = vmul.f32 %v4102_v55, %v4096_v43  ;;  %v4104_v58 = vpop.eup %4103 }
 0x3cf   : > { %4105 = vrcp.f32 %v921_v56  ;;  %v791_v59 = vmul.f32 %v4104_v58, %v4092_v26 }
 0x3d0   : > { %3692 = vmatmul.msk.f32.vlgmr.msrb.gmra.mxu2 %vm689_vm9, %v725_v57 }
 0x3d5   : > { %v4106_v61 = vpop.eup %4105 }
 0x3d6   : > { %v925_v60 = vpop.permute.xlu2 %924  ;;  %v923_v62 = vmul.f32 %v4106_v61, %v4098_v47  ;;  %v4677_v47 = vld [vmem:[%s5634_s3 + $0x70] sm:$0xff] }
 0x3d7   : > { %945 = vmatpush.msrb.mxu2 %v925_v60  ;;  %1120 = vmatpush.msrb.mxu3 %v4677_v47 }
 0x3d8   : > { %3695 = vmatmul.msk.f32.vlgmr.msra.gmra.mxu2 %vm689_vm9, %v791_v59 }
 0x3d9   : > { %1121 = vmatpush.msrb.mxu3 %v4683_v48 }
 0x3db   : > { %1122 = vmatpush.msrb.mxu3 %v4688_v49 }
 0x3dd   : > { %1123 = vmatpush.msrb.mxu3 %v4696_v50 }
 0x3e0   : > { %3701 = vmatmul.msk.f32.vlgmr.msrb.gmra.mxu2 %vm689_vm9, %v923_v62 }
 0x3e6   : > { %v3968_v38 = vpop.permute.xlu0 %3967 }
 0x3e7   : > { %v3970_v39 = vunpack.i.h.bf16 %v3968_v38  ;;  %v3969_v10 = vunpack.i.l.bf16 %v3968_v38 }
 0x3e9   : > { %1008 = vmatpush.msra.mxu0 %v3969_v10 }
 0x3eb   : > { %1009 = vmatpush.msra.mxu0 %v3970_v39 }
 0x3ee   : > { %v3973_v40 = vpop.permute.xlu0 %3972 }
 0x3ef   : > { %v3975_v44 = vunpack.i.h.bf16 %v3973_v40  ;;  %v3974_v11 = vunpack.i.l.bf16 %v3973_v40 }
 0x3f1   : > { %1010 = vmatpush.msra.mxu0 %v3974_v11 }
 0x3f3   : > { %1011 = vmatpush.msra.mxu0 %v3975_v44 }
 0x3f6   : > { %v3978_v3 = vpop.permute.xlu0 %3977 }
 0x3f7   : > { %v3980_v20 = vunpack.i.h.bf16 %v3978_v3  ;;  %v3979_v22 = vunpack.i.l.bf16 %v3978_v3 }
 0x3f9   : > { %1058 = vmatpush.msrb.mxu1 %v3979_v22 }
 0x3fb   : > { %1059 = vmatpush.msrb.mxu1 %v3980_v20 }
 0x445   : > { %v881_v8 = vpop.f32.mrf.mxu1 }
 0x453   : > { %v749_v6 = vpop.f32.mrf.mxu2 }
 0x45b   : > { %v815_v7 = vpop.f32.mrf.mxu2 }
 0x45c   : > { %951 = vrot.lane.b32.xlu1 %v815_v7, %s5581_s29  ;;  %s5640_s29 = smov 112  }
 0x463   : > { %v947_v9 = vpop.f32.mrf.mxu2 }
 0x464   : > { %955 = vrot.lane.b32.xlu1 %v881_v8, %s5579_s17  ;;  %959 = vrot.lane.b32.xlu2 %v947_v9, %s5587_s23  ;;  %s3684_s17 = sshll.u32 %s4512_s27, 2  ;;  %s5641_s27 = smov 120  }
 0x465   : > { %s5644_s23 = smov 80  }
 0x46c   : > { %3982 = vrot.lane.b32.xlu1 %v3981_v13, %s5583_s18  ;;  %990 = vrot.lane.b32.xlu2 %v4070_v14, %s5585_s20  ;;  %s4665_s20 = scalar_lea.vmem %s5637_s2, %s3684_s17  ;;  %s5639_s17 = smov 96  }
 0x46d   : > { %v553_v46 = vld [vmem:[%s4665_s20] sm:$0xf]  ;;  %s5605_s2 = smov 1  }
 0x474   : > { %1041 = vrot.lane.b32.xlu1 %v4071_v19, %s5583_s18  ;;  %s5642_s18 = smov 104  }
 0x4be   : > { %v960_v0 = vpop.permute.xlu2 %959 }
 0x4c6   : > { %v991_v26 = vpop.permute.xlu2 %990 }
 0x4ce   : > { %v952_v15 = vpop.permute.xlu1 %951 }
 0x4cf   : > { %v962_v16 = vsel %vm689_vm9, %v749_v6, %v952_v15 }
 0x4d6   : > { %v956_v17 = vpop.permute.xlu1 %955 }
 0x4d7   : > { %v964_v1 = vsel %vm963_vm10, %v962_v16, %v956_v17 }
 0x4d8   : > { %v966_v2 = vsel %vm965_vm11, %v964_v1, %v960_v0 }
 0x4d9   : > { %3702 = vmatmul.msk.f32.vlgmr.msra.gmra.mxu0 %vm593_vm0, %v966_v2 }
 0x4de   : > { %v3983_v18 = vpop.permute.xlu1 %3982 }
 0x4df   : > { %v3984_v23 = vunpack.i.l.bf16 %v3983_v18  ;;  %v3985_v24 = vunpack.i.h.bf16 %v3983_v18 }
 0x4e1   : > { %1060 = vmatpush.msrb.mxu1 %v3984_v23 }
 0x4e3   : > { %1061 = vmatpush.msrb.mxu1 %v3985_v24 }
 0x4e4   : > { %3703 = vmatmul.msk.f32.vlgmr.msrb.gmra.mxu1 %vm593_vm0, %v1022_v25 }
 0x4e6   : > { %v1042_v32 = vpop.permute.xlu1 %1041 }
 0x556   : > { %v1013_v27 = vpop.f32.mrf.mxu0 }
 0x557   : > { %v1014_v29 = vadd.f32 %v1013_v27, %v991_v26 }
 0x559   : > { %v4653_v30 = vadd.f32 %v1014_v29, %v4529_v4  ;;  %v1129_v4 = vld [vmem:[%s5638_s4 + $0x8] sm:$0xff] }
 0x55a   : > { %1150 = vmatpush.msra.mxu2 %v1129_v4 }
 0x55b   : > { %v1066_v31 = vsel %vm593_vm0, %v4653_v30, 0.0 }
 0x55c   : > { %1067 = vadd.xlane.f32.xlu0 %v1066_v31  ;;  %1151 = vmatpush.msra.mxu2 %v1128_v45 }
 0x55d   : > { %3705 = vmatmul.msk.f32.vlgmr.msra.gmra.mxu2 %vm963_vm10, %v553_v46 }
 0x561   : > { %v1063_v33 = vpop.f32.mrf.mxu1 }
 0x562   : > { %v1064_v34 = vadd.f32 %v1063_v33, %v1042_v32 }
 0x564   : > { %v1091_v35 = vperm.slane %v1064_v34, 0  ;;  %v1088_v60 = vadd.f32 1.0, %v1064_v34 }
 0x566   : > { %1093 = vrot.lane.b32.xlu1 %v1091_v35, %s5597_s24  ;;  %v1089_v63 = vperm.slane %v1088_v60, 0  ;;  %s5645_s24 = smov 72  }
 0x56e   : > { %1130 = vrot.lane.b32.xlu1 %v4072_v51, %s5639_s17 }
 0x5cf   : > { %v1068_v36 = vpop.xlane.xlu0 %1067 }
 0x5d0   : > { %v1069_v37 = vmul.f32 %v1068_v36, %v4538_v28 }
 0x5d2   : > { %v1070_v41 = vsub.f32 %v4653_v30, %v1069_v37 }
 0x5d4   : > { %v1071_v42 = vmul.f32 %v1070_v41, %v1070_v41 }
 0x5d6   : > { %v1072_v43 = vsel %vm593_vm0, %v1071_v42, 0.0 }
 0x5d7   : > { %1073 = vadd.xlane.f32.xlu2 %v1072_v43 }
 0x5d8   : > { %v1094_v6 = vpop.permute.xlu1 %1093 }
 0x5e0   : > { %v1131_v9 = vpop.permute.xlu1 %1130  ;;  %v1153_v38 = vpop.f32.mrf.mxu2 }
 0x5e1   : > { %v4705_v39 = vadd.f32 %v1153_v38, %v1131_v9 }
 0x5e3   : > { %1225 = vrot.lane.b32.xlu1 %v4705_v39, %s5641_s27  ;;  %3706 = vmatpush.xpose.msk.msrb.mxu0 %vm689_vm9, %v4705_v39 }
 0x5ef   : > { %1292 = vrot.lane.b32.xlu2 %v4705_v39, %s5640_s29 }
 0x64a   : > { %v1074_v52 = vpop.xlane.xlu2 %1073 }
 0x64b   : > { %v1075_v53 = vmul.f32 %v1074_v52, %v4538_v28 }
 0x64d   : > { %v1076_v54 = vadd.f32 1e-05, %v1075_v53 }
 0x64f   : > { %4107 = vrsqrt.f32 %v1076_v54  ;;  %vm1083_vm13 = vweird.f32 %v1076_v54 }
 0x652   : > { %v1293_v44 = vpop.permute.xlu2 %1292 }
 0x653   : > { %3714 = vmatpush.xpose.msk.msra.mxu0 %vm689_vm9, %v1293_v44 }
 0x655   : > { %v4108_v55 = vpop.eup %4107  ;;  %v1226_v11 = vpop.permute.xlu1 %1225 }
 0x656   : > { %v1078_v56 = vmul.f32 %v4108_v55, %v1076_v54  ;;  %vm1084_vm12 = vweird.f32 %v4108_v55  ;;  %3710 = vmatpush.xpose.msk.msra.mxu3 %vm689_vm9, %v1226_v11 }
 0x657   : > { %vm1085_vm14 = vmor %vm1083_vm13, %vm1084_vm12 }
 0x658   : > { %v1079_v57 = vmul.f32 %v4108_v55, %v1078_v56 }
 0x65a   : > { %v1080_v58 = vmul.f32 0.5, %v1079_v57 }
 0x65c   : > { %v1081_v59 = vsub.f32 1.5, %v1080_v58 }
 0x65e   : > { %v1082_v61 = vmul.f32 %v4108_v55, %v1081_v59 }
 0x660   : > { %v1086_v62 = vsel %vm1085_vm14, %v4108_v55, %v1082_v61 }
 0x661   : > { %v1087_v5 = vmul.f32 %v1086_v62, %v1070_v41 }
 0x663   : > { %v1090_v7 = vmul.f32 %v1089_v63, %v1087_v5 }
 0x665   : > { %v1096_v8 = vadd.f32 %v1094_v6, %v1090_v7 }
 0x667   : > { %3704 = vmatmul.msk.f32.vlgmr.msrb.gmra.mxu3 %vm593_vm0, %v1096_v8 }
 0x6ea   : > { %v1125_v10 = vpop.f32.mrf.mxu3 }
 0x6eb   : > { %v1126_v40 = vadd.f32 %v4072_v51, %v1125_v10  ;;  %v3986_v10 = vpack.i.bf16 %v4683_v48, %v4677_v47 }
 0x6ed   : > { %1357 = vrot.lane.b32.xlu0 %v1126_v40, %s5642_s18  ;;  %1223 = vrot.lane.b32.xlu1 %v1126_v40, %s5641_s27 }
 0x6ee   : > { %3707 = vmatmul.msk.f32.vlgmr.msrb.gmra.mxu0 %vm689_vm9, %v1126_v40 }
 0x6f5   : > { %1359 = vrot.lane.b32.xlu1 %v4705_v39, %s5642_s18 }
 0x6fd   : > { %1290 = vrot.lane.b32.xlu1 %v1126_v40, %s5640_s29  ;;  %v3991_v40 = vpack.i.bf16 %v4696_v50, %v4688_v49 }
 0x75f   : > { %v1224_v12 = vpop.permute.xlu1 %1223  ;;  %v1358_v14 = vpop.permute.xlu0 %1357 }
 0x760   : > { %3711 = vmatmul.msk.f32.vlgmr.msra.gmra.mxu3 %vm689_vm9, %v1224_v12 }
 0x767   : > { %v1360_v13 = vpop.permute.xlu1 %1359 }
 0x768   : > { %3718 = vmatpush.xpose.msk.msrb.mxu3 %vm689_vm9, %v1360_v13 }
 0x76b   : > { %v1179_v15 = vpop.f32.mrf.mxu0  ;;  %3719 = vmatmul.msk.f32.vlgmr.msrb.gmra.mxu3 %vm689_vm9, %v1358_v14 }
 0x76c   : > { %v1182_v16 = vmul.f32 0.35355338, %v1179_v15 }
 0x76e   : > { %v1184_v17 = vsel %vm1183_vm15, %v1182_v16, -inf }
 0x76f   : > { %1185 = vmax.xlane.f32.xlu0 %v1184_v17  ;;  %v1291_v0 = vpop.permute.xlu1 %1290 }
 0x770   : > { %3715 = vmatmul.msk.f32.vlgmr.msra.gmra.mxu0 %vm689_vm9, %v1291_v0 }
 0x7e2   : > { %v1186_v2 = vpop.xlane.xlu0 %1185 }
 0x7e3   : > { %v1248_v1 = vpop.f32.mrf.mxu3  ;;  %v1187_v19 = vsub.f32 %v1182_v16, %v1186_v2  ;;  %v4073_v2 = vld [vmem:[%s5556_s6 + $0x2] ss:$0 sm:$0xff] }
 0x7e4   : > { %v1251_v3 = vmul.f32 0.35355338, %v1248_v1 }
 0x7e5   : > { %v1188_v20 = vmul.f32 1.442695, %v1187_v19  ;;  %v1543_v19 = vld [vmem:[%s5560_s10 + $0x10] sm:$0x7] }
 0x7e6   : > { %v1252_v18 = vsel %vm1183_vm15, %v1251_v3, -inf }
 0x7e7   : > { %1253 = vmax.xlane.f32.xlu1 %v1252_v18  ;;  %4109 = vpow2.f32 %v1188_v20  ;;  %v4358_v18 = vmov 0  }
 0x7e8   : > { %3996 = vset.pattern.permute.xlu1 %v4358_v18  ;;  %4017 = vset.pattern.permute.xlu2 %v4358_v18 }
 0x7e9   : > { %4048 = vset.pattern.permute.xlu0 %v4358_v18 }
 0x7ed   : > { %v1315_v22 = vpop.f32.mrf.mxu0  ;;  %v4110_v31 = vpop.eup %4109 }
 0x7ee   : > { %v1318_v23 = vmul.f32 0.35355338, %v1315_v22  ;;  %v1382_v24 = vpop.f32.mrf.mxu3  ;;  %v1190_v32 = vsel %vm1183_vm15, %v4110_v31, 0.0 }
 0x7ef   : > { %v1385_v26 = vmul.f32 0.35355338, %v1382_v24 }
 0x7f0   : > { %v1319_v27 = vsel %vm1183_vm15, %v1318_v23, -inf }
 0x7f1   : > { %1320 = vmax.xlane.f32.xlu1 %v1319_v27  ;;  %v1386_v29 = vsel %vm1183_vm15, %v1385_v26, -inf }
 0x7f2   : > { %1387 = vmax.xlane.f32.xlu2 %v1386_v29 }
 0x7f9   : > { %1191 = vadd.xlane.f32.xlu1 %v1190_v32 }
 0x80a   : > { %1263 = vrot.lane.b32.xlu2 %v4705_v39, %s5643_s16 }
 0x812   : > { %1330 = vrot.lane.b32.xlu2 %v4705_v39, %s5644_s23 }
 0x85a   : > { %v1254_v33 = vpop.xlane.xlu1 %1253 }
 0x85b   : > { %v1255_v34 = vsub.f32 %v1251_v3, %v1254_v33  ;;  %v1492_v3 = vld [vmem:[%s5560_s10] sm:$0xff] }
 0x85d   : > { %v1256_v35 = vmul.f32 1.442695, %v1255_v34  ;;  %v1490_v34 = vld [vmem:[%s5557_s7] sm:$0xff] }
 0x85f   : > { %4111 = vpow2.f32 %v1256_v35 }
 0x864   : > { %v1321_v36 = vpop.xlane.xlu1 %1320 }
 0x865   : > { %v4112_v37 = vpop.eup %4111  ;;  %v1322_v41 = vsub.f32 %v1318_v23, %v1321_v36  ;;  %v1388_v42 = vpop.xlane.xlu2 %1387 }
 0x866   : > { %v1389_v43 = vsub.f32 %v1385_v26, %v1388_v42  ;;  %v1258_v4 = vsel %vm1183_vm15, %v4112_v37, 0.0 }
 0x867   : > { %v1323_v45 = vmul.f32 1.442695, %v1322_v41  ;;  %1259 = vadd.xlane.f32.xlu0 %v1258_v4 }
 0x868   : > { %v1390_v46 = vmul.f32 1.442695, %v1389_v43  ;;  %v1542_v43 = vld [vmem:[%s5558_s8] sm:$0x7] }
 0x869   : > { %4113 = vpow2.f32 %v1323_v45 }
 0x86a   : > { %4115 = vpow2.f32 %v1390_v46 }
 0x86c   : > { %v1192_v59 = vpop.xlane.xlu1 %1191 }
 0x86d   : > { %v1264_v51 = vpop.permute.xlu2 %1263 }
 0x86e   : > { %3712 = vmatpush.msk.msrb.mxu2 %vm1200_vm1, %v1264_v51 }
 0x86f   : > { %v4114_v52 = vpop.eup %4113 }
 0x870   : > { %v4116_v53 = vpop.eup %4115  ;;  %v1325_v54 = vsel %vm1183_vm15, %v4114_v52, 0.0 }
 0x871   : > { %1326 = vadd.xlane.f32.xlu1 %v1325_v54  ;;  %v1392_v55 = vsel %vm1183_vm15, %v4116_v53, 0.0 }
 0x872   : > { %1393 = vadd.xlane.f32.xlu0 %v1392_v55 }
 0x875   : > { %v1331_v7 = vpop.permute.xlu2 %1330 }
 0x886   : > { %1195 = vrot.lane.b32.xlu0 %v4705_v39, %s5639_s17 }
 0x88a   : > { %1397 = vrot.lane.b32.xlu1 %v4705_v39, %s5645_s24 }
 0x88e   : > { %3987 = vrot.lane.b32.xlu0 %v3986_v10, %s5639_s17 }
 0x896   : > { %3992 = vrot.lane.b32.xlu0 %v3991_v40, %s5639_s17 }
 0x89e   : > { %1462 = vrot.lane.b32.xlu0 %v4073_v2, %s5649_s14 }
 0x8da   : > { %v1260_v56 = vpop.xlane.xlu0 %1259 }
 0x8db   : > { %4117 = vrcp.f32 %v1260_v56 }
 0x8dc   : > { %4119 = vrcp.f32 %v1192_v59 }
 0x8e1   : > { %v4118_v57 = vpop.eup %4117 }
 0x8e2   : > { %v1262_v58 = vmul.f32 %v4118_v57, %v4112_v37  ;;  %v4120_v62 = vpop.eup %4119 }
 0x8e3   : > { %v1194_v63 = vmul.f32 %v4120_v62, %v4110_v31 }
 0x8e4   : > { %3713 = vmatmul.msk.f32.vlgmr.msrb.gmra.mxu2 %vm1183_vm15, %v1262_v58  ;;  %v1327_v61 = vpop.xlane.xlu1 %1326 }
 0x8e5   : > { %v1394_v60 = vpop.xlane.xlu0 %1393 }
 0x8e6   : > { %4121 = vrcp.f32 %v1394_v60 }
 0x8e7   : > { %4123 = vrcp.f32 %v1327_v61 }
 0x8ec   : > { %v4122_v6 = vpop.eup %4121 }
 0x8ed   : > { %v1396_v8 = vmul.f32 %v4122_v6, %v4116_v53  ;;  %v4124_v38 = vpop.eup %4123 }
 0x8ee   : > { %v1329_v39 = vmul.f32 %v4124_v38, %v4114_v52 }
 0x8f8   : > { %v1196_v5 = vpop.permute.xlu0 %1195 }
 0x8f9   : > { %3708 = vmatpush.msk.msra.mxu1 %vm1200_vm1, %v1196_v5 }
 0x8fa   : > { %3709 = vmatmul.msk.f32.vlgmr.msra.gmra.mxu1 %vm1183_vm15, %v1194_v63 }
 0x8fb   : > { %3716 = vmatpush.msk.msrb.mxu1 %vm1200_vm1, %v1331_v7 }
 0x8fc   : > { %v1398_v9 = vpop.permute.xlu1 %1397 }
 0x8fd   : > { %3720 = vmatpush.msk.msra.mxu2 %vm1200_vm1, %v1398_v9 }
 0x8fe   : > { %3721 = vmatmul.msk.f32.vlgmr.msra.gmra.mxu2 %vm1183_vm15, %v1396_v8 }
 0x900   : > { %v3988_v14 = vpop.permute.xlu0 %3987 }
 0x901   : > { %v3990_v15 = vunpack.i.h.bf16 %v3988_v14  ;;  %v3989_v16 = vunpack.i.l.bf16 %v3988_v14 }
 0x902   : > { %3717 = vmatmul.msk.f32.vlgmr.msrb.gmra.mxu1 %vm1183_vm15, %v1329_v39 }
 0x903   : > { %1480 = vmatpush.msrb.mxu0 %v3989_v16 }
 0x905   : > { %1481 = vmatpush.msrb.mxu0 %v3990_v15 }
 0x908   : > { %v3993_v17 = vpop.permute.xlu0 %3992 }
 0x909   : > { %v3995_v0 = vunpack.i.h.bf16 %v3993_v17  ;;  %v3994_v1 = vunpack.i.l.bf16 %v3993_v17 }
 0x90b   : > { %1482 = vmatpush.msrb.mxu0 %v3994_v1 }
 0x90d   : > { %1483 = vmatpush.msrb.mxu0 %v3995_v0 }
 0x910   : > { %v1463_v29 = vpop.permute.xlu0 %1462 }
 0x967   : > { %v1287_v44 = vpop.f32.mrf.mxu2 }
 0x968   : > { %1425 = vrot.lane.b32.xlu2 %v1287_v44, %s5646_s30 }
 0x977   : > { %v1220_v11 = vpop.f32.mrf.mxu1 }
 0x97f   : > { %v1354_v12 = vpop.f32.mrf.mxu1 }
 0x980   : > { %1429 = vrot.lane.b32.xlu1 %v1354_v12, %s5647_s25 }
 0x981   : > { %v1421_v13 = vpop.f32.mrf.mxu2 }
 0x982   : > { %1433 = vrot.lane.b32.xlu2 %v1421_v13, %s5648_s26  ;;  %v576_v13 = vlaneseq }
 0x984   : > { %v577_v16 = vshrl.u32 %v576_v13, 7  ;;  %v579_v2 = vand.u32 127, %v576_v13 }
 0x986   : > { %v584_v18 = vadd.s32 1, %v577_v16 }
 0x988   : > { %1496 = vperm.xlu1 %3996, %v1492_v3   ;;  %v3685_v3 = vadd.s32 4294967295, %v577_v16  ;;  %vm585_vm14 = vcmp.eq.s32.totalorder %v579_v2, %v584_v18 }
 0x98a   : > { %vm581_vm13 = vcmp.eq.s32.totalorder %v579_v2, %v3685_v3 }
 0x990   : > { %1546 = vperm.xlu1 %3996, %v1543_v19  }
 0x9c2   : > { %v1426_v20 = vpop.permute.xlu2 %1425 }
 0x9c3   : > { %v1436_v22 = vsel %vm689_vm9, %v1220_v11, %v1426_v20 }
 0x9dc   : > { %v1434_v24 = vpop.permute.xlu2 %1433 }
 0x9f2   : > { %v1430_v23 = vpop.permute.xlu1 %1429 }
 0x9f3   : > { %v1437_v26 = vsel %vm963_vm10, %v1436_v22, %v1430_v23 }
 0x9f4   : > { %v1438_v27 = vsel %vm965_vm11, %v1437_v26, %v1434_v24  ;;  %v4361_v26 = vmov 0.0  }
 0x9f5   : > { %3722 = vmatmul.msk.f32.vlgmr.msrb.gmra.mxu0 %vm593_vm0, %v1438_v27  ;;  %v4795_v27 = vsel %vm581_vm13, 1.0, %v4361_v26 }
 0x9fa   : > { %v1497_v36 = vpop.permute.xlu1 %1496 }
 0xa02   : > { %v1547_v45 = vpop.permute.xlu1 %1546 }
 0xa72   : > { %v1485_v31 = vpop.f32.mrf.mxu0 }
 0xa73   : > { %v1486_v32 = vadd.f32 %v1485_v31, %v1463_v29  ;;  %v4797_v29 = vsel %vm585_vm14, 1.0, %v4361_v26 }
 0xa75   : > { %v4773_v33 = vadd.f32 %v1486_v32, %v4653_v30 }
 0xa77   : > { %1524 = vmatpush.msra.mxu1 %v4773_v33  ;;  %v1799_v35 = vsel %vm593_vm0, %v4773_v33, 0.0 }
 0xa78   : > { %1800 = vadd.xlane.f32.xlu1 %v1799_v35  ;;  %3723 = vmatmul.msk.f32.vlgmr.msra.gmra.mxu1 %vm689_vm9, %v1490_v34 }
 0xaeb   : > { %v1801_v31 = vpop.xlane.xlu1 %1800 }
 0xaec   : > { %v1802_v32 = vmul.f32 %v1801_v31, %v4538_v28 }
 0xaee   : > { %v4809_v34 = vsub.f32 %v4773_v33, %v1802_v32 }
 0xaf0   : > { %v1804_v35 = vmul.f32 %v4809_v34, %v4809_v34 }
 0xaf5   : > { %v1526_v37 = vpop.f32.mrf.mxu1 }
 0xaf6   : > { %v1527_v41 = vadd.f32 %v1526_v37, %v1497_v36  ;;  %v1805_v36 = vsel %vm593_vm0, %v1804_v35, 0.0  ;;  %v4817_v37 = vld [vmem:[%s5556_s6 + $0x4] ss:$0 sm:$0xff] }
 0xaf7   : > { %1825 = vrot.lane.b32.xlu1 %v4817_v37, %s5652_s15 }
 0xaf8   : > { %1532 = vrot.lane.b32.xlu0 %v1527_v41, %s5605_s2  ;;  %1537 = vrot.lane.b32.xlu2 %v1527_v41, %s5604_s13 }
 0xb52   : > { %v1538_v30 = vpop.permute.xlu2 %1537 }
 0xb53   : > { %3725 = vmatpush.msk.msra.mxu3 %vm1540_vm2, %v1538_v30  ;;  %v1836_v30 = vld [vmem:[%s5634_s3 + $0x78] sm:$0xff] }
 0xb55   : > { %1566 = vmatpush.msra.mxu3 %v1527_v41 }
 0xb6a   : > { %v1533_v4 = vpop.permute.xlu0 %1532 }
 0xb6b   : > { %3727 = vmatpush.msk.msra.mxu3 %vm4785_vm4, %v1533_v4  ;;  %v1740_v4 = vld [vmem:[%s5557_s7 + $0x10] sm:$0xf] }
 0xb6c   : > { %3728 = vmatmul.msk.f32.vlgmr.msra.gmra.mxu3 %vm965_vm11, %v1542_v43  ;;  %v3997_v43 = vpack.i.bf16 %v1836_v30, %v4677_v47  ;;  %v1682_v47 = vld [vmem:[%s5559_s9 + $0x48] sm:$0xff]  ;;  %v575_v30 = vld [vmem:[%s5653_s11] sm:$0xff]  ;;  %s5656_s11 = smov 48  }
 0xbef   : > { %v1569_v46 = vpop.f32.mrf.mxu3 }
 0xbf0   : > { %v1570_v51 = vadd.f32 %v1569_v46, %v1547_v45  ;;  %v1684_v45 = vld [vmem:[%s5559_s9 + $0x58] sm:$0xff]  ;;  %v1683_v46 = vld [vmem:[%s5559_s9 + $0x50] sm:$0xff] }
 0xbf1   : > { %1698 = vmatpush.msrb.mxu1 %v1684_v45 }
 0xbf2   : > { %v1573_v52 = vmul.f32 0.70710677, %v1570_v51  ;;  %v1572_v22 = vmul.f32 0.5, %v1570_v51  ;;  %v1834_v51 = vld [vmem:[%s5634_s3 + $0x58] sm:$0xff] }
 0xbf3   : > { %1699 = vmatpush.msrb.mxu1 %v1683_v46 }
 0xbf4   : > { %v1574_v53 = vand.u32 2147483647, %v1573_v52  ;;  %vm1607_vm12 = vcmp.ge.f32.partialorder %v1573_v52, 0.0  ;;  %v1491_v52 = vld [vmem:[%s5557_s7 + $0x8] sm:$0xff] }
 0xbf5   : > { %3724 = vmatmul.msk.f32.gmra.mxu1 %vm689_vm9, %v1491_v52 }
 0xbf6   : > { %v1575_v54 = vmul.f32 0.3275911, %v1574_v53  ;;  %v1601_v6 = vsub.f32 0.0, %v1574_v53  ;;  %1700 = vmatpush.msrb.mxu1 %v1682_v47 }
 0xbf8   : > { %v1576_v55 = vadd.f32 1.0, %v1575_v54  ;;  %v1602_v38 = vmul.f32 %v1601_v6, %v1574_v53  ;;  %v1681_v53 = vld [vmem:[%s5559_s9 + $0x40] sm:$0xff]  ;;  %v4002_v54 = vpack.i.bf16 %v1834_v51, %v4683_v48  ;;  %v1741_v6 = vld [vmem:[%s5560_s10 + $0x13] sm:$0xf] }
 0xbf9   : > { %1701 = vmatpush.msrb.mxu1 %v1681_v53  ;;  %v1677_v48 = vld [vmem:[%s5559_s9 + $0x20] sm:$0xff] }
 0xbfa   : > { %4125 = vrcp.f32 %v1576_v55  ;;  %v1588_v59 = vand.u32 2147483648, %v1576_v55  ;;  %v1586_v61 = vand.u32 2147483647, %v1576_v55  ;;  %vm1582_vm6 = vweird.f32 %v1576_v55 }
 0xbfb   : > { %v1603_v40 = vmul.f32 1.442695, %v1602_v38 }
 0xbfc   : > { %v1589_v63 = vor.u32 1.1754944e-38, %v1588_v59  ;;  %vm1587_vm8 = vcmp.eq.f32.partialorder %v1586_v61, 8.507059e+37  ;;  %v1675_v59 = vld [vmem:[%s5559_s9 + $0x10] sm:$0xff]  ;;  %v1673_v61 = vld [vmem:[%s5559_s9] sm:$0xff] }
 0xbfd   : > { %4127 = vpow2.f32 %v1603_v40 }
 0xc00   : > { %v4126_v56 = vpop.eup %4125 }
 0xc01   : > { %v1578_v57 = vmul.f32 %v4126_v56, %v1576_v55  ;;  %vm1583_vm5 = vweird.f32 %v4126_v56  ;;  %v1680_v55 = vld [vmem:[%s5559_s9 + $0x38] sm:$0xff] }
 0xc02   : > { %vm1584_vm7 = vmor %vm1582_vm6, %vm1583_vm5  ;;  %vm1612_vm5 = vcmask 23552   ;;  %1702 = vmatpush.msrb.mxu1 %v1680_v55  ;;  %vm1671_vm6 = vcmask 523264  }
 0xc03   : > { %v1579_v58 = vsub.f32 1.0, %v1578_v57  ;;  %v4128_v17 = vpop.eup %4127  ;;  %v1678_v57 = vld [vmem:[%s5559_s9 + $0x28] sm:$0xff] }
 0xc05   : > { %v1580_v60 = vmul.f32 %v4126_v56, %v1579_v58  ;;  %v1676_v58 = vld [vmem:[%s5559_s9 + $0x18] sm:$0xff] }
 0xc07   : > { %v1581_v62 = vadd.f32 %v4126_v56, %v1580_v60  ;;  %v1674_v60 = vld [vmem:[%s5559_s9 + $0x8] sm:$0xff] }
 0xc09   : > { %v1585_v5 = vsel %vm1584_vm7, %v4126_v56, %v1581_v62  ;;  %v1679_v56 = vld [vmem:[%s5559_s9 + $0x30] sm:$0xff]  ;;  %v1830_v62 = vld [vmem:[%s5634_s3 + $0x18] sm:$0xff]  ;;  %vm1690_vm7 = vcmask 785408  }
 0xc0a   : > { %v1590_v7 = vsel %vm1587_vm8, %v1589_v63, %v1585_v5  ;;  %1703 = vmatpush.msrb.mxu1 %v1679_v56  ;;  %v4012_v63 = vpack.i.bf16 %v1830_v62, %v4696_v50  ;;  %v1832_v5 = vld [vmem:[%s5634_s3 + $0x38] sm:$0xff] }
 0xc0b   : > { %v1592_v8 = vmul.f32 1.0614054, %v1590_v7 }
 0xc0c   : > { %1704 = vmatpush.msrb.mxu1 %v1678_v57  ;;  %v1951_v57 = vld [vmem:[%s5555_s5 + $0x78] sm:$0xff] }
 0xc0d   : > { %v3729_v9 = vadd.f32 -1.4531521, %v1592_v8 }
 0xc0e   : > { %1705 = vmatpush.msrb.mxu1 %v1677_v48  ;;  %v1950_v48 = vld [vmem:[%s5555_s5 + $0x70] sm:$0xff] }
 0xc0f   : > { %v1594_v39 = vmul.f32 %v3729_v9, %v1590_v7 }
 0xc10   : > { %1706 = vmatpush.msrb.mxu1 %v1676_v58  ;;  %v4075_v58 = vld [vmem:[%s5556_s6 + $0x3] ss:$0 sm:$0xff] }
 0xc11   : > { %v1595_v10 = vadd.f32 1.4214138, %v1594_v39 }
 0xc12   : > { %1707 = vmatpush.msrb.mxu1 %v1675_v59  ;;  %v1949_v59 = vld [vmem:[%s5555_s5 + $0x68] sm:$0xff] }
 0xc13   : > { %v1596_v44 = vmul.f32 %v1595_v10, %v1590_v7 }
 0xc14   : > { %1708 = vmatpush.msrb.mxu1 %v1674_v60 }
 0xc15   : > { %v3730_v11 = vadd.f32 -0.28449672, %v1596_v44 }
 0xc16   : > { %1709 = vmatpush.msrb.mxu1 %v1673_v61  ;;  %v1948_v61 = vld [vmem:[%s5555_s5 + $0x60] sm:$0xff] }
 0xc17   : > { %v1598_v12 = vmul.f32 %v3730_v11, %v1590_v7 }
 0xc19   : > { %v1599_v14 = vadd.f32 0.2548296, %v1598_v12 }
 0xc1b   : > { %v1600_v15 = vmul.f32 %v1599_v14, %v1590_v7  ;;  %v4007_v7 = vpack.i.bf16 %v1832_v5, %v4688_v49 }
 0xc1d   : > { %v1605_v0 = vmul.f32 %v4128_v17, %v1600_v15 }
 0xc1f   : > { %v1606_v1 = vsub.f32 1.0, %v1605_v0 }
 0xc21   : > { %v1608_v19 = vsub.f32 0.0, %v1606_v1 }
 0xc23   : > { %v1609_v20 = vsel %vm1607_vm12, %v1606_v1, %v1608_v19 }
 0xc24   : > { %v1610_v23 = vadd.f32 1.0, %v1609_v20 }
 0xc26   : > { %v1611_v24 = vmul.f32 %v1610_v23, %v1572_v22 }
 0xc28   : > { %1663 = vrot.lane.b32.xlu2 %v1611_v24, %s5649_s14  ;;  %3731 = vmatpush.msk.msrb.mxu2 %vm1616_vm3, %v1611_v24 }
 0xc29   : > { %3733 = vmatpush.msk.msra.mxu0 %vm1616_vm3, %v1611_v24  ;;  %3732 = vmatmul.msk.f32.vlgmr.msrb.gmra.mxu2 %vm1612_vm5, %v4795_v27 }
 0xc2a   : > { %3734 = vmatmul.msk.f32.vlgmr.msra.gmra.mxu0 %vm1612_vm5, %v4797_v29  ;;  %1765 = vmatpush.msra.mxu2 %v4773_v33 }
 0xc2c   : > { %1953 = vmatpush.msrb.mxu2 %v1951_v57  ;;  %v4973_v57 = vld [vmem:[%s5634_s3 + $0xe0] sm:$0xff] }
 0xc2e   : > { %1954 = vmatpush.msrb.mxu2 %v1950_v48  ;;  %v4978_v48 = vld [vmem:[%s5634_s3 + $0xc0] sm:$0xff] }
 0xc30   : > { %1955 = vmatpush.msrb.mxu2 %v1949_v59  ;;  %v4990_v59 = vld [vmem:[%s5634_s3 + $0x80] sm:$0xff] }
 0xc31   : > { %3738 = vmatmul.msk.f32.vlgmr.msra.gmra.mxu2 %vm689_vm9, %v1740_v4 }
 0xc32   : > { %1956 = vmatpush.msrb.mxu2 %v1948_v61 }
 0xc51   : > { %1806 = vadd.xlane.f32.xlu2 %v1805_v36 }
 0xc69   : > { %4013 = vrot.lane.b32.xlu2 %v4012_v63, %s5652_s15  ;;  %v1947_v63 = vld [vmem:[%s5555_s5 + $0x58] sm:$0xff] }
 0xc6a   : > { %1957 = vmatpush.msrb.mxu2 %v1947_v63 }
 0xc71   : > { %1744 = vperm.xlu2 %4017, %v1741_v6   ;;  %v1946_v6 = vld [vmem:[%s5555_s5 + $0x50] sm:$0xff] }
 0xc72   : > { %v1529_v10 = vpop.f32.mrf.mxu1  ;;  %1958 = vmatpush.msrb.mxu2 %v1946_v6 }
 0xc73   : > { %v1942_v10 = vld [vmem:[%s5555_s5 + $0x30] sm:$0xff] }
 0xc79   : > { %1770 = vrot.lane.b32.xlu2 %v575_v30, %s4362_s0 }
 0xc82   : > { %v1664_v9 = vpop.permute.xlu2 %1663 }
 0xca7   : > { %v1660_v41 = vpop.f32.mrf.mxu0 }
 0xca8   : > { %1667 = vrot.lane.b32.xlu0 %v1660_v41, %s5652_s15 }
 0xcac   : > { %v1637_v8 = vpop.f32.mrf.mxu2 }
 0xcad   : > { %v1670_v50 = vsel %vm593_vm0, %v1637_v8, %v1664_v9  ;;  %v1945_v8 = vld [vmem:[%s5555_s5 + $0x48] sm:$0xff] }
 0xcae   : > { %1959 = vmatpush.msrb.mxu2 %v1945_v8 }
 0xcb0   : > { %1687 = vrot.lane.b32.xlu0 %v4817_v37, %s5648_s26 }
 0xcb4   : > { %v1767_v49 = vpop.f32.mrf.mxu2 }
 0xcb8   : > { %3998 = vrot.lane.b32.xlu0 %v3997_v43, %s5652_s15 }
 0xcc0   : > { %4003 = vrot.lane.b32.xlu0 %v4002_v54, %s5652_s15  ;;  %v1826_v54 = vpop.permute.xlu1 %1825 }
 0xcc4   : > { %v1807_v44 = vpop.xlane.xlu2 %1806 }
 0xcc5   : > { %v1808_v0 = vmul.f32 %v1807_v44, %v4538_v28  ;;  %v1940_v44 = vld [vmem:[%s5555_s5 + $0x20] sm:$0xff] }
 0xcc7   : > { %v1809_v2 = vadd.f32 1e-05, %v1808_v0  ;;  %v1937_v0 = vld [vmem:[%s5555_s5 + $0x8] sm:$0xff] }
 0xcc8   : > { %1821 = vrot.lane.b32.xlu0 %v4817_v37, %s5639_s17 }
 0xcc9   : > { %4129 = vrsqrt.f32 %v1809_v2  ;;  %vm1816_vm12 = vweird.f32 %v1809_v2 }
 0xccc   : > { %v4014_v12 = vpop.permute.xlu2 %4013 }
 0xccd   : > { %v4016_v18 = vunpack.i.h.bf16 %v4014_v12  ;;  %v4015_v46 = vunpack.i.l.bf16 %v4014_v12 }
 0xccf   : > { %v4130_v20 = vpop.eup %4129  ;;  %v1865_v55 = vsel %vm1671_vm6, %v4015_v46, %v4016_v18 }
 0xcd0   : > { %4008 = vrot.lane.b32.xlu0 %v4007_v7, %s5652_s15  ;;  %v1811_v22 = vmul.f32 %v4130_v20, %v1809_v2  ;;  %vm1817_vm8 = vweird.f32 %v4130_v20 }
 0xcd1   : > { %vm1818_vm13 = vmor %vm1816_vm12, %vm1817_vm8 }
 0xcd2   : > { %v1812_v23 = vmul.f32 %v4130_v20, %v1811_v22 }
 0xcd4   : > { %v1745_v14 = vpop.permute.xlu2 %1744  ;;  %v1813_v24 = vmul.f32 0.5, %v1812_v23 }
 0xcd5   : > { %v1768_v16 = vadd.f32 %v1767_v49, %v1745_v14  ;;  %v1939_v49 = vld [vmem:[%s5555_s5 + $0x18] sm:$0xff]  ;;  %v1938_v14 = vld [vmem:[%s5555_s5 + $0x10] sm:$0xff] }
 0xcd6   : > { %v1814_v26 = vsub.f32 1.5, %v1813_v24 }
 0xcd7   : > { %3739 = vmatpush.msk.msrb.mxu0 %vm1200_vm1, %v1768_v16 }
 0xcd8   : > { %v1815_v31 = vmul.f32 %v4130_v20, %v1814_v26 }
 0xcda   : > { %v1819_v36 = vsel %vm1818_vm13, %v4130_v20, %v1815_v31 }
 0xcdb   : > { %v1820_v45 = vmul.f32 %v1819_v36, %v4809_v34 }
 0xd1a   : > { %v1668_v38 = vpop.permute.xlu0 %1667 }
 0xd1b   : > { %v1672_v39 = vsel %vm1671_vm6, %v1670_v50, %v1668_v38  ;;  %v1944_v50 = vld [vmem:[%s5555_s5 + $0x40] sm:$0xff] }
 0xd1c   : > { %3735 = vmatmul.msk.f32.vlgmr.msrb.gmra.mxu1 %vm1690_vm7, %v1672_v39  ;;  %1960 = vmatpush.msrb.mxu2 %v1944_v50  ;;  %v1943_v39 = vld [vmem:[%s5555_s5 + $0x38] sm:$0xff] }
 0xd1e   : > { %1961 = vmatpush.msrb.mxu2 %v1943_v39 }
 0xd20   : > { %1962 = vmatpush.msrb.mxu2 %v1942_v10 }
 0xd22   : > { %v1688_v40 = vpop.permute.xlu0 %1687 }
 0xd2a   : > { %v3999_v11 = vpop.permute.xlu0 %3998 }
 0xd2b   : > { %v4001_v13 = vunpack.i.h.bf16 %v3999_v11  ;;  %v4000_v32 = vunpack.i.l.bf16 %v3999_v11 }
 0xd2d   : > { %2012 = vmatpush.msra.mxu0 %v4001_v13  ;;  %v1868_v47 = vsel %vm1671_vm6, %v4000_v32, %v4001_v13 }
 0xd32   : > { %v4004_v15 = vpop.permute.xlu0 %4003 }
 0xd33   : > { %v4006_v17 = vunpack.i.h.bf16 %v4004_v15  ;;  %v4005_v43 = vunpack.i.l.bf16 %v4004_v15 }
 0xd35   : > { %2013 = vmatpush.msra.mxu0 %v4006_v17  ;;  %v1867_v52 = vsel %vm1671_vm6, %v4005_v43, %v4006_v17 }
 0xd3a   : > { %v1822_v1 = vpop.permute.xlu0 %1821 }
 0xd3b   : > { %v1824_v51 = vmul.f32 %v1822_v1, %v1820_v45  ;;  %v1936_v1 = vld [vmem:[%s5555_s5] sm:$0xff] }
 0xd3d   : > { %v1828_v56 = vadd.f32 %v1826_v54, %v1824_v51 }
 0xd42   : > { %v4009_v3 = vpop.permute.xlu0 %4008 }
 0xd43   : > { %v4011_v19 = vunpack.i.h.bf16 %v4009_v3  ;;  %v4010_v4 = vunpack.i.l.bf16 %v4009_v3 }
 0xd45   : > { %2014 = vmatpush.msra.mxu0 %v4011_v19  ;;  %v1866_v53 = vsel %vm1671_vm6, %v4010_v4, %v4011_v19 }
 0xd47   : > { %2015 = vmatpush.msra.mxu0 %v4016_v18 }
 0xd99   : > { %v1711_v35 = vpop.f32.mrf.mxu1 }
 0xd9a   : > { %v1712_v41 = vadd.f32 %v1711_v35, %v1688_v40  ;;  %v1941_v40 = vld [vmem:[%s5555_s5 + $0x28] sm:$0xff] }
 0xd9b   : > { %1963 = vmatpush.msrb.mxu2 %v1941_v40 }
 0xd9c   : > { %3736 = vmatpush.msk.msrb.mxu3 %vm1616_vm3, %v1712_v41 }
 0xd9d   : > { %3737 = vmatmul.msk.f32.vlgmr.msrb.gmra.mxu3 %vm1612_vm5, %v575_v30  ;;  %1964 = vmatpush.msrb.mxu2 %v1940_v44 }
 0xd9e   : > { %1888 = vmatpush.msra.mxu3 %v1868_v47 }
 0xd9f   : > { %1965 = vmatpush.msrb.mxu2 %v1939_v49 }
 0xda0   : > { %1889 = vmatpush.msra.mxu3 %v1867_v52 }
 0xda1   : > { %1966 = vmatpush.msrb.mxu2 %v1938_v14 }
 0xda2   : > { %1890 = vmatpush.msra.mxu3 %v1866_v53 }
 0xda3   : > { %1967 = vmatpush.msrb.mxu2 %v1937_v0 }
 0xda4   : > { %1891 = vmatpush.msra.mxu3 %v1865_v55  ;;  %v4966_v55 = vpop.permute.xlu2 %1770 }
 0xda5   : > { %3741 = vmatmul.msk.f32.vlgmr.msra.gmra.mxu3 %vm593_vm0, %v1828_v56  ;;  %1968 = vmatpush.msrb.mxu2 %v1936_v1  ;;  %v4363_v56 = vmov 8.0  }
 0xda6   : > { %3740 = vmatmul.msk.f32.vlgmr.msrb.gmra.mxu0 %vm1183_vm15, %v4966_v55  ;;  %2039 = vmatpush.msrb.mxu3 %v4973_v57 }
 0xda8   : > { %2040 = vmatpush.msrb.mxu3 %v4978_v48 }
 0xe20   : > { %v4909_v34 = vpop.f32.mrf.mxu3 }
 0xe28   : > { %v1893_v60 = vpop.f32.mrf.mxu3 }
 0xe29   : > { %v4926_v62 = vadd.f32 %v4075_v58, %v1893_v60  ;;  %v4984_v58 = vld [vmem:[%s5634_s3 + $0xa0] sm:$0xff] }
 0xe2a   : > { %2041 = vmatpush.msrb.mxu3 %v4984_v58 }
 0xe2b   : > { %v1897_v5 = vmul.f32 0.70710677, %v4926_v62  ;;  %v1896_v52 = vmul.f32 0.5, %v4926_v62 }
 0xe2c   : > { %2042 = vmatpush.msrb.mxu3 %v4990_v59 }
 0xe2d   : > { %v1898_v7 = vand.u32 2147483647, %v1897_v5  ;;  %3750 = vmatmul.msk.f32.vlgmr.msrb.gmra.mxu3 %vm593_vm0, %v4534_v21  ;;  %v3787_v21 = vld [vmem:[%s5638_s4 + $0x10] sm:$0xff] }
 0xe2f   : > { %v1899_v9 = vmul.f32 0.3275911, %v1898_v7  ;;  %v1925_v20 = vsub.f32 0.0, %v1898_v7 }
 0xe31   : > { %v1900_v38 = vadd.f32 1.0, %v1899_v9  ;;  %v1926_v24 = vmul.f32 %v1925_v20, %v1898_v7  ;;  %v5035_v20 = vld [vmem:[%s5634_s3 + $0x88] sm:$0xff] }
 0xe33   : > { %4131 = vrcp.f32 %v1900_v38  ;;  %v1912_v15 = vand.u32 2147483648, %v1900_v38  ;;  %v1910_v17 = vand.u32 2147483647, %v1900_v38  ;;  %vm1906_vm8 = vweird.f32 %v1900_v38 }
 0xe34   : > { %v1927_v32 = vmul.f32 1.442695, %v1926_v24 }
 0xe35   : > { %v1913_v3 = vor.u32 1.1754944e-38, %v1912_v15  ;;  %vm1911_vm13 = vcmp.eq.f32.partialorder %v1910_v17, 8.507059e+37 }
 0xe36   : > { %4133 = vpow2.f32 %v1927_v32 }
 0xe37   : > { %4135 = vrcp.f32 %v4363_v56 }
 0xe39   : > { %v4132_v11 = vpop.eup %4131 }
 0xe3a   : > { %v1902_v12 = vmul.f32 %v4132_v11, %v1900_v38  ;;  %vm1907_vm14 = vweird.f32 %v4132_v11 }
 0xe3b   : > { %vm1908_vm12 = vmor %vm1906_vm8, %vm1907_vm14  ;;  %vm1931_vm14 = vcmp.ge.f32.partialorder %v1897_v5, 0.0 }
 0xe3c   : > { %v1903_v13 = vsub.f32 1.0, %v1902_v12  ;;  %v4134_v4 = vpop.eup %4133 }
 0xe3d   : > { %v4136_v60 = vpop.eup %4135 }
 0xe3e   : > { %v1904_v16 = vmul.f32 %v4132_v11, %v1903_v13  ;;  %v1982_v61 = vmul.f32 8.0, %v4136_v60  ;;  %vm1986_vm8 = vweird.f32 %v4136_v60 }
 0xe40   : > { %v1905_v2 = vadd.f32 %v4132_v11, %v1904_v16  ;;  %v1983_v6 = vsub.f32 1.0, %v1982_v61 }
 0xe42   : > { %v1909_v18 = vsel %vm1908_vm12, %v4132_v11, %v1905_v2  ;;  %v1984_v9 = vmul.f32 %v4136_v60, %v1983_v6 }
 0xe43   : > { %v1914_v19 = vsel %vm1911_vm13, %v1913_v3, %v1909_v18  ;;  %v5017_v3 = vld [vmem:[%s5634_s3 + $0xe8] sm:$0xff] }
 0xe44   : > { %v1916_v22 = vmul.f32 1.0614054, %v1914_v19  ;;  %v1985_v39 = vadd.f32 %v4136_v60, %v1984_v9  ;;  %v5022_v18 = vld [vmem:[%s5634_s3 + $0xc8] sm:$0xff]  ;;  %2101 = vmatpush.msrb.mxu0 %v5017_v3 }
 0xe46   : > { %v3742_v23 = vadd.f32 -1.4531521, %v1916_v22  ;;  %v4999_v44 = vsel %vm1986_vm8, %v4136_v60, %v1985_v39  ;;  %2102 = vmatpush.msrb.mxu0 %v5022_v18 }
 0xe48   : > { %v1918_v26 = vmul.f32 %v3742_v23, %v1914_v19 }
 0xe4a   : > { %v1919_v31 = vadd.f32 1.4214138, %v1918_v26 }
 0xe4c   : > { %v1920_v35 = vmul.f32 %v1919_v31, %v1914_v19 }
 0xe4e   : > { %v3743_v36 = vadd.f32 -0.28449672, %v1920_v35 }
 0xe50   : > { %v1922_v41 = vmul.f32 %v3743_v36, %v1914_v19 }
 0xe52   : > { %v1923_v30 = vadd.f32 0.2548296, %v1922_v41 }
 0xe54   : > { %v1924_v43 = vmul.f32 %v1923_v30, %v1914_v19  ;;  %v5028_v19 = vld [vmem:[%s5634_s3 + $0xa8] sm:$0xff] }
 0xe55   : > { %2103 = vmatpush.msrb.mxu0 %v5028_v19 }
 0xe56   : > { %v1929_v45 = vmul.f32 %v4134_v4, %v1924_v43 }
 0xe57   : > { %2104 = vmatpush.msrb.mxu0 %v5035_v20 }
 0xe58   : > { %v1930_v46 = vsub.f32 1.0, %v1929_v45 }
 0xe5a   : > { %v1932_v47 = vsub.f32 0.0, %v1930_v46 }
 0xe5c   : > { %v1933_v51 = vsel %vm1931_vm14, %v1930_v46, %v1932_v47 }
 0xe5d   : > { %v1934_v53 = vadd.f32 1.0, %v1933_v51 }
 0xe5f   : > { %v1935_v54 = vmul.f32 %v1934_v53, %v1896_v52  ;;  %v5040_v52 = vpop.f32.mrf.mxu0 }
 0xe61   : > { %1969 = vmatmul.f32.vlgmr.msrb.gmra.mxu2 %v1935_v54  ;;  %v4076_v54 = vld [vmem:[%s5556_s6 + $0x6] ss:$0 sm:$0xff] }
 0xeb0   : > { %v2044_v13 = vpop.f32.mrf.mxu3 }
 0xee4   : > { %v1970_v62 = vpop.f32.mrf.mxu2 }
 0xee5   : > { %v1971_v63 = vadd.f32 %v4817_v37, %v1970_v62  ;;  %v3749_v37 = vld [vmem:[%s5556_s6 + $0x5] sm:$0x1] }
 0xee6   : > { %v2045_v14 = vadd.f32 %v3749_v37, %v2044_v13 }
 0xee7   : > { %v1973_v5 = vadd.f32 %v1971_v63, %v4773_v33 }
 0xee8   : > { %v2072_v15 = vperm.slane %v2045_v14, 0  ;;  %v2069_v41 = vadd.f32 1.0, %v2045_v14 }
 0xee9   : > { %v1974_v7 = vsel %vm593_vm0, %v1973_v5, 0.0 }
 0xeea   : > { %v1975_v8 = vrot.slane %v1974_v7, 4  ;;  %2074 = vrot.lane.b32.xlu2 %v2072_v15, %s5639_s17  ;;  %v2070_v4 = vperm.slane %v2069_v41, 0 }
 0xeec   : > { %v1976_v50 = vadd.f32 %v1975_v8, %v1974_v7 }
 0xeee   : > { %v1977_v38 = vrot.slane %v1976_v50, 2 }
 0xef0   : > { %v1978_v10 = vadd.f32 %v1977_v38, %v1976_v50 }
 0xef2   : > { %v1979_v40 = vrot.slane %v1978_v10, 1 }
 0xef4   : > { %v1980_v11 = vadd.f32 %v1979_v40, %v1978_v10 }
 0xef6   : > { %v1988_v12 = vmul.f32 %v4999_v44, %v1980_v11 }
 0xef8   : > { %v5002_v49 = vsub.f32 %v1973_v5, %v1988_v12  ;;  %3744 = vmatmul.msk.f32.vlgmr.msra.gmra.mxu0 %vm593_vm0, %v1988_v12 }
 0xefa   : > { %v2047_v33 = vsel %vm593_vm0, %v5002_v49, 0.0 }
 0xefb   : > { %2048 = vadd.xlane.f32.xlu0 %v2047_v33 }
 0xf44   : > { %v2075_v46 = vpop.permute.xlu2 %2074 }
 0xf6e   : > { %v2049_v16 = vpop.xlane.xlu0 %2048 }
 0xf6f   : > { %v2050_v17 = vmul.f32 %v2049_v16, %v4538_v28 }
 0xf71   : > { %v2051_v0 = vsub.f32 %v5002_v49, %v2050_v17 }
 0xf73   : > { %v2052_v1 = vmul.f32 %v2051_v0, %v2051_v0 }
 0xf75   : > { %v2053_v2 = vsel %vm593_vm0, %v2052_v1, 0.0  ;;  %v5042_v53 = vpop.f32.mrf.mxu0 }
 0xf76   : > { %2054 = vadd.xlane.f32.xlu1 %v2053_v2 }
 0xfe9   : > { %v2055_v22 = vpop.xlane.xlu1 %2054 }
 0xfea   : > { %v2056_v23 = vmul.f32 %v2055_v22, %v4538_v28 }
 0xfec   : > { %v2057_v24 = vadd.f32 1e-05, %v2056_v23 }
 0xfee   : > { %4137 = vrsqrt.f32 %v2057_v24  ;;  %vm2064_vm13 = vweird.f32 %v2057_v24 }
 0xff4   : > { %v4138_v26 = vpop.eup %4137 }
 0xff5   : > { %v2059_v31 = vmul.f32 %v4138_v26, %v2057_v24  ;;  %vm2065_vm12 = vweird.f32 %v4138_v26 }
 0xff6   : > { %vm2066_vm14 = vmor %vm2064_vm13, %vm2065_vm12 }
 0xff7   : > { %v2060_v32 = vmul.f32 %v4138_v26, %v2059_v31 }
 0xff9   : > { %v2061_v35 = vmul.f32 0.5, %v2060_v32 }
 0xffb   : > { %v2062_v36 = vsub.f32 1.5, %v2061_v35 }
 0xffd   : > { %v2063_v30 = vmul.f32 %v4138_v26, %v2062_v36 }
 0xfff   : > { %v2067_v43 = vsel %vm2066_vm14, %v4138_v26, %v2063_v30 }
0x1000   : > { %v2068_v45 = vmul.f32 %v2067_v43, %v2051_v0 }
0x1002   : > { %v2071_v47 = vmul.f32 %v2070_v4, %v2068_v45 }
0x1004   : > { %v2077_v51 = vadd.f32 %v2075_v46, %v2071_v47 }
0x1006   : > { %3756 = vmatmul.msk.f32.vlgmr.msrb.gmra.mxu0 %vm593_vm0, %v2077_v51 }
0x1083   : > { %v2106_v56 = vpop.f32.mrf.mxu0 }
0x1084   : > { %v5047_v60 = vadd.f32 %v4076_v54, %v2106_v56 }
0x1086   : > { %2176 = vrot.lane.b32.xlu2 %v5047_v60, %s5643_s16  ;;  %2110 = vrot.lane.b32.xlu0 %v5047_v60, %s5639_s17 }
0x108e   : > { %2174 = vrot.lane.b32.xlu2 %v5047_v60, %s5641_s27 }
0x10e0   : > { %v2177_v61 = vpop.permute.xlu2 %2176 }
0x10e1   : > { %3760 = vmatpush.xpose.msk.msra.mxu0 %vm689_vm9, %v2177_v61 }
0x10e8   : > { %v2175_v62 = vpop.permute.xlu2 %2174 }
0x10e9   : > { %3761 = vmatmul.msk.f32.vlgmr.msra.gmra.mxu0 %vm689_vm9, %v2175_v62 }
0x10f8   : > { %v2111_v63 = vpop.permute.xlu0 %2110 }
0x10f9   : > { %3757 = vmatpush.xpose.msk.msra.mxu1 %vm689_vm9, %v2111_v63 }
0x10fc   : > { %3758 = vmatmul.msk.f32.vlgmr.msra.gmra.mxu1 %vm689_vm9, %v5047_v60 }
0x1166   : > { %v2199_v5 = vpop.f32.mrf.mxu0 }
0x1167   : > { %v2202_v6 = vmul.f32 0.35355338, %v2199_v5 }
0x1169   : > { %v2203_v7 = vsel %vm689_vm9, %v2202_v6, -inf }
0x116a   : > { %2204 = vmax.xlane.f32.xlu0 %v2203_v7 }
0x1179   : > { %v2133_v8 = vpop.f32.mrf.mxu1 }
0x117a   : > { %v2136_v9 = vmul.f32 0.35355338, %v2133_v8 }
0x117c   : > { %v2137_v50 = vsel %vm689_vm9, %v2136_v9, -inf }
0x117d   : > { %2138 = vmax.xlane.f32.xlu1 %v2137_v50 }
0x117e   : > { %2308 = vrot.lane.b32.xlu0 %v5047_v60, %s5645_s24 }
0x1196   : > { %2148 = vrot.lane.b32.xlu1 %v5047_v60, %s5652_s15 }
0x119e   : > { %2214 = vrot.lane.b32.xlu1 %v5047_v60, %s5654_s19 }
0x11a6   : > { %2240 = vrot.lane.b32.xlu1 %v5047_v60, %s5640_s29 }
0x11dd   : > { %v2205_v38 = vpop.xlane.xlu0 %2204 }
0x11de   : > { %v2206_v39 = vsub.f32 %v2202_v6, %v2205_v38 }
0x11e0   : > { %v2207_v10 = vmul.f32 1.442695, %v2206_v39 }
0x11e2   : > { %4139 = vpow2.f32 %v2207_v10 }
0x11e8   : > { %v4140_v40 = vpop.eup %4139 }
0x11e9   : > { %v2209_v11 = vsel %vm689_vm9, %v4140_v40, 0.0 }
0x11ea   : > { %2210 = vadd.xlane.f32.xlu1 %v2209_v11 }
0x11f0   : > { %v2139_v12 = vpop.xlane.xlu1 %2138  ;;  %v2309_v17 = vpop.permute.xlu0 %2308 }
0x11f1   : > { %v2140_v33 = vsub.f32 %v2136_v9, %v2139_v12  ;;  %v4023_v12 = vpack.i.bf16 %v5035_v20, %v5028_v19  ;;  %v4033_v19 = vpack.i.bf16 %v4990_v59, %v4984_v58  ;;  %v4077_v20 = vld [vmem:[%s5556_s6 + $0x6] ss:$0 sm:$0xff] }
0x11f3   : > { %v2141_v37 = vmul.f32 1.442695, %v2140_v33 }
0x11f5   : > { %4141 = vpow2.f32 %v2141_v37 }
0x11fb   : > { %v4142_v13 = vpop.eup %4141 }
0x11fc   : > { %v2143_v14 = vsel %vm689_vm9, %v4142_v13, 0.0 }
0x11fd   : > { %2144 = vadd.xlane.f32.xlu2 %v2143_v14 }
0x1203   : > { %2306 = vrot.lane.b32.xlu1 %v5047_v60, %s5642_s18 }
0x1208   : > { %v2149_v15 = vpop.permute.xlu1 %2148 }
0x1209   : > { %2169 = vmatpush.msra.mxu3 %v2149_v15 }
0x1210   : > { %v2215_v16 = vpop.permute.xlu1 %2214 }
0x1211   : > { %2235 = vmatpush.msrb.mxu1 %v2215_v16 }
0x1213   : > { %3766 = vmatpush.xpose.msk.msra.mxu1 %vm689_vm9, %v2309_v17 }
0x1215   : > { %2242 = vrot.lane.b32.xlu2 %v5047_v60, %s5644_s23 }
0x1218   : > { %v2241_v0 = vpop.permute.xlu1 %2240 }
0x125d   : > { %v2211_v1 = vpop.xlane.xlu1 %2210 }
0x125e   : > { %4143 = vrcp.f32 %v2211_v1 }
0x1264   : > { %v4144_v2 = vpop.eup %4143 }
0x1265   : > { %v2213_v22 = vmul.f32 %v4144_v2, %v4140_v40 }
0x1267   : > { %3762 = vmatmul.msk.f32.vlgmr.msrb.gmra.mxu1 %vm689_vm9, %v2213_v22 }
0x1270   : > { %v2145_v23 = vpop.xlane.xlu2 %2144 }
0x1271   : > { %4145 = vrcp.f32 %v2145_v23  ;;  %v4078_v23 = vld [vmem:[%s5556_s6 + $0x5] ss:$0 sm:$0xff] }
0x1275   : > { %v2307_v24 = vpop.permute.xlu1 %2306 }
0x1276   : > { %3767 = vmatmul.msk.f32.vlgmr.msra.gmra.mxu1 %vm689_vm9, %v2307_v24 }
0x1277   : > { %v4146_v26 = vpop.eup %4145 }
0x1278   : > { %v2147_v31 = vmul.f32 %v4146_v26, %v4142_v13  ;;  %v2243_v32 = vpop.permute.xlu2 %2242 }
0x1279   : > { %3763 = vmatpush.xpose.msk.msrb.mxu3 %vm689_vm9, %v2243_v32 }
0x127a   : > { %3759 = vmatmul.msk.f32.vlgmr.msra.gmra.mxu3 %vm689_vm9, %v2147_v31 }
0x1282   : > { %3764 = vmatmul.msk.f32.vlgmr.msrb.gmra.mxu3 %vm689_vm9, %v2241_v0 }
0x12e4   : > { %v2237_v35 = vpop.f32.mrf.mxu1 }
0x12f3   : > { %v2331_v36 = vpop.f32.mrf.mxu1 }
0x12f4   : > { %v2334_v41 = vmul.f32 0.35355338, %v2331_v36 }
0x12f6   : > { %v2335_v30 = vsel %vm689_vm9, %v2334_v41, -inf }
0x12f7   : > { %2336 = vmax.xlane.f32.xlu0 %v2335_v30 }
0x12fd   : > { %v2171_v43 = vpop.f32.mrf.mxu3 }
0x1305   : > { %v2265_v4 = vpop.f32.mrf.mxu3 }
0x1306   : > { %v2268_v45 = vmul.f32 0.35355338, %v2265_v4  ;;  %v3788_v4 = vld [vmem:[%s5638_s4 + $0x18] sm:$0xff] }
0x1308   : > { %v2269_v46 = vsel %vm689_vm9, %v2268_v45, -inf }
0x1309   : > { %2270 = vmax.xlane.f32.xlu1 %v2269_v46 }
0x1322   : > { %2346 = vrot.lane.b32.xlu1 %v5047_v60, %s5655_s21 }
0x132a   : > { %4024 = vrot.lane.b32.xlu1 %v4023_v12, %s5649_s14 }
0x136a   : > { %v2337_v47 = vpop.xlane.xlu0 %2336 }
0x136b   : > { %v2338_v51 = vsub.f32 %v2334_v41, %v2337_v47 }
0x136d   : > { %v2339_v54 = vmul.f32 1.442695, %v2338_v51 }
0x136f   : > { %4147 = vpow2.f32 %v2339_v54 }
0x1375   : > { %v4148_v56 = vpop.eup %4147 }
0x1376   : > { %v2341_v61 = vsel %vm689_vm9, %v4148_v56, 0.0 }
0x1377   : > { %2342 = vadd.xlane.f32.xlu2 %v2341_v61 }
0x137c   : > { %v2271_v62 = vpop.xlane.xlu1 %2270 }
0x137d   : > { %v2272_v63 = vsub.f32 %v2268_v45, %v2271_v62 }
0x137f   : > { %v2273_v5 = vmul.f32 1.442695, %v2272_v63  ;;  %v4079_v63 = vld [vmem:[%s5556_s6 + $0x7] ss:$0 sm:$0xff] }
0x1381   : > { %4149 = vpow2.f32 %v2273_v5  ;;  %v5146_v5 = vld [vmem:[%s5634_s3 + $0xf0] sm:$0xff] }
0x1382   : > { %2537 = vmatpush.msrb.mxu1 %v5146_v5 }
0x1387   : > { %v4150_v6 = vpop.eup %4149 }
0x1388   : > { %v2275_v7 = vsel %vm689_vm9, %v4150_v6, 0.0 }
0x1389   : > { %2276 = vadd.xlane.f32.xlu0 %v2275_v7  ;;  %v5157_v7 = vld [vmem:[%s5634_s3 + $0xb0] sm:$0xff] }
0x138f   : > { %2280 = vrot.lane.b32.xlu2 %v5047_v60, %s5656_s11  ;;  %v4018_v60 = vpack.i.bf16 %v5022_v18, %v5017_v3  ;;  %v4028_v18 = vpack.i.bf16 %v4978_v48, %v4973_v57 }
0x1391   : > { %4029 = vrot.lane.b32.xlu1 %v4028_v18, %s5652_s15 }
0x1394   : > { %v2347_v8 = vpop.permute.xlu1 %2346 }
0x1395   : > { %2367 = vmatpush.msra.mxu3 %v2347_v8  ;;  %v5164_v8 = vld [vmem:[%s5634_s3 + $0x90] sm:$0xff] }
0x1397   : > { %2373 = vrot.lane.b32.xlu2 %v2237_v35, %s5646_s30  ;;  %2565 = vmatpush.msrb.mxu3 %v3788_v4 }
0x1399   : > { %2566 = vmatpush.msrb.mxu3 %v3787_v21 }
0x139c   : > { %v4025_v14 = vpop.permute.xlu1 %4024 }
0x139d   : > { %4019 = vrot.lane.b32.xlu0 %v4018_v60, %s5649_s14  ;;  %v4026_v17 = vunpack.i.l.bf16 %v4025_v14  ;;  %v4027_v3 = vunpack.i.h.bf16 %v4025_v14 }
0x13ea   : > { %v2343_v9 = vpop.xlane.xlu2 %2342 }
0x13eb   : > { %4151 = vrcp.f32 %v2343_v9 }
0x13f1   : > { %v4152_v50 = vpop.eup %4151 }
0x13f2   : > { %v2345_v38 = vmul.f32 %v4152_v50, %v4148_v56  ;;  %v2281_v39 = vpop.permute.xlu2 %2280 }
0x13f3   : > { %2301 = vmatpush.msrb.mxu0 %v2281_v39 }
0x13f4   : > { %3768 = vmatmul.msk.f32.vlgmr.msra.gmra.mxu3 %vm689_vm9, %v2345_v38 }
0x13fa   : > { %v2374_v0 = vpop.permute.xlu2 %2373 }
0x13fb   : > { %v2384_v1 = vsel %vm689_vm9, %v2171_v43, %v2374_v0 }
0x13fc   : > { %v2277_v10 = vpop.xlane.xlu0 %2276 }
0x13fd   : > { %4153 = vrcp.f32 %v2277_v10 }
0x1403   : > { %v4154_v40 = vpop.eup %4153  ;;  %v4030_v58 = vpop.permute.xlu1 %4029 }
0x1404   : > { %v2279_v11 = vmul.f32 %v4154_v40, %v4150_v6  ;;  %v4032_v24 = vunpack.i.h.bf16 %v4030_v58  ;;  %v4031_v26 = vunpack.i.l.bf16 %v4030_v58  ;;  %v5151_v6 = vld [vmem:[%s5634_s3 + $0xd0] sm:$0xff] }
0x1405   : > { %2538 = vmatpush.msrb.mxu1 %v5151_v6 }
0x1406   : > { %3765 = vmatmul.msk.f32.vlgmr.msrb.gmra.mxu0 %vm689_vm9, %v2279_v11 }
0x1407   : > { %2475 = vmatpush.msra.mxu0 %v4031_v26  ;;  %2539 = vmatpush.msrb.mxu1 %v5157_v7 }
0x1409   : > { %2476 = vmatpush.msra.mxu0 %v4032_v24  ;;  %2540 = vmatpush.msrb.mxu1 %v5164_v8 }
0x140f   : > { %v4020_v13 = vpop.permute.xlu0 %4019 }
0x1410   : > { %v4022_v15 = vunpack.i.h.bf16 %v4020_v13  ;;  %v4021_v16 = vunpack.i.l.bf16 %v4020_v13 }
0x1412   : > { %2428 = vmatpush.msra.mxu2 %v4021_v16 }
0x1414   : > { %2429 = vmatpush.msra.mxu2 %v4022_v15 }
0x1416   : > { %2430 = vmatpush.msra.mxu2 %v4026_v17 }
0x1418   : > { %2431 = vmatpush.msra.mxu2 %v4027_v3 }
0x1477   : > { %v2369_v33 = vpop.f32.mrf.mxu3 }
0x1478   : > { %2381 = vrot.lane.b32.xlu2 %v2369_v33, %s5648_s26 }
0x1480   : > { %2410 = vrot.lane.b32.xlu2 %v4077_v20, %s5649_s14 }
0x1483   : > { %v2303_v37 = vpop.f32.mrf.mxu0 }
0x1484   : > { %2377 = vrot.lane.b32.xlu0 %v2303_v37, %s5647_s25 }
0x148c   : > { %4034 = vrot.lane.b32.xlu0 %v4033_v19, %s5652_s15 }
0x1494   : > { %2460 = vrot.lane.b32.xlu0 %v4078_v23, %s5652_s15 }
0x14d2   : > { %v2382_v22 = vpop.permute.xlu2 %2381 }
0x14da   : > { %v2411_v35 = vpop.permute.xlu2 %2410 }
0x14f6   : > { %v2378_v2 = vpop.permute.xlu0 %2377 }
0x14f7   : > { %v2385_v57 = vsel %vm963_vm10, %v2384_v1, %v2378_v2 }
0x14f8   : > { %v2386_v48 = vsel %vm965_vm11, %v2385_v57, %v2382_v22 }
0x14f9   : > { %3774 = vmatmul.msk.f32.vlgmr.msra.gmra.mxu2 %vm593_vm0, %v2386_v48 }
0x14fe   : > { %v4035_v59 = vpop.permute.xlu0 %4034 }
0x14ff   : > { %v4036_v31 = vunpack.i.l.bf16 %v4035_v59  ;;  %v4037_v32 = vunpack.i.h.bf16 %v4035_v59 }
0x1501   : > { %2477 = vmatpush.msra.mxu0 %v4036_v31 }
0x1503   : > { %2478 = vmatpush.msra.mxu0 %v4037_v32 }
0x1504   : > { %3780 = vmatmul.msk.f32.vlgmr.msra.gmra.mxu0 %vm593_vm0, %v1022_v25  ;;  %v4183_v25 = vld [vmem:[%s4665_s20] sm:$0xf] }
0x1505   : > { %3789 = vmatmul.msk.f32.vlgmr.msrb.gmra.mxu3 %vm963_vm10, %v4183_v25 }
0x1506   : > { %v2461_v45 = vpop.permute.xlu0 %2460 }
0x157c   : > { %v2433_v36 = vpop.f32.mrf.mxu2 }
0x157d   : > { %v2434_v41 = vadd.f32 %v2433_v36, %v2411_v35 }
0x157f   : > { %v5123_v30 = vadd.f32 %v2434_v41, %v5002_v49 }
0x1581   : > { %v2483_v43 = vsel %vm593_vm0, %v5123_v30, 0.0  ;;  %v2480_v49 = vpop.f32.mrf.mxu0 }
0x1582   : > { %2484 = vadd.xlane.f32.xlu1 %v2483_v43  ;;  %v2481_v46 = vadd.f32 %v2480_v49, %v2461_v45 }
0x1584   : > { %v2508_v47 = vperm.slane %v2481_v46, 0  ;;  %v2505_v12 = vadd.f32 1.0, %v2481_v46 }
0x1586   : > { %2510 = vrot.lane.b32.xlu0 %v2508_v47, %s5639_s17  ;;  %v2506_v13 = vperm.slane %v2505_v12, 0 }
0x1588   : > { %v2568_v3 = vpop.f32.mrf.mxu3 }
0x158e   : > { %2548 = vrot.lane.b32.xlu0 %v4079_v63, %s5639_s17 }
0x15f5   : > { %v2485_v51 = vpop.xlane.xlu1 %2484 }
0x15f6   : > { %v2486_v54 = vmul.f32 %v2485_v51, %v4538_v28 }
0x15f8   : > { %v2487_v56 = vsub.f32 %v5123_v30, %v2486_v54  ;;  %v2511_v15 = vpop.permute.xlu0 %2510 }
0x15fa   : > { %v2488_v61 = vmul.f32 %v2487_v56, %v2487_v56 }
0x15fc   : > { %v2489_v62 = vsel %vm593_vm0, %v2488_v61, 0.0 }
0x15fd   : > { %2490 = vadd.xlane.f32.xlu2 %v2489_v62 }
0x1600   : > { %v2549_v18 = vpop.permute.xlu0 %2548 }
0x1601   : > { %v5169_v19 = vadd.f32 %v2568_v3, %v2549_v18 }
0x1603   : > { %2638 = vrot.lane.b32.xlu0 %v5169_v19, %s5641_s27  ;;  %3790 = vmatpush.xpose.msk.msrb.mxu2 %vm689_vm9, %v5169_v19 }
0x1604   : > { %2772 = vrot.lane.b32.xlu1 %v5169_v19, %s5642_s18 }
0x160b   : > { %2705 = vrot.lane.b32.xlu0 %v5169_v19, %s5640_s29 }
0x1670   : > { %v2491_v9 = vpop.xlane.xlu2 %2490 }
0x1671   : > { %v2492_v50 = vmul.f32 %v2491_v9, %v4538_v28 }
0x1673   : > { %v2493_v38 = vadd.f32 1e-05, %v2492_v50 }
0x1675   : > { %4155 = vrsqrt.f32 %v2493_v38  ;;  %vm2500_vm12 = vweird.f32 %v2493_v38  ;;  %v2639_v1 = vpop.permute.xlu0 %2638 }
0x1676   : > { %3794 = vmatpush.xpose.msk.msra.mxu1 %vm689_vm9, %v2639_v1  ;;  %v2773_v22 = vpop.permute.xlu1 %2772 }
0x167b   : > { %v4156_v39 = vpop.eup %4155 }
0x167c   : > { %v2495_v10 = vmul.f32 %v4156_v39, %v2493_v38  ;;  %vm2501_vm8 = vweird.f32 %v4156_v39 }
0x167d   : > { %vm2502_vm13 = vmor %vm2500_vm12, %vm2501_vm8  ;;  %v2706_v2 = vpop.permute.xlu0 %2705 }
0x167e   : > { %v2496_v40 = vmul.f32 %v4156_v39, %v2495_v10  ;;  %3798 = vmatpush.xpose.msk.msra.mxu2 %vm689_vm9, %v2706_v2 }
0x1680   : > { %v2497_v11 = vmul.f32 0.5, %v2496_v40 }
0x1682   : > { %v2498_v60 = vsub.f32 1.5, %v2497_v11 }
0x1684   : > { %v2499_v33 = vmul.f32 %v4156_v39, %v2498_v60 }
0x1686   : > { %v2503_v37 = vsel %vm2502_vm13, %v4156_v39, %v2499_v33 }
0x1687   : > { %v2504_v14 = vmul.f32 %v2503_v37, %v2487_v56 }
0x1689   : > { %v2507_v16 = vmul.f32 %v2506_v13, %v2504_v14 }
0x168b   : > { %v2513_v17 = vadd.f32 %v2511_v15, %v2507_v16 }
0x168d   : > { %3786 = vmatmul.msk.f32.vlgmr.msrb.gmra.mxu1 %vm593_vm0, %v2513_v17 }
0x168e   : > { %3802 = vmatpush.xpose.msk.msrb.mxu1 %vm689_vm9, %v2773_v22 }
0x170a   : > { %v2542_v20 = vpop.f32.mrf.mxu1 }
0x170b   : > { %v2543_v0 = vadd.f32 %v4079_v63, %v2542_v20 }
0x170d   : > { %2703 = vrot.lane.b32.xlu2 %v2543_v0, %s5640_s29  ;;  %2636 = vrot.lane.b32.xlu0 %v2543_v0, %s5641_s27 }
0x170e   : > { %3791 = vmatmul.msk.f32.vlgmr.msrb.gmra.mxu2 %vm689_vm9, %v2543_v0 }
0x1715   : > { %2770 = vrot.lane.b32.xlu0 %v2543_v0, %s5642_s18  ;;  %s5663_s18 = sld [smem:[#allocation27_spill]] }
0x1767   : > { %v2704_v57 = vpop.permute.xlu2 %2703 }
0x1768   : > { %3799 = vmatmul.msk.f32.vlgmr.msra.gmra.mxu2 %vm689_vm9, %v2704_v57 }
0x177f   : > { %v2637_v48 = vpop.permute.xlu0 %2636 }
0x1780   : > { %3795 = vmatmul.msk.f32.vlgmr.msra.gmra.mxu1 %vm689_vm9, %v2637_v48  ;;  %v4038_v48 = vpack.i.bf16 %v5151_v6, %v5146_v5 }
0x1787   : > { %v2771_v58 = vpop.permute.xlu0 %2770 }
0x1788   : > { %3803 = vmatmul.msk.f32.vlgmr.msrb.gmra.mxu1 %vm689_vm9, %v2771_v58  ;;  %v4043_v58 = vpack.i.bf16 %v5164_v8, %v5157_v7 }
0x1791   : > { %v2594_v59 = vpop.f32.mrf.mxu2 }
0x1792   : > { %v2597_v23 = vmul.f32 0.35355338, %v2594_v59 }
0x1794   : > { %v2598_v24 = vsel %vm1183_vm15, %v2597_v23, -inf }
0x1795   : > { %2599 = vmax.xlane.f32.xlu1 %v2598_v24 }
0x17eb   : > { %v2728_v35 = vpop.f32.mrf.mxu2 }
0x17ec   : > { %v2731_v36 = vmul.f32 0.35355338, %v2728_v35 }
0x17ee   : > { %v2732_v21 = vsel %vm1183_vm15, %v2731_v36, -inf }
0x17fd   : > { %v2661_v26 = vpop.f32.mrf.mxu1 }
0x17fe   : > { %v2664_v31 = vmul.f32 0.35355338, %v2661_v26 }
0x1800   : > { %v2665_v32 = vsel %vm1183_vm15, %v2664_v31, -inf }
0x1801   : > { %2666 = vmax.xlane.f32.xlu0 %v2665_v32 }
0x1805   : > { %v2795_v41 = vpop.f32.mrf.mxu1 }
0x1806   : > { %v2798_v43 = vmul.f32 0.35355338, %v2795_v41 }
0x1808   : > { %v2600_v4 = vpop.xlane.xlu1 %2599  ;;  %v2799_v25 = vsel %vm1183_vm15, %v2798_v43, -inf }
0x1809   : > { %v2601_v45 = vsub.f32 %v2597_v23, %v2600_v4  ;;  %2733 = vmax.xlane.f32.xlu0 %v2732_v21  ;;  %2800 = vmax.xlane.f32.xlu2 %v2799_v25  ;;  %v4080_v4 = vld [vmem:[%s5556_s6 + $0x7] ss:$0 sm:$0xff] }
0x180b   : > { %v2602_v49 = vmul.f32 1.442695, %v2601_v45 }
0x180d   : > { %4157 = vpow2.f32 %v2602_v49 }
0x1813   : > { %v4158_v46 = vpop.eup %4157 }
0x1814   : > { %v2604_v47 = vsel %vm1183_vm15, %v4158_v46, 0.0 }
0x1815   : > { %2605 = vadd.xlane.f32.xlu1 %v2604_v47 }
0x181d   : > { %2676 = vrot.lane.b32.xlu0 %v5169_v19, %s5643_s16 }
0x1874   : > { %v2667_v51 = vpop.xlane.xlu0 %2666 }
0x1875   : > { %v2668_v54 = vsub.f32 %v2664_v31, %v2667_v51  ;;  %v3815_v51 = vld [vmem:[%s5560_s10 + $0x18] sm:$0xff] }
0x1877   : > { %v2669_v56 = vmul.f32 1.442695, %v2668_v54 }
0x1879   : > { %4159 = vpow2.f32 %v2669_v56 }
0x187c   : > { %v2734_v61 = vpop.xlane.xlu0 %2733  ;;  %v2801_v62 = vpop.xlane.xlu2 %2800 }
0x187d   : > { %v2735_v63 = vsub.f32 %v2731_v36, %v2734_v61  ;;  %v2802_v9 = vsub.f32 %v2798_v43, %v2801_v62 }
0x187f   : > { %v4160_v50 = vpop.eup %4159  ;;  %v2736_v38 = vmul.f32 1.442695, %v2735_v63  ;;  %v2803_v39 = vmul.f32 1.442695, %v2802_v9  ;;  %v3813_v63 = vld [vmem:[%s5557_s7 + $0x18] sm:$0xff] }
0x1880   : > { %v2671_v10 = vsel %vm1183_vm15, %v4160_v50, 0.0 }
0x1881   : > { %4161 = vpow2.f32 %v2736_v38  ;;  %2672 = vadd.xlane.f32.xlu0 %v2671_v10 }
0x1882   : > { %4163 = vpow2.f32 %v2803_v39 }
0x1887   : > { %v4162_v40 = vpop.eup %4161 }
0x1888   : > { %v4164_v11 = vpop.eup %4163  ;;  %v2738_v60 = vsel %vm1183_vm15, %v4162_v40, 0.0  ;;  %v2606_v13 = vpop.xlane.xlu1 %2605 }
0x1889   : > { %v2805_v12 = vsel %vm1183_vm15, %v4164_v11, 0.0  ;;  %2739 = vadd.xlane.f32.xlu1 %v2738_v60 }
0x188a   : > { %2806 = vadd.xlane.f32.xlu2 %v2805_v12 }
0x188f   : > { %v2677_v33 = vpop.permute.xlu0 %2676 }
0x1890   : > { %3796 = vmatpush.msk.msra.mxu3 %vm1200_vm1, %v2677_v33 }
0x1895   : > { %2743 = vrot.lane.b32.xlu0 %v5169_v19, %s5644_s23 }
0x189d   : > { %4039 = vrot.lane.b32.xlu0 %v4038_v48, %s5639_s17 }
0x18a2   : > { %2609 = vrot.lane.b32.xlu2 %v5169_v19, %s5639_s17  ;;  %2810 = vrot.lane.b32.xlu1 %v5169_v19, %s5645_s24 }
0x18aa   : > { %4044 = vrot.lane.b32.xlu1 %v4043_v58, %s5639_s17 }
0x18b2   : > { %2875 = vrot.lane.b32.xlu1 %v4080_v4, %s5649_s14 }
0x18f4   : > { %v2673_v37 = vpop.xlane.xlu0 %2672 }
0x18f5   : > { %4165 = vrcp.f32 %v2673_v37 }
0x18f6   : > { %4167 = vrcp.f32 %v2606_v13 }
0x18fb   : > { %v4166_v14 = vpop.eup %4165 }
0x18fc   : > { %v2675_v15 = vmul.f32 %v4166_v14, %v4160_v50  ;;  %v2740_v17 = vpop.xlane.xlu1 %2739  ;;  %v4168_v3 = vpop.eup %4167 }
0x18fd   : > { %v2807_v16 = vpop.xlane.xlu2 %2806  ;;  %4169 = vrcp.f32 %v2740_v17  ;;  %v2608_v18 = vmul.f32 %v4168_v3, %v4158_v46 }
0x18fe   : > { %3797 = vmatmul.msk.f32.vlgmr.msra.gmra.mxu3 %vm1183_vm15, %v2675_v15  ;;  %4171 = vrcp.f32 %v2807_v16 }
0x1903   : > { %v4170_v19 = vpop.eup %4169 }
0x1904   : > { %v2742_v1 = vmul.f32 %v4170_v19, %v4162_v40  ;;  %v4172_v2 = vpop.eup %4171  ;;  %v3819_v40 = vld [vmem:[%s5558_s8 + $0x4] sm:$0x7] }
0x1905   : > { %v2610_v20 = vpop.permute.xlu2 %2609  ;;  %v2809_v22 = vmul.f32 %v4172_v2, %v4164_v11 }
0x1906   : > { %3792 = vmatpush.msk.msrb.mxu0 %vm1200_vm1, %v2610_v20 }
0x1907   : > { %3793 = vmatmul.msk.f32.vlgmr.msrb.gmra.mxu0 %vm1183_vm15, %v2608_v18  ;;  %v2744_v0 = vpop.permute.xlu0 %2743 }
0x1908   : > { %3800 = vmatpush.msk.msra.mxu0 %vm1200_vm1, %v2744_v0 }
0x190f   : > { %3801 = vmatmul.msk.f32.vlgmr.msra.gmra.mxu0 %vm1183_vm15, %v2742_v1  ;;  %v4040_v31 = vpop.permute.xlu0 %4039 }
0x1910   : > { %v4042_v32 = vunpack.i.h.bf16 %v4040_v31  ;;  %v4041_v35 = vunpack.i.l.bf16 %v4040_v31 }
0x1912   : > { %2893 = vmatpush.msrb.mxu2 %v4041_v35 }
0x1914   : > { %v2811_v57 = vpop.permute.xlu1 %2810  ;;  %2894 = vmatpush.msrb.mxu2 %v4042_v32 }
0x1915   : > { %3804 = vmatpush.msk.msrb.mxu3 %vm1200_vm1, %v2811_v57 }
0x1916   : > { %3805 = vmatmul.msk.f32.vlgmr.msrb.gmra.mxu3 %vm1183_vm15, %v2809_v22 }
0x191c   : > { %v4045_v36 = vpop.permute.xlu1 %4044 }
0x191d   : > { %v4046_v41 = vunpack.i.l.bf16 %v4045_v36  ;;  %v4047_v43 = vunpack.i.h.bf16 %v4045_v36 }
0x191f   : > { %2895 = vmatpush.msrb.mxu2 %v4046_v41 }
0x1921   : > { %2896 = vmatpush.msrb.mxu2 %v4047_v43 }
0x1924   : > { %v2876_v54 = vpop.permute.xlu1 %2875 }
0x1981   : > { %v2700_v59 = vpop.f32.mrf.mxu3 }
0x1982   : > { %2838 = vrot.lane.b32.xlu2 %v2700_v59, %s5646_s30  ;;  %s5657_s30 = smov 1  }
0x1984   : > { %v2633_v23 = vpop.f32.mrf.mxu0 }
0x198c   : > { %v2767_v24 = vpop.f32.mrf.mxu0 }
0x198d   : > { %2842 = vrot.lane.b32.xlu0 %v2767_v24, %s5647_s25  ;;  %s5658_s25 = smov 127  }
0x1995   : > { %2911 = vperm.xlu0 %4048, %v3815_v51  }
0x1999   : > { %v2834_v26 = vpop.f32.mrf.mxu3 }
0x199a   : > { %2846 = vrot.lane.b32.xlu2 %v2834_v26, %s5648_s26 }
0x19dc   : > { %v2839_v21 = vpop.permute.xlu2 %2838 }
0x19dd   : > { %v2849_v25 = vsel %vm689_vm9, %v2633_v23, %v2839_v21 }
0x19f4   : > { %v2847_v49 = vpop.permute.xlu2 %2846 }
0x19ff   : > { %v2843_v45 = vpop.permute.xlu0 %2842 }
0x1a00   : > { %v2850_v46 = vsel %vm963_vm10, %v2849_v25, %v2843_v45 }
0x1a01   : > { %v2851_v47 = vsel %vm965_vm11, %v2850_v46, %v2847_v49 }
0x1a02   : > { %3811 = vmatmul.msk.f32.vlgmr.msrb.gmra.mxu2 %vm593_vm0, %v2851_v47  ;;  %v3846_v47 = vld [vmem:[%s5557_s7 + $0x28] sm:$0xf] }
0x1a07   : > { %v2912_v9 = vpop.permute.xlu0 %2911 }
0x1a85   : > { %v2898_v56 = vpop.f32.mrf.mxu2 }
0x1a86   : > { %v2899_v61 = vadd.f32 %v2898_v56, %v2876_v54 }
0x1a88   : > { %v5234_v62 = vadd.f32 %v2899_v61, %v5123_v30  ;;  %v3820_v30 = vld [vmem:[%s5560_s10 + $0x28] sm:$0x7] }
0x1a8a   : > { %2939 = vmatpush.msrb.mxu0 %v5234_v62  ;;  %v3197_v39 = vsel %vm593_vm0, %v5234_v62, 0.0 }
0x1a8b   : > { %3817 = vmatmul.msk.f32.vlgmr.msrb.gmra.mxu0 %vm689_vm9, %v3813_v63  ;;  %v5280_v63 = vld [vmem:[%s5556_s6 + $0x9] ss:$0 sm:$0xff] }
0x1b08   : > { %v2941_v50 = vpop.f32.mrf.mxu0 }
0x1b09   : > { %v2942_v38 = vadd.f32 %v2941_v50, %v2912_v9 }
0x1b0b   : > { %2947 = vrot.lane.b32.xlu1 %v2942_v38, %s5657_s30  ;;  %2951 = vrot.lane.b32.xlu2 %v2942_v38, %s5658_s25 }
0x1b13   : > { %2960 = vperm.xlu2 %4017, %v3820_v30  }
0x1b3c   : > { %3198 = vadd.xlane.f32.xlu2 %v3197_v39  ;;  %v3858_v39 = vld [vmem:[%s5634_s3 + $0xf8] sm:$0xff] }
0x1b54   : > { %3223 = vrot.lane.b32.xlu2 %v5280_v63, %s5652_s15 }
0x1b65   : > { %v2952_v10 = vpop.permute.xlu2 %2951 }
0x1b66   : > { %3821 = vmatpush.msk.msra.mxu1 %vm1540_vm2, %v2952_v10  ;;  %v4049_v10 = vpack.i.bf16 %v3858_v39, %v5146_v5  ;;  %v3840_v5 = vld [vmem:[%s5559_s9 + $0xa8] sm:$0xff] }
0x1b68   : > { %2980 = vmatpush.msra.mxu1 %v2942_v38 }
0x1b6d   : > { %v2961_v60 = vpop.permute.xlu2 %2960 }
0x1b7d   : > { %v2948_v11 = vpop.permute.xlu1 %2947 }
0x1b7e   : > { %3823 = vmatpush.msk.msra.mxu1 %vm4785_vm4, %v2948_v11 }
0x1b7f   : > { %3824 = vmatmul.msk.f32.vlgmr.msra.gmra.mxu1 %vm965_vm11, %v3819_v40  ;;  %v3856_v40 = vld [vmem:[%s5634_s3 + $0xd8] sm:$0xff] }
0x1b80   : > { %v4054_v11 = vpack.i.bf16 %v3856_v40, %v5151_v6  ;;  %v3839_v6 = vld [vmem:[%s5559_s9 + $0xa0] sm:$0xff] }
0x1baf   : > { %v3199_v51 = vpop.xlane.xlu2 %3198 }
0x1bb0   : > { %v3200_v54 = vmul.f32 %v3199_v51, %v4538_v28 }
0x1bb2   : > { %v5269_v56 = vsub.f32 %v5234_v62, %v3200_v54 }
0x1bfc   : > { %v2983_v12 = vpop.f32.mrf.mxu1 }
0x1bfd   : > { %v2984_v33 = vadd.f32 %v2983_v12, %v2961_v60  ;;  %v3842_v60 = vld [vmem:[%s5559_s9 + $0xb8] sm:$0xff]  ;;  %v3841_v12 = vld [vmem:[%s5559_s9 + $0xb0] sm:$0xff] }
0x1bfe   : > { %3103 = vmatpush.msra.mxu0 %v3842_v60  ;;  %v3224_v60 = vpop.permute.xlu2 %3223 }
0x1bff   : > { %v2987_v37 = vmul.f32 0.70710677, %v2984_v33  ;;  %v2986_v45 = vmul.f32 0.5, %v2984_v33  ;;  %v3814_v33 = vld [vmem:[%s5557_s7 + $0x20] sm:$0xff] }
0x1c00   : > { %3104 = vmatpush.msra.mxu0 %v3841_v12 }
0x1c01   : > { %v2988_v13 = vand.u32 2147483647, %v2987_v37  ;;  %vm3021_vm14 = vcmp.ge.f32.partialorder %v2987_v37, 0.0  ;;  %3818 = vmatmul.msk.f32.gmra.mxu0 %vm689_vm9, %v3814_v33  ;;  %v3838_v37 = vld [vmem:[%s5559_s9 + $0x98] sm:$0xff] }
0x1c02   : > { %3105 = vmatpush.msra.mxu0 %v3840_v5 }
0x1c03   : > { %v2989_v14 = vmul.f32 0.3275911, %v2988_v13  ;;  %v3015_v2 = vsub.f32 0.0, %v2988_v13 }
0x1c04   : > { %3106 = vmatpush.msra.mxu0 %v3839_v6  ;;  %v3878_v6 = vld [vmem:[%s5555_s5 + $0xf8] sm:$0xff] }
0x1c05   : > { %v2990_v15 = vadd.f32 1.0, %v2989_v14  ;;  %v3016_v58 = vmul.f32 %v3015_v2, %v2988_v13  ;;  %v3837_v13 = vld [vmem:[%s5559_s9 + $0x90] sm:$0xff]  ;;  %v3854_v14 = vld [vmem:[%s5634_s3 + $0xb8] sm:$0xff] }
0x1c06   : > { %3107 = vmatpush.msra.mxu0 %v3838_v37  ;;  %v3877_v37 = vld [vmem:[%s5555_s5 + $0xf0] sm:$0xff] }
0x1c07   : > { %4173 = vrcp.f32 %v2990_v15  ;;  %v3002_v18 = vand.u32 2147483648, %v2990_v15  ;;  %v3000_v0 = vand.u32 2147483647, %v2990_v15  ;;  %vm2996_vm2 = vweird.f32 %v2990_v15 }
0x1c08   : > { %v3017_v24 = vmul.f32 1.442695, %v3016_v58  ;;  %3108 = vmatpush.msra.mxu0 %v3837_v13  ;;  %v4082_v13 = vld [vmem:[%s5556_s6 + $0x8] ss:$0 sm:$0xff] }
0x1c09   : > { %v3003_v19 = vor.u32 1.1754944e-38, %v3002_v18  ;;  %vm3001_vm11 = vcmp.eq.f32.partialorder %v3000_v0, 8.507059e+37  ;;  %v3832_v0 = vld [vmem:[%s5559_s9 + $0x68] sm:$0xff] }
0x1c0a   : > { %4175 = vpow2.f32 %v3017_v24 }
0x1c0d   : > { %v4174_v16 = vpop.eup %4173 }
0x1c0e   : > { %v2992_v17 = vmul.f32 %v4174_v16, %v2990_v15  ;;  %vm2997_vm10 = vweird.f32 %v4174_v16  ;;  %v3836_v15 = vld [vmem:[%s5559_s9 + $0x88] sm:$0xff] }
0x1c0f   : > { %vm2998_vm4 = vmor %vm2996_vm2, %vm2997_vm10  ;;  %3109 = vmatpush.msra.mxu0 %v3836_v15  ;;  %v3875_v15 = vld [vmem:[%s5555_s5 + $0xe0] sm:$0xff] }
0x1c10   : > { %v2993_v3 = vsub.f32 1.0, %v2992_v17  ;;  %v4176_v41 = vpop.eup %4175  ;;  %v3835_v17 = vld [vmem:[%s5559_s9 + $0x80] sm:$0xff] }
0x1c11   : > { %3110 = vmatpush.msra.mxu0 %v3835_v17  ;;  %v3874_v17 = vld [vmem:[%s5555_s5 + $0xd8] sm:$0xff] }
0x1c12   : > { %v2994_v20 = vmul.f32 %v4174_v16, %v2993_v3  ;;  %v3834_v3 = vld [vmem:[%s5559_s9 + $0x78] sm:$0xff] }
0x1c13   : > { %3111 = vmatpush.msra.mxu0 %v3834_v3 }
0x1c14   : > { %v2995_v42 = vadd.f32 %v4174_v16, %v2994_v20  ;;  %v3833_v20 = vld [vmem:[%s5559_s9 + $0x70] sm:$0xff] }
0x1c15   : > { %3112 = vmatpush.msra.mxu0 %v3833_v20 }
0x1c16   : > { %v2999_v1 = vsel %vm2998_vm4, %v4174_v16, %v2995_v42  ;;  %v4059_v16 = vpack.i.bf16 %v3854_v14, %v5157_v7  ;;  %v3852_v7 = vld [vmem:[%s5634_s3 + $0x98] sm:$0xff] }
0x1c17   : > { %v3004_v22 = vsel %vm3001_vm11, %v3003_v19, %v2999_v1  ;;  %v4064_v42 = vpack.i.bf16 %v3852_v7, %v5164_v8  ;;  %3113 = vmatpush.msra.mxu0 %v3832_v0  ;;  %v3831_v8 = vld [vmem:[%s5559_s9 + $0x60] sm:$0xff]  ;;  %v3872_v7 = vld [vmem:[%s5555_s5 + $0xc8] sm:$0xff] }
0x1c18   : > { %v3006_v57 = vmul.f32 1.0614054, %v3004_v22 }
0x1c19   : > { %3114 = vmatpush.msra.mxu0 %v3831_v8  ;;  %v3867_v8 = vld [vmem:[%s5555_s5 + $0xa0] sm:$0xff] }
0x1c1a   : > { %v3825_v48 = vadd.f32 -1.4531521, %v3006_v57 }
0x1c1c   : > { %v3008_v59 = vmul.f32 %v3825_v48, %v3004_v22 }
0x1c1e   : > { %v3009_v23 = vadd.f32 1.4214138, %v3008_v59 }
0x1c20   : > { %v3010_v26 = vmul.f32 %v3009_v23, %v3004_v22 }
0x1c22   : > { %v3826_v31 = vadd.f32 -0.28449672, %v3010_v26 }
0x1c24   : > { %v3012_v32 = vmul.f32 %v3826_v31, %v3004_v22 }
0x1c26   : > { %v3013_v35 = vadd.f32 0.2548296, %v3012_v32 }
0x1c28   : > { %v3014_v36 = vmul.f32 %v3013_v35, %v3004_v22  ;;  %v4184_v22 = vld [vmem:[%s5556_s6 + $0x4] ss:$0 sm:$0xff] }
0x1c2a   : > { %v3019_v43 = vmul.f32 %v4176_v41, %v3014_v36 }
0x1c2c   : > { %v3020_v4 = vsub.f32 1.0, %v3019_v43 }
0x1c2e   : > { %v3022_v21 = vsub.f32 0.0, %v3020_v4 }
0x1c30   : > { %v3023_v25 = vsel %vm3021_vm14, %v3020_v4, %v3022_v21 }
0x1c31   : > { %v3024_v49 = vadd.f32 1.0, %v3023_v25 }
0x1c33   : > { %v3025_v46 = vmul.f32 %v3024_v49, %v2986_v45 }
0x1c35   : > { %3069 = vrot.lane.b32.xlu1 %v3025_v46, %s5649_s14  ;;  %3827 = vmatpush.msk.msra.mxu3 %vm1616_vm3, %v3025_v46 }
0x1c36   : > { %3829 = vmatpush.msk.msra.mxu2 %vm1616_vm3, %v3025_v46  ;;  %3828 = vmatmul.msk.f32.vlgmr.msra.gmra.mxu3 %vm1612_vm5, %v4795_v27  ;;  %v3202_v27 = vmul.f32 %v5269_v56, %v5269_v56 }
0x1c37   : > { %3830 = vmatmul.msk.f32.vlgmr.msra.gmra.mxu2 %vm1612_vm5, %v4797_v29  ;;  %3167 = vmatpush.msrb.mxu3 %v5234_v62  ;;  %v3847_v29 = vld [vmem:[%s5560_s10 + $0x2b] sm:$0xf] }
0x1c38   : > { %v3203_v61 = vsel %vm593_vm0, %v3202_v27, 0.0 }
0x1c39   : > { %3352 = vmatpush.msra.mxu3 %v3878_v6 }
0x1c3b   : > { %3353 = vmatpush.msra.mxu3 %v3877_v37 }
0x1c3e   : > { %3848 = vmatmul.msk.f32.vlgmr.msrb.gmra.mxu3 %vm689_vm9, %v3846_v47 }
0x1c5f   : > { %3204 = vadd.xlane.f32.xlu1 %v3203_v61 }
0x1c78   : > { %3146 = vperm.xlu1 %3996, %v3847_v29  }
0x1c7e   : > { %v2944_v49 = vpop.f32.mrf.mxu0 }
0x1ca7   : > { %v3070_v9 = vpop.permute.xlu1 %3069 }
0x1cb9   : > { %v3046_v50 = vpop.f32.mrf.mxu3 }
0x1cba   : > { %v3076_v38 = vsel %vm593_vm0, %v3046_v50, %v3070_v9  ;;  %v3066_v30 = vpop.f32.mrf.mxu2 }
0x1cbb   : > { %3073 = vrot.lane.b32.xlu0 %v3066_v30, %s5652_s15 }
0x1cc1   : > { %v3169_v19 = vpop.f32.mrf.mxu3 }
0x1cc3   : > { %3093 = vrot.lane.b32.xlu0 %v5280_v63, %s5648_s26 }
0x1ccb   : > { %4050 = vrot.lane.b32.xlu0 %v4049_v10, %s5652_s15 }
0x1cd2   : > { %v3205_v18 = vpop.xlane.xlu1 %3204 }
0x1cd3   : > { %4055 = vrot.lane.b32.xlu0 %v4054_v11, %s5652_s15  ;;  %v3206_v57 = vmul.f32 %v3205_v18, %v4538_v28  ;;  %v3873_v18 = vld [vmem:[%s5555_s5 + $0xd0] sm:$0xff] }
0x1cd5   : > { %v3207_v48 = vadd.f32 1e-05, %v3206_v57 }
0x1cd7   : > { %4177 = vrsqrt.f32 %v3207_v48 }
0x1cdb   : > { %3219 = vrot.lane.b32.xlu0 %v5280_v63, %s5639_s17  ;;  %s5664_s17 = smov %s5663_s18 }
0x1cdc   : > { %s4206_s11 = scalar_lea.hbm %s5664_s17, 16 }
0x1cdd   : > { %v4178_v59 = vpop.eup %4177 }
0x1cde   : > { %v3209_v23 = vmul.f32 %v4178_v59, %v3207_v48 }
0x1ce0   : > { %v3210_v26 = vmul.f32 %v4178_v59, %v3209_v23 }
0x1ce2   : > { %v3211_v31 = vmul.f32 0.5, %v3210_v26 }
0x1ce3   : > { %4060 = vrot.lane.b32.xlu0 %v4059_v16, %s5652_s15 }
0x1ce4   : > { %v3212_v36 = vsub.f32 1.5, %v3211_v31  ;;  %v3864_v31 = vld [vmem:[%s5555_s5 + $0x88] sm:$0xff] }
0x1ce6   : > { %v3213_v43 = vmul.f32 %v4178_v59, %v3212_v36 }
0x1cea   : > { %v3147_v1 = vpop.permute.xlu1 %3146 }
0x1ceb   : > { %4065 = vrot.lane.b32.xlu0 %v4064_v42, %s5652_s15  ;;  %v3170_v2 = vadd.f32 %v3169_v19, %v3147_v1  ;;  %v3871_v42 = vld [vmem:[%s5555_s5 + $0xc0] sm:$0xff]  ;;  %v3870_v1 = vld [vmem:[%s5555_s5 + $0xb8] sm:$0xff] }
0x1ced   : > { %3849 = vmatpush.msk.msrb.mxu2 %vm1200_vm1, %v3170_v2  ;;  %vm3214_vm1 = vweird.f32 %v3207_v48  ;;  %v3869_v2 = vld [vmem:[%s5555_s5 + $0xb0] sm:$0xff] }
0x1cee   : > { %3850 = vmatmul.msk.f32.vlgmr.msrb.gmra.mxu2 %vm1183_vm15, %v4966_v55  ;;  %vm3215_vm15 = vweird.f32 %v4178_v59 }
0x1cef   : > { %vm3216_vm8 = vmor %vm3214_vm1, %vm3215_vm15 }
0x1cf0   : > { %v3217_v4 = vsel %vm3216_vm8, %v4178_v59, %v3213_v43  ;;  %v3865_v59 = vld [vmem:[%s5555_s5 + $0x90] sm:$0xff] }
0x1cf1   : > { %v3218_v21 = vmul.f32 %v3217_v4, %v5269_v56 }
0x1cf3   : > { %1994 = vrot.lane.b32.xlu0 %v4184_v22, %s5649_s14  ;;  %v3868_v22 = vld [vmem:[%s5555_s5 + $0xa8] sm:$0xff] }
0x1cfb   : > { %3386 = vrot.lane.b32.xlu0 %v5280_v63, %s5649_s14  ;;  %s5659_s14 = sld [smem:[#allocation13_spill]] }
0x1d01   : > { %s5364_s15 = sand.u32 1, %s5659_s14   ;;  %s5661_s14 = sld [smem:[#allocation16_spill]] }
0x1d02   : > { %s5367_s2 = sshll.u32 %s5364_s15, 3  ;;  %s3423_s24 = scalar_lea.sflag [#allocation3], %s5364_s15 }
0x1d03   : > { %s539_s0 = scalar_lea.vmem [#allocation7], %s5367_s2  ;;  %s5612_s27 = scalar_lea.vmem [#allocation6], %s5367_s2 }
0x1d04   : > { %s518_s28 = scalar_lea.vmem [#allocation2], %s5367_s2 }
0x1d05   : > { %s3450_s23 = sshll.u32 %s518_s28, 4  ;;  %s3451_s23 = int_to_ptr.vmem [resolvable:$true] %s3450_s23 }
0x1d2d   : > { %v3074_v58 = vpop.permute.xlu0 %3073 }
0x1d2e   : > { %v3077_v55 = vsel %vm1671_vm6, %v3076_v38, %v3074_v58  ;;  %v3866_v58 = vld [vmem:[%s5555_s5 + $0x98] sm:$0xff] }
0x1d2f   : > { %3843 = vmatmul.msk.f32.vlgmr.msra.gmra.mxu0 %vm1690_vm7, %v3077_v55 }
0x1d35   : > { %v3094_v24 = vpop.permute.xlu0 %3093 }
0x1d3d   : > { %v4051_v32 = vpop.permute.xlu0 %4050 }
0x1d3e   : > { %v4053_v35 = vunpack.i.h.bf16 %v4051_v32  ;;  %v4052_v61 = vunpack.i.l.bf16 %v4051_v32  ;;  %v3863_v32 = vld [vmem:[%s5555_s5 + $0x80] sm:$0xff] }
0x1d40   : > { %3404 = vmatpush.msra.mxu2 %v4053_v35  ;;  %v3266_v29 = vsel %vm1671_vm6, %v4052_v61, %v4053_v35 }
0x1d45   : > { %v4056_v41 = vpop.permute.xlu0 %4055 }
0x1d46   : > { %v4058_v28 = vunpack.i.h.bf16 %v4056_v41  ;;  %v4057_v9 = vunpack.i.l.bf16 %v4056_v41 }
0x1d48   : > { %3405 = vmatpush.msra.mxu2 %v4058_v28  ;;  %v3265_v50 = vsel %vm1671_vm6, %v4057_v9, %v4058_v28 }
0x1d4d   : > { %v3220_v25 = vpop.permute.xlu0 %3219 }
0x1d4e   : > { %v3222_v45 = vmul.f32 %v3220_v25, %v3218_v21 }
0x1d50   : > { %v3226_v12 = vadd.f32 %v3224_v60, %v3222_v45 }
0x1d55   : > { %v4061_v46 = vpop.permute.xlu0 %4060 }
0x1d56   : > { %v4063_v47 = vunpack.i.h.bf16 %v4061_v46  ;;  %v4062_v38 = vunpack.i.l.bf16 %v4061_v46 }
0x1d58   : > { %3406 = vmatpush.msra.mxu2 %v4063_v47  ;;  %v3264_v30 = vsel %vm1671_vm6, %v4062_v38, %v4063_v47 }
0x1d5d   : > { %v4066_v51 = vpop.permute.xlu0 %4065 }
0x1d5e   : > { %v4068_v54 = vunpack.i.h.bf16 %v4066_v51  ;;  %v4067_v39 = vunpack.i.l.bf16 %v4066_v51 }
0x1d60   : > { %3407 = vmatpush.msra.mxu2 %v4068_v54  ;;  %v3263_v10 = vsel %vm1671_vm6, %v4067_v39, %v4068_v54 }
0x1d71   : > { %v3192_v27 = vpop.f32.mrf.mxu2 }
0x1d72   : > { %v3196_v56 = vadd.f32 %v3192_v27, %v5040_v52  ;;  %v4185_v52 = vld [vmem:[%s5660_s1] sm:$0xff]  ;;  %s5452_s1 = sshll.u32 %s5661_s14, 3 }
0x1d73   : > { %s3448_s16 = scalar_lea.hbm %s5663_s18, %s5452_s1 }
0x1d74   : > { %3421 = vst.msk [vmem:[%s539_s0] sm:$0xff] %vm593_vm0, %v3196_v56  ;;  %s3452_s26 = sshll.u32 %s3448_s16, 4  ;;  %s3453_s26 = int_to_ptr.hbm [resolvable:$true] %s3452_s26 }
0x1d75   : > { %s4200_s30 = sshra.s32 %s3453_s26, 4  ;;  %s4201_s30 = int_to_ptr.hbm [resolvable:$true] %s4200_s30 }
0x1d76   : > { %s4202_s25 = scalar_lea.hbm %s4201_s30, 8  ;;  %p4207_p0 = scmp.lt.s32.totalorder %s4201_s30, %s5664_s17 }
0x1d77   : > { %p4203_p11 = scmp.ne.s32.totalorder %s4201_s30, %s4202_s25  ;;  %p4208_p1 = scmp.lt.s32.totalorder %s4206_s11, %s4202_s25 }
0x1d79   : > { %p4204_p12 = pnand %p4203_p11, %p4484_p5  ;;  %p4209_p2 = por %p4208_p1, %p4207_p0 }
0x1d7b   : > { %p4205_p13 = pneg %p4204_p12 }
0x1d7d   : > { %p4210_p3 = pnand %p4209_p2, %p4205_p13 }
0x1dac   : > { %v3116_v40 = vpop.f32.mrf.mxu0 }
0x1dad   : > { %v3117_v11 = vadd.f32 %v3116_v40, %v3094_v24 }
0x1daf   : > { %3844 = vmatpush.msk.msrb.mxu1 %vm1616_vm3, %v3117_v11 }
0x1db0   : > { %3845 = vmatmul.msk.f32.vlgmr.msrb.gmra.mxu1 %vm1612_vm5, %v4185_v52 }
0x1db1   : > { %3286 = vmatpush.msra.mxu1 %v3266_v29 }
0x1db3   : > { %3287 = vmatpush.msra.mxu1 %v3265_v50 }
0x1db5   : > { %3288 = vmatpush.msra.mxu1 %v3264_v30 }
0x1db7   : > { %3289 = vmatpush.msra.mxu1 %v3263_v10 }
0x1db8   : > { %3860 = vmatmul.msk.f32.vlgmr.msra.gmra.mxu1 %vm593_vm0, %v3226_v12 }
0x1e2d   : > { %v3139_v5 = vpop.f32.mrf.mxu1 }
0x1e2e   : > { %v3195_v33 = vadd.f32 %v3139_v5, %v4909_v34  ;;  %v3876_v34 = vld [vmem:[%s5555_s5 + $0xe8] sm:$0xff] }
0x1e2f   : > { %3354 = vmatpush.msra.mxu3 %v3876_v34 }
0x1e30   : > { %3420 = vst.msk [vmem:[%s5612_s27] sm:$0xff] %vm689_vm9, %v3195_v33 }
0x1e31   : > { %3355 = vmatpush.msra.mxu3 %v3875_v15 }
0x1e33   : > { %3356 = vmatpush.msra.mxu3 %v3874_v17 }
0x1e35   : > { %v3291_v14 = vpop.f32.mrf.mxu1  ;;  %3357 = vmatpush.msra.mxu3 %v3873_v18 }
0x1e36   : > { %v5404_v16 = vadd.f32 %v4082_v13, %v3291_v14 }
0x1e37   : > { %3358 = vmatpush.msra.mxu3 %v3872_v7 }
0x1e38   : > { %v3295_v3 = vmul.f32 0.70710677, %v5404_v16  ;;  %v3294_v30 = vmul.f32 0.5, %v5404_v16 }
0x1e39   : > { %3359 = vmatpush.msra.mxu3 %v3871_v42 }
0x1e3a   : > { %v3296_v20 = vand.u32 2147483647, %v3295_v3  ;;  %vm3329_vm7 = vcmp.ge.f32.partialorder %v3295_v3, 0.0 }
0x1e3b   : > { %3360 = vmatpush.msra.mxu3 %v3870_v1 }
0x1e3c   : > { %v3297_v0 = vmul.f32 0.3275911, %v3296_v20  ;;  %v3323_v28 = vsub.f32 0.0, %v3296_v20 }
0x1e3d   : > { %3361 = vmatpush.msra.mxu3 %v3869_v2 }
0x1e3e   : > { %v3298_v19 = vadd.f32 1.0, %v3297_v0  ;;  %v3324_v25 = vmul.f32 %v3323_v28, %v3296_v20 }
0x1e3f   : > { %3362 = vmatpush.msra.mxu3 %v3868_v22 }
0x1e40   : > { %4179 = vrcp.f32 %v3298_v19  ;;  %v3310_v23 = vand.u32 2147483648, %v3298_v19  ;;  %v3308_v26 = vand.u32 2147483647, %v3298_v19  ;;  %vm3304_vm3 = vweird.f32 %v3298_v19 }
0x1e41   : > { %3363 = vmatpush.msra.mxu3 %v3867_v8  ;;  %v3325_v46 = vmul.f32 1.442695, %v3324_v25 }
0x1e42   : > { %v3311_v36 = vor.u32 1.1754944e-38, %v3310_v23  ;;  %vm3309_vm6 = vcmp.eq.f32.partialorder %v3308_v26, 8.507059e+37 }
0x1e43   : > { %3364 = vmatpush.msra.mxu3 %v3866_v58  ;;  %4181 = vpow2.f32 %v3325_v46 }
0x1e45   : > { %3365 = vmatpush.msra.mxu3 %v3865_v59 }
0x1e46   : > { %v4180_v57 = vpop.eup %4179 }
0x1e47   : > { %v3300_v48 = vmul.f32 %v4180_v57, %v3298_v19  ;;  %vm3305_vm9 = vweird.f32 %v4180_v57  ;;  %3366 = vmatpush.msra.mxu3 %v3864_v31 }
0x1e48   : > { %vm3306_vm5 = vmor %vm3304_vm3, %vm3305_vm9 }
0x1e49   : > { %v3301_v55 = vsub.f32 1.0, %v3300_v48  ;;  %3367 = vmatpush.msra.mxu3 %v3863_v32  ;;  %v4182_v56 = vpop.eup %4181 }
0x1e4b   : > { %v3302_v24 = vmul.f32 %v4180_v57, %v3301_v55 }
0x1e4d   : > { %v3303_v35 = vadd.f32 %v4180_v57, %v3302_v24 }
0x1e4f   : > { %v3307_v41 = vsel %vm3306_vm5, %v4180_v57, %v3303_v35 }
0x1e50   : > { %v3312_v43 = vsel %vm3309_vm6, %v3311_v36, %v3307_v41 }
0x1e51   : > { %v3314_v4 = vmul.f32 1.0614054, %v3312_v43 }
0x1e53   : > { %v3861_v21 = vadd.f32 -1.4531521, %v3314_v4 }
0x1e55   : > { %v3316_v45 = vmul.f32 %v3861_v21, %v3312_v43 }
0x1e57   : > { %v3317_v49 = vadd.f32 1.4214138, %v3316_v45 }
0x1e59   : > { %v3318_v47 = vmul.f32 %v3317_v49, %v3312_v43 }
0x1e5b   : > { %v3862_v51 = vadd.f32 -0.28449672, %v3318_v47 }
0x1e5d   : > { %v3320_v54 = vmul.f32 %v3862_v51, %v3312_v43 }
0x1e5f   : > { %v3321_v27 = vadd.f32 0.2548296, %v3320_v54 }
0x1e61   : > { %v3322_v61 = vmul.f32 %v3321_v27, %v3312_v43 }
0x1e63   : > { %v3327_v29 = vmul.f32 %v4182_v56, %v3322_v61 }
0x1e65   : > { %v3328_v9 = vsub.f32 1.0, %v3327_v29 }
0x1e67   : > { %v3330_v50 = vsub.f32 0.0, %v3328_v9 }
0x1e69   : > { %v3331_v38 = vsel %vm3329_vm7, %v3328_v9, %v3330_v50 }
0x1e6a   : > { %v3332_v39 = vadd.f32 1.0, %v3331_v38 }
0x1e6c   : > { %v3333_v10 = vmul.f32 %v3332_v39, %v3294_v30 }
0x1e6e   : > { %3368 = vmatmul.f32.vlgmr.msra.gmra.mxu3 %v3333_v10 }
0x1ef1   : > { %v3369_v40 = vpop.f32.mrf.mxu3 }
0x1ef2   : > { %v3370_v11 = vadd.f32 %v5280_v63, %v3369_v40 }
0x1ef4   : > { %v3372_v52 = vadd.f32 %v3370_v11, %v5234_v62 }
0x1ef6   : > { %v3373_v60 = vsel %vm593_vm0, %v3372_v52, 0.0 }
0x1ef7   : > { %v3374_v12 = vrot.slane %v3373_v60, 4 }
0x1ef9   : > { %v3375_v5 = vadd.f32 %v3374_v12, %v3373_v60 }
0x1efb   : > { %v3376_v33 = vrot.slane %v3375_v5, 2 }
0x1efd   : > { %v3377_v6 = vadd.f32 %v3376_v33, %v3375_v5 }
0x1eff   : > { %v3378_v37 = vrot.slane %v3377_v6, 1 }
0x1f01   : > { %v3379_v13 = vadd.f32 %v3378_v37, %v3377_v6 }
0x1f03   : > { %v3380_v34 = vmul.f32 %v3379_v13, %v4999_v44 }
0x1f05   : > { %v3381_v14 = vsub.f32 %v3372_v52, %v3380_v34  ;;  %3879 = vmatmul.msk.f32.vlgmr.msra.gmra.mxu2 %vm593_vm0, %v3380_v34 }
0x1f07   : > { %3412 = vst.msk [vmem:[%s518_s28] sm:$0xff] %vm593_vm0, %v3381_v14 }
0x1f08   : > { %4213 = shalt.err (!%p4210_p3)
}
0x1f09   : > { %3890 = dma.vmem_to_hbm [thread:$0]  (%p4484_p5), %s3451_s23, 128, %s3453_s26, %s3423_s24  }
0x1f0a   : > { %s5665_s29 = sld [smem:[#allocation30_spill]]  ;;  %s3492_s16 = sshll.u32 %s539_s0, 4  ;;  %s3493_s16 = int_to_ptr.vmem [resolvable:$true] %s3492_s16 }
0x1f0b   : > { %s3438_s30 = scalar_lea.sflag [#allocation8], %s5364_s15 }
0x1f10   : > { %s3490_s18 = scalar_lea.hbm %s5665_s29, %s5452_s1  ;;  %s4234_s23 = scalar_lea.hbm %s5665_s29, 16 }
0x1f11   : > { %s3494_s19 = sshll.u32 %s3490_s18, 4  ;;  %s3495_s19 = int_to_ptr.hbm [resolvable:$true] %s3494_s19 }
0x1f12   : > { %s4228_s25 = sshra.s32 %s3495_s19, 4  ;;  %s4229_s25 = int_to_ptr.hbm [resolvable:$true] %s4228_s25 }
0x1f13   : > { %s4230_s21 = scalar_lea.hbm %s4229_s25, 8  ;;  %p4235_p9 = scmp.lt.s32.totalorder %s4229_s25, %s5665_s29 }
0x1f14   : > { %p4231_p4 = scmp.ne.s32.totalorder %s4229_s25, %s4230_s21  ;;  %p4236_p10 = scmp.lt.s32.totalorder %s4234_s23, %s4230_s21 }
0x1f16   : > { %p4232_p7 = pnand %p4231_p4, %p4484_p5  ;;  %p4237_p11 = por %p4236_p10, %p4235_p9 }
0x1f18   : > { %p4233_p8 = pneg %p4232_p7 }
0x1f1a   : > { %p4238_p12 = pnand %p4237_p11, %p4233_p8 }
0x1f1c   : > { %4241 = shalt.err (!%p4238_p12)
}
0x1f1d   : > { %3893 = dma.vmem_to_hbm [thread:$0]  (%p4484_p5), %s3493_s16, 128, %s3495_s19, %s3438_s30   ;;  %v1995_v44 = vpop.permute.xlu0 %1994  ;;  %vm3416_vm0 = vcmask 1040384   ;;  %vm3418_vm12 = vcmask 58368  }
0x1f1e   : > { %s3679_s0 = sshll.u32 %s5364_s15, 1  ;;  %s3885_s12 = sshll.u32 %s5661_s14, 1  ;;  %v2018_v16 = vadd.f32 %v5042_v53, %v1995_v44 }
0x1f1f   : > { %s5666_s18 = sld [smem:[#allocation28_spill]]  ;;  %s3427_s24 = sand.u32 1, %s5661_s14  }
0x1f20   : > { %s5668_s23 = sld [smem:[#allocation29_spill]]  ;;  %s525_s27 = scalar_lea.vmem [#allocation4], %s3679_s0 }
0x1f21   : > { %s3464_s3 = sshll.u32 %s525_s27, 4  ;;  %s5669_s16 = scalar_lea.vmem [#allocation6], %s5367_s2  ;;  %s3465_s3 = int_to_ptr.vmem [resolvable:$true] %s3464_s3 }
0x1f22   : > { %s5498_s19 = sshll.u32 %s5669_s16, 4  ;;  %s3428_s14 = scalar_lea.sflag [#allocation5], %s3427_s24  ;;  %s3479_s19 = int_to_ptr.vmem [resolvable:$true] %s5498_s19 }
0x1f25   : > { %v3387_v62 = vpop.permute.xlu0 %3386  ;;  %s5667_s11 = smov %s5666_s18  ;;  %s3462_s25 = scalar_lea.hbm %s5666_s18, %s3885_s12 }
0x1f26   : > { %s3476_s26 = scalar_lea.hbm %s5668_s23, %s5452_s1  ;;  %s3466_s4 = sshll.u32 %s3462_s25, 4  ;;  %s3467_s4 = int_to_ptr.hbm [resolvable:$true] %s3466_s4 }
0x1f27   : > { %s5500_s15 = sshll.u32 %s3476_s26, 4  ;;  %s4256_s1 = sshra.s32 %s3467_s4, 4  ;;  %s3481_s15 = int_to_ptr.hbm [resolvable:$true] %s5500_s15  ;;  %s4257_s1 = int_to_ptr.hbm [resolvable:$true] %s4256_s1 }
0x1f28   : > { %s4258_s2 = scalar_lea.hbm %s4257_s1, 2  ;;  %s4262_s12 = scalar_lea.hbm %s5667_s11, 4 }
0x1f29   : > { %p4259_p13 = scmp.ne.s32.totalorder %s4257_s1, %s4258_s2  ;;  %p4263_p2 = scmp.lt.s32.totalorder %s4257_s1, %s5667_s11 }
0x1f2a   : > { %p4264_p3 = scmp.lt.s32.totalorder %s4262_s12, %s4258_s2 }
0x1f2b   : > { %p4260_p0 = pnand %p4259_p13, %p4484_p5 }
0x1f2c   : > { %p4265_p4 = por %p4264_p3, %p4263_p2 }
0x1f2d   : > { %p4261_p1 = pneg %p4260_p0 }
0x1f2f   : > { %p4266_p7 = pnand %p4265_p4, %p4261_p1 }
0x1f88   : > { %v3409_v63 = vpop.f32.mrf.mxu2 }
0x1f89   : > { %v3410_v15 = vadd.f32 %v3409_v63, %v3387_v62 }
0x1f8b   : > { %v3414_v17 = vrot.slane %v3410_v15, 7 }
0x1f8d   : > { %v3417_v3 = vsel %vm3416_vm0, %v2018_v16, %v3414_v17 }
0x1f8e   : > { %3419 = vst.msk [vmem:[%s525_s27] sm:$0x3] %vm3418_vm12, %v3417_v3 }
0x1f8f   : > { %4269 = shalt.err (!%p4266_p7)
}
0x1f90   : > { %3891 = dma.vmem_to_hbm [thread:$0]  (%p4484_p5), %s3465_s3, 32, %s3467_s4, %s3428_s14  }
0x1f91   : > { %s4284_s27 = sshra.s32 %s3481_s15, 4  ;;  %s4290_s20 = scalar_lea.hbm %s5668_s23, 16  ;;  %s4285_s27 = int_to_ptr.hbm [resolvable:$true] %s4284_s27 }
0x1f92   : > { %s4286_s18 = scalar_lea.hbm %s4285_s27, 8  ;;  %p4291_p11 = scmp.lt.s32.totalorder %s4285_s27, %s5668_s23 }
0x1f93   : > { %p4287_p8 = scmp.ne.s32.totalorder %s4285_s27, %s4286_s18  ;;  %p4292_p12 = scmp.lt.s32.totalorder %s4290_s20, %s4286_s18 }
0x1f95   : > { %p4288_p9 = pnand %p4287_p8, %p4484_p5  ;;  %p4293_p13 = por %p4292_p12, %p4291_p11 }
0x1f97   : > { %p4289_p10 = pneg %p4288_p9 }
0x1f99   : > { %p4294_p0 = pnand %p4293_p13, %p4289_p10 }
0x1f9b   : > { %4297 = shalt.err (!%p4294_p0)
}
0x1f9c   : > { %3892 = dma.vmem_to_hbm [thread:$0]  (%p4484_p5), %s3479_s19, 128, %s3481_s15, %s3428_s14  }
0x1f9d PF: > { %s5670_s3 = sld [smem:[#allocation15_spill]] }
0x1f9e   : > { %s5671_s4 = sld [smem:[#allocation12_spill]] }
0x1fa3   : > { %p3911_p1 = scmp.ge.s32.totalorder %s5670_s3, 2 }
0x1fa4   : > { %s3506_s1 = sand.u32 1, %s5671_s4  }
0x1fa5   : > { %p3899_p2 = pnand %p3911_p1, %p4488_p6  ;;  %s3507_s2 = scalar_lea.sflag [#allocation3], %s3506_s1 }
0x1fa7   : > { %p3900_p3 = pneg %p3899_p2 }
0x1fa9   : > { %4315 = dma.done.wait (%p3900_p3), %s3507_s2, 128  }
0x1faa   : > { %4317 = vsyncadd (%p3900_p3), %s3507_s2, 4294967168  ;;  %s5673_s30 = sadd.s32 4294967294, %s5670_s3  }
0x1fab   : > { %s3516_s22 = sand.u32 1, %s5673_s30  }
0x1fac   : > { %s3517_s0 = scalar_lea.sflag [#allocation5], %s3516_s22 }
0x1fad   : > { %4319 = dma.done.wait (%p3900_p3), %s3517_s0, 160  }
0x1fae   : > { %4321 = vsyncadd (%p3900_p3), %s3517_s0, 4294967136  ;;  %s3537_s12 = scalar_lea.sflag [#allocation8], %s3506_s1 }
0x1faf   : > { %4323 = dma.done.wait (%p3900_p3), %s3537_s12, 128  }
0x1fb0   : > { %4325 = vsyncadd (%p3900_p3), %s3537_s12, 4294967168  ;;  %s5674_s21 = sld [smem:[#allocation17_spill]] }
0x1fb1   : > { %s5675_s18 = sld [smem:[#allocation13_spill]] }
0x1fb2   : > { %s5676_s19 = sld [smem:[#allocation14_spill]] }
0x1fb3   : > { %s5677_s20 = sld [smem:[#allocation18_spill]] }
0x1fb6   : > { %p32_p5 = scmp.ge.s32.totalorder %s5674_s21, 4  }
0x1fb8   :  { %34 = sbr.rel (!%p32_p5) target bundleno = 18 (0x12), region = 166 }
0x1fbd   :  { %3543 = vsyncpa [#allocation3], 1 }
0x1fbe   :  { %3545 = vsyncpa [#allocation3 + $0x1], 1 }
0x1fbf   :  { %3546 = vsyncpa [#allocation5], 1 }
0x1fc0   :  { %3548 = vsyncpa [#allocation5 + $0x1], 1 }
0x1fc1   :  { %3549 = vsyncpa [#allocation8], 1 }
0x1fc2   :  { %3551 = vsyncpa [#allocation8 + $0x1], 1 }

</bundles_post_ra>
